<compile_context>
chip_gen: v5e
topology: v5e:2x2
jax: 0.10.0
libtpu: 0.0.40
codegen_flags: <defaults>
</compile_context>

<pallas_src>
import numpy as np
import jax
import jax.numpy as jnp
from jax.experimental import pallas as pl
from jax.experimental.pallas import tpu as pltpu

# ---- small hyperparameters consistent with the module ----
SEQ_LEN = 8          # seq_len
EMBED = 16           # embed_size
NHEAD = 4
DFF = 256            # dim_feedforward (module default 2048; kept small here)
IN_FEATS = 54        # hard-coded input feature count in the module
KSIZE = 5            # conv1d_kernel_size (odd)
BATCH = SEQ_LEN      # must equal seq_len (see NOTE above)
LN_EPS = 1e-5

_WIDE = frozenset({'ff1_w', 'ff1_b', 'h1_w', 'h1_b'})   # params wider than 128 lanes


def _full_spec(shape):
    nd = len(shape)
    return pl.BlockSpec(shape, lambda i, _nd=nd: (0,) * _nd)


# --------------------------------------------------------------------------
# Host-side parameter packing: everything into two lane-dense slabs.
# index[name] = (slab_id, row0, nrows, ncols);  slab 0 is 128 wide, slab 1 is 256.
# --------------------------------------------------------------------------
def pack_params(raw):
    E, Dh, S = EMBED, EMBED // NHEAD, SEQ_LEN
    entries = {}
    entries['conv_w'] = raw['conv_w']            # (K*54, E)
    entries['conv_b'] = raw['conv_b']            # (1, E)

    # PositionalEncoding quirk: pe (S,1,E) broadcast over (B,S,E) with B==S means
    # flattened row b*S+s receives pe[b].  Materialize that table host-side.
    pe = np.asarray(raw['pe'], np.float32)       # (S, E)
    entries['pe_full'] = np.repeat(pe, S, axis=0)  # (B*S, E)

    ipw = np.asarray(raw['in_proj_w'], np.float32)   # (E, 3E)
    ipb = np.asarray(raw['in_proj_b'], np.float32)   # (1, 3E)
    opw = np.asarray(raw['out_proj_w'], np.float32)  # (E, E)
    for h in range(NHEAD):
        hs = slice(h * Dh, (h + 1) * Dh)
        entries[f'wq{h}'] = ipw[:, 0 * E:1 * E][:, hs]
        entries[f'wk{h}'] = ipw[:, 1 * E:2 * E][:, hs]
        entries[f'wv{h}'] = ipw[:, 2 * E:3 * E][:, hs]
        entries[f'bq{h}'] = ipb[:, 0 * E:1 * E][:, hs]
        entries[f'bk{h}'] = ipb[:, 1 * E:2 * E][:, hs]
        entries[f'bv{h}'] = ipb[:, 2 * E:3 * E][:, hs]
        entries[f'wo{h}'] = opw[hs, :]
    entries['out_proj_b'] = raw['out_proj_b']

    for name in ['ln1_w', 'ln1_b', 'ff1_w', 'ff1_b', 'ff2_w', 'ff2_b',
                 'ln2_w', 'ln2_b',
                 'h1_w', 'h1_b', 'h2_w', 'h2_b', 'h3_w', 'h3_b',
                 'h4_w', 'h4_b', 'h5_w', 'h5_b', 'ho_w', 'ho_b']:
        entries[name] = raw[name]

    def build(names, width, slab_id):
        index, blocks, row = {}, [], 0
        for name in names:
            a = np.asarray(entries[name], np.float32)
            if a.ndim == 1:
                a = a[None, :]
            r, c = a.shape
            assert c <= width, (name, a.shape, width)
            rp = -(-r // 8) * 8                      # 8-row (sublane) aligned
            buf = np.zeros((rp, width), np.float32)
            buf[:r, :c] = a
            blocks.append(buf)
            index[name] = (slab_id, row, r, c)
            row += rp
        return jnp.asarray(np.concatenate(blocks, axis=0)), index

    narrow_names = [n for n in entries if n not in _WIDE]
    wide_names = [n for n in entries if n in _WIDE]
    slab_n, idx_n = build(narrow_names, 128, 0)
    slab_w, idx_w = build(wide_names, 256, 1)
    return {'slab_n': slab_n, 'slab_w': slab_w, 'index': {**idx_n, **idx_w}}


# --------------------------------------------------------------------------
# Single fused kernel: embedding + PE + encoder layer + flatten + MLP head
# --------------------------------------------------------------------------
def make_fused_kernel(param_index, nhead, ln_eps):
    H = nhead

    def kernel(xc_ref, slab_n_ref, slab_w_ref, out_ref):
        f32 = jnp.float32
        B, S, F = xc_ref.shape
        E = EMBED
        Dh = E // H

        def get(name):
            sid, r0, r, c = param_index[name]
            ref = slab_n_ref if sid == 0 else slab_w_ref
            return ref[r0:r0 + r, 0:c]

        def dense(a, wname, bname):
            return jnp.dot(a, get(wname), preferred_element_type=f32) + get(bname)

        def layer_norm(a, wname, bname):
            mu = jnp.mean(a, axis=-1, keepdims=True)
            var = jnp.mean((a - mu) * (a - mu), axis=-1, keepdims=True)
            return (a - mu) * jax.lax.rsqrt(var + ln_eps) * get(wname) + get(bname)

        # ---- Conv1d(54 -> E, K) embedding as one im2col matmul + PE ----
        xcol = xc_ref[...].reshape(B * S, F)                   # (64, K*54)
        x = dense(xcol, 'conv_w', 'conv_b')                    # (64, E)
        x = x + get('pe_full')                                 # PE (module quirk)

        # ---- Self-attention (causal src_mask, per-head weights) ----
        row = jax.lax.broadcasted_iota(jnp.int32, (S, S), 0)
        col = jax.lax.broadcasted_iota(jnp.int32, (S, S), 1)
        keep = (col <= row)[None, :, :]
        scale = 1.0 / float(np.sqrt(Dh))

        attn = jnp.zeros((B * S, E), f32) + get('out_proj_b')
        for h in range(H):
            qh = dense(x, f'wq{h}', f'bq{h}').reshape(B, S, Dh)
            kh = dense(x, f'wk{h}', f'bk{h}').reshape(B, S, Dh)
            vh = dense(x, f'wv{h}', f'bv{h}').reshape(B, S, Dh)
            sc = jnp.einsum('bqd,bkd->bqk', qh, kh,
                            preferred_element_type=f32) * scale
            sc = jnp.where(keep, sc, -1e30)
            sc = sc - jnp.max(sc, axis=-1, keepdims=True)
            p = jnp.exp(sc)
            p = p * pl.reciprocal(jnp.sum(p, axis=-1, keepdims=True), approx=True)
            ctx = jnp.einsum('bqk,bkd->bqd', p, vh, preferred_element_type=f32)
            # out-projection distributed per head (replaces the lane concat)
            attn = attn + jnp.dot(ctx.reshape(B * S, Dh), get(f'wo{h}'),
                                  preferred_element_type=f32)

        y = layer_norm(x + attn, 'ln1_w', 'ln1_b')             # (64, E)
        ff = jnp.maximum(dense(y, 'ff1_w', 'ff1_b'), 0.0)
        ff = dense(ff, 'ff2_w', 'ff2_b')
        z = layer_norm(y + ff, 'ln2_w', 'ln2_b')               # (64, E)

        # ---- torch .reshape(-1, S*E): build a lane-dense (B, 128) slab with
        #      0/1 row-selector matmuls (layout-safe sublane->lane gather) ----
        ri = jax.lax.broadcasted_iota(jnp.int32, (B, B * S), 0)
        ci = jax.lax.broadcasted_iota(jnp.int32, (B, B * S), 1)
        pieces = []
        for s_i in range(S):
            sel = jnp.where(ci == ri * S + s_i, 1.0, 0.0)      # picks row b*S+s_i
            pieces.append(jnp.dot(sel, z, preferred_element_type=f32))   # (B, E)
        zw = jnp.concatenate(pieces, axis=-1)                  # (B, S*E) = (8, 128)

        # ---- Deep MLP head (dropout = identity in eval) ----
        t = jnp.maximum(dense(zw, 'h1_w', 'h1_b'), 0.0)
        t = jnp.maximum(dense(t, 'h2_w', 'h2_b'), 0.0)
        t = jnp.maximum(dense(t, 'h3_w', 'h3_b'), 0.0)
        t = jnp.maximum(dense(t, 'h4_w', 'h4_b'), 0.0)
        t = jnp.maximum(dense(t, 'h5_w', 'h5_b'), 0.0)
        out_ref[...] = dense(t, 'ho_w', 'ho_b')                # (B, 1)

    return kernel


# --------------------------------------------------------------------------
# Forward pass wrapper (single pallas_call)
# --------------------------------------------------------------------------
def forward(x, packed):
    B, S, C = x.shape
    pad = KSIZE - 1
    # F.pad(x, (0, 0, pad, 0), 'constant', -1): left-pad the sequence dim with -1.
    x_pad = jnp.pad(x, ((0, 0), (pad, 0), (0, 0)), constant_values=-1.0)
    # im2col: x_col[b, t, k*C + c] = x_pad[b, t + k, c]   (tiny glue op in JAX)
    x_col = jnp.concatenate([x_pad[:, k:k + S, :] for k in range(KSIZE)], axis=-1)

    inputs = [x_col, packed['slab_n'], packed['slab_w']]
    # TODO(synk): with a real (large) batch, add a leading "parallel" grid axis
    # over batch so v7x can shard across both TensorCores; at B=8 one core is best.
    return pl.pallas_call(
        make_fused_kernel(packed['index'], NHEAD, LN_EPS),
        out_shape=jax.ShapeDtypeStruct((B, 1), jnp.float32),
        grid=(1,),
        in_specs=[_full_spec(a.shape) for a in inputs],
        out_specs=_full_spec((B, 1)),
        compiler_params=pltpu.CompilerParams(dimension_semantics=("arbitrary",)),
    )(*inputs)


# --------------------------------------------------------------------------
# Deterministic parameter init (synthetic; shapes from the module __init__)
# --------------------------------------------------------------------------
def init_params(key):
    keys = list(jax.random.split(key, 32))
    it = iter(keys)

    def linear(in_dim, out_dim):
        bound = 1.0 / np.sqrt(in_dim)
        w = jax.random.uniform(next(it), (in_dim, out_dim), jnp.float32, -bound, bound)
        b = jax.random.uniform(next(it), (1, out_dim), jnp.float32, -bound, bound)
        return w, b

    p = {}
    # Conv1d(54, EMBED, KSIZE): stored flattened/transposed so that
    # conv_w[k*54 + c, e] == torch_weight[e, c, k]
    p['conv_w'], p['conv_b'] = linear(KSIZE * IN_FEATS, EMBED)

    # PositionalEncoding buffer values (stored here as (seq_len, embed)).
    pos = np.arange(SEQ_LEN, dtype=np.float32)[:, None]
    div = np.exp(np.arange(0, EMBED, 2, dtype=np.float32) * (-np.log(10000.0) / EMBED))
    pe = np.zeros((SEQ_LEN, EMBED), dtype=np.float32)
    pe[:, 0::2] = np.sin(pos * div)
    pe[:, 1::2] = np.cos(pos * div)
    p['pe'] = jnp.asarray(pe)

    # TransformerEncoderLayer params
    p['in_proj_w'], p['in_proj_b'] = linear(EMBED, 3 * EMBED)
    p['out_proj_w'], p['out_proj_b'] = linear(EMBED, EMBED)
    p['ln1_w'] = jnp.ones((1, EMBED), jnp.float32)
    p['ln1_b'] = jnp.zeros((1, EMBED), jnp.float32)
    p['ff1_w'], p['ff1_b'] = linear(EMBED, DFF)
    p['ff2_w'], p['ff2_b'] = linear(DFF, EMBED)
    p['ln2_w'] = jnp.ones((1, EMBED), jnp.float32)
    p['ln2_b'] = jnp.zeros((1, EMBED), jnp.float32)

    # MLP head
    p['h1_w'], p['h1_b'] = linear(SEQ_LEN * EMBED, DFF)
    p['h2_w'], p['h2_b'] = linear(DFF, DFF // 2)
    p['h3_w'], p['h3_b'] = linear(DFF // 2, DFF // 4)
    p['h4_w'], p['h4_b'] = linear(DFF // 4, DFF // 16)
    p['h5_w'], p['h5_b'] = linear(DFF // 16, DFF // 64)
    p['ho_w'], p['ho_b'] = linear(DFF // 64, 1)
    return p


# --------------------------------------------------------------------------
# Pure-JAX reference (same math) for a correctness self-check
# --------------------------------------------------------------------------
def reference_forward(x, p):
    B, S, C = x.shape
    pad = KSIZE - 1
    x_pad = jnp.pad(x, ((0, 0), (pad, 0), (0, 0)), constant_values=-1.0)
    x_col = jnp.concatenate([x_pad[:, k:k + S, :] for k in range(KSIZE)], axis=-1)
    h = x_col.reshape(B * S, -1) @ p['conv_w'] + p['conv_b']
    h = h.reshape(B, S, EMBED) + p['pe'][:, None, :]
    qkv = h.reshape(B * S, EMBED) @ p['in_proj_w'] + p['in_proj_b']
    q, k, v = (qkv[:, i * EMBED:(i + 1) * EMBED].reshape(B, S, EMBED) for i in range(3))
    Dh = EMBED // NHEAD
    keep = (np.arange(S)[None, :] <= np.arange(S)[:, None])[None]
    outs = []
    for hh in range(NHEAD):
        sl = slice(hh * Dh, (hh + 1) * Dh)
        s = jnp.einsum('bqd,bkd->bqk', q[..., sl], k[..., sl]) / np.sqrt(Dh)
        s = jnp.where(keep, s, -1e30)
        pa = jax.nn.softmax(s, axis=-1)
        outs.append(jnp.einsum('bqk,bkd->bqd', pa, v[..., sl]))
    attn = jnp.concatenate(outs, -1).reshape(B * S, EMBED) @ p['out_proj_w'] + p['out_proj_b']

    def ln(a, w, b):
        mu = a.mean(-1, keepdims=True)
        var = ((a - mu) ** 2).mean(-1, keepdims=True)
        return (a - mu) / jnp.sqrt(var + LN_EPS) * w + b

    y = ln(h.reshape(B * S, EMBED) + attn, p['ln1_w'], p['ln1_b'])
    ff = jnp.maximum(y @ p['ff1_w'] + p['ff1_b'], 0.0) @ p['ff2_w'] + p['ff2_b']
    z = ln(y + ff, p['ln2_w'], p['ln2_b']).reshape(B, SEQ_LEN * EMBED)
    for name in ['h1', 'h2', 'h3', 'h4', 'h5']:
        z = jnp.maximum(z @ p[name + '_w'] + p[name + '_b'], 0.0)
    return z @ p['ho_w'] + p['ho_b']


if __name__ == "__main__":
    key = jax.random.PRNGKey(0)
    pkey, xkey = jax.random.split(key)
    params = init_params(pkey)
    packed = pack_params(params)
    x = jax.random.normal(xkey, (BATCH, SEQ_LEN, IN_FEATS), jnp.float32)

    out = jax.block_until_ready(forward(x, packed))
    assert out.shape == (BATCH, 1)

    ref = jax.block_until_ready(reference_forward(x, params))
    np.testing.assert_allclose(np.asarray(out), np.asarray(ref), rtol=5e-3, atol=5e-3)

    print("KERNEL_OK")
</pallas_src>

<mosaic_0001>
module attributes {stable_mosaic.version = 11 : i64} {
  func.func @kernel(%arg0: i32, %arg1: memref<8x8x270xf32, #tpu.memory_space<vmem>>, %arg2: memref<1480x128xf32, #tpu.memory_space<vmem>>, %arg3: memref<160x256xf32, #tpu.memory_space<vmem>>, %arg4: memref<8x1xf32, #tpu.memory_space<vmem>>) attributes {dimension_semantics = [#tpu.dimension_semantics<arbitrary>], iteration_bounds = array<i64: 1>, scalar_prefetch = 0 : i64, scratch_operands = 0 : i64, tpu.core_type = #tpu.core_type<tc>, window_params = [{pipeline_mode = #tpu.pipeline_mode<synchronous>, transform_indices = @transform_0, window_bounds = array<i64: 8, 8, 270>}, {pipeline_mode = #tpu.pipeline_mode<synchronous>, transform_indices = @transform_1, window_bounds = array<i64: 1480, 128>}, {pipeline_mode = #tpu.pipeline_mode<synchronous>, transform_indices = @transform_2, window_bounds = array<i64: 160, 256>}, {pipeline_mode = #tpu.pipeline_mode<synchronous>, transform_indices = @transform_3, window_bounds = array<i64: 8, 1>}]} {
    %c0 = arith.constant 0 : index
    %c0_0 = arith.constant 0 : index
    %c0_1 = arith.constant 0 : index
    %0 = vector.load %arg1[%c0, %c0_0, %c0_1] : memref<8x8x270xf32, #tpu.memory_space<vmem>>, vector<8x8x270xf32>
    %1 = vector.shape_cast %0 : vector<8x8x270xf32> to vector<64x270xf32>
    %c0_2 = arith.constant 0 : index
    %c0_3 = arith.constant 0 : index
    %2 = vector.load %arg2[%c0_2, %c0_3] : memref<1480x128xf32, #tpu.memory_space<vmem>>, vector<270x16xf32>
    %cst = arith.constant dense<0.000000e+00> : vector<64x16xf32>
    %3 = tpu.matmul %1, %2, %cst {dimension_numbers = #tpu.dot_dimension_numbers<[1], [0], [0], [1], [0, 0, 1, 1], [], []>} : vector<64x270xf32>, vector<270x16xf32>, vector<64x16xf32> -> vector<64x16xf32>
    %c272 = arith.constant 272 : index
    %c0_4 = arith.constant 0 : index
    %4 = vector.load %arg2[%c272, %c0_4] : memref<1480x128xf32, #tpu.memory_space<vmem>>, vector<1x16xf32>
    %5 = vector.broadcast %4 : vector<1x16xf32> to vector<64x16xf32>
    %6 = arith.addf %3, %5 : vector<64x16xf32>
    %c280 = arith.constant 280 : index
    %c0_5 = arith.constant 0 : index
    %7 = vector.load %arg2[%c280, %c0_5] : memref<1480x128xf32, #tpu.memory_space<vmem>>, vector<64x16xf32>
    %8 = arith.addf %6, %7 : vector<64x16xf32>
    %9 = tpu.iota {dimensions = array<i32: 0>} : vector<8x8xi32>
    %10 = tpu.iota {dimensions = array<i32: 1>} : vector<8x8xi32>
    %11 = arith.cmpi sle, %10, %9 : vector<8x8xi32>
    %12 = vector.shape_cast %11 : vector<8x8xi1> to vector<1x8x8xi1>
    %cst_6 = arith.constant 0.000000e+00 : f32
    %13 = vector.broadcast %cst_6 : f32 to vector<64x16xf32>
    %c664 = arith.constant 664 : index
    %c0_7 = arith.constant 0 : index
    %14 = vector.load %arg2[%c664, %c0_7] : memref<1480x128xf32, #tpu.memory_space<vmem>>, vector<1x16xf32>
    %15 = vector.broadcast %14 : vector<1x16xf32> to vector<64x16xf32>
    %16 = arith.addf %13, %15 : vector<64x16xf32>
    %c344 = arith.constant 344 : index
    %c0_8 = arith.constant 0 : index
    %17 = vector.load %arg2[%c344, %c0_8] : memref<1480x128xf32, #tpu.memory_space<vmem>>, vector<16x4xf32>
    %cst_9 = arith.constant dense<0.000000e+00> : vector<64x4xf32>
    %18 = tpu.matmul %8, %17, %cst_9 {dimension_numbers = #tpu.dot_dimension_numbers<[1], [0], [0], [1], [0, 0, 1, 1], [], []>} : vector<64x16xf32>, vector<16x4xf32>, vector<64x4xf32> -> vector<64x4xf32>
    %c392 = arith.constant 392 : index
    %c0_10 = arith.constant 0 : index
    %19 = vector.load %arg2[%c392, %c0_10] : memref<1480x128xf32, #tpu.memory_space<vmem>>, vector<1x4xf32>
    %20 = vector.broadcast %19 : vector<1x4xf32> to vector<64x4xf32>
    %21 = arith.addf %18, %20 : vector<64x4xf32>
    %22 = vector.shape_cast %21 : vector<64x4xf32> to vector<8x8x4xf32>
    %c360 = arith.constant 360 : index
    %c0_11 = arith.constant 0 : index
    %23 = vector.load %arg2[%c360, %c0_11] : memref<1480x128xf32, #tpu.memory_space<vmem>>, vector<16x4xf32>
    %cst_12 = arith.constant dense<0.000000e+00> : vector<64x4xf32>
    %24 = tpu.matmul %8, %23, %cst_12 {dimension_numbers = #tpu.dot_dimension_numbers<[1], [0], [0], [1], [0, 0, 1, 1], [], []>} : vector<64x16xf32>, vector<16x4xf32>, vector<64x4xf32> -> vector<64x4xf32>
    %c400 = arith.constant 400 : index
    %c0_13 = arith.constant 0 : index
    %25 = vector.load %arg2[%c400, %c0_13] : memref<1480x128xf32, #tpu.memory_space<vmem>>, vector<1x4xf32>
    %26 = vector.broadcast %25 : vector<1x4xf32> to vector<64x4xf32>
    %27 = arith.addf %24, %26 : vector<64x4xf32>
    %28 = vector.shape_cast %27 : vector<64x4xf32> to vector<8x8x4xf32>
    %c376 = arith.constant 376 : index
    %c0_14 = arith.constant 0 : index
    %29 = vector.load %arg2[%c376, %c0_14] : memref<1480x128xf32, #tpu.memory_space<vmem>>, vector<16x4xf32>
    %cst_15 = arith.constant dense<0.000000e+00> : vector<64x4xf32>
    %30 = tpu.matmul %8, %29, %cst_15 {dimension_numbers = #tpu.dot_dimension_numbers<[1], [0], [0], [1], [0, 0, 1, 1], [], []>} : vector<64x16xf32>, vector<16x4xf32>, vector<64x4xf32> -> vector<64x4xf32>
    %c408 = arith.constant 408 : index
    %c0_16 = arith.constant 0 : index
    %31 = vector.load %arg2[%c408, %c0_16] : memref<1480x128xf32, #tpu.memory_space<vmem>>, vector<1x4xf32>
    %32 = vector.broadcast %31 : vector<1x4xf32> to vector<64x4xf32>
    %33 = arith.addf %30, %32 : vector<64x4xf32>
    %34 = vector.shape_cast %33 : vector<64x4xf32> to vector<8x8x4xf32>
    "tpu.trace_start"() <{level = 10 : i32, message = "bqd,bkd->bqk"}> : () -> ()
    %cst_17 = arith.constant dense<0.000000e+00> : vector<8x8x8xf32>
    %35 = tpu.matmul %22, %28, %cst_17 {dimension_numbers = #tpu.dot_dimension_numbers<[2], [2], [1], [1], [0, 0, 0, 1, 1, 1], [0], [0]>} : vector<8x8x4xf32>, vector<8x8x4xf32>, vector<8x8x8xf32> -> vector<8x8x8xf32>
    "tpu.trace_stop"() : () -> ()
    %cst_18 = arith.constant 5.000000e-01 : f32
    %36 = vector.broadcast %cst_18 : f32 to vector<8x8x8xf32>
    %37 = arith.mulf %35, %36 : vector<8x8x8xf32>
    %cst_19 = arith.constant -1.000000e+30 : f32
    %38 = vector.shape_cast %12 : vector<1x8x8xi1> to vector<1x8x8xi1>
    %39 = vector.broadcast %38 : vector<1x8x8xi1> to vector<8x8x8xi1>
    %40 = vector.broadcast %cst_19 : f32 to vector<8x8x8xf32>
    %41 = arith.select %39, %37, %40 : vector<8x8x8xi1>, vector<8x8x8xf32>
    %cst_20 = arith.constant dense<0xFF800000> : vector<8x8xf32>
    %42 = vector.multi_reduction <maximumf>, %41, %cst_20 [2] : vector<8x8x8xf32> to vector<8x8xf32>
    %43 = vector.shape_cast %42 : vector<8x8xf32> to vector<8x8x1xf32>
    %44 = vector.broadcast %43 : vector<8x8x1xf32> to vector<8x8x8xf32>
    %45 = arith.subf %41, %44 : vector<8x8x8xf32>
    %46 = math.exp %45 : vector<8x8x8xf32>
    %cst_21 = arith.constant dense<0.000000e+00> : vector<8x8xf32>
    %47 = vector.multi_reduction <add>, %46, %cst_21 [2] : vector<8x8x8xf32> to vector<8x8xf32>
    %48 = vector.shape_cast %47 : vector<8x8xf32> to vector<8x8x1xf32>
    %49 = tpu.reciprocal %48 {approx = true} : vector<8x8x1xf32> -> vector<8x8x1xf32>
    %50 = vector.broadcast %49 : vector<8x8x1xf32> to vector<8x8x8xf32>
    %51 = arith.mulf %46, %50 : vector<8x8x8xf32>
    "tpu.trace_start"() <{level = 10 : i32, message = "bqk,bkd->bqd"}> : () -> ()
    %cst_22 = arith.constant dense<0.000000e+00> : vector<8x8x4xf32>
    %52 = tpu.matmul %51, %34, %cst_22 {dimension_numbers = #tpu.dot_dimension_numbers<[2], [1], [1], [2], [0, 0, 0, 1, 1, 2], [0], [0]>} : vector<8x8x8xf32>, vector<8x8x4xf32>, vector<8x8x4xf32> -> vector<8x8x4xf32>
    "tpu.trace_stop"() : () -> ()
    %53 = vector.shape_cast %52 : vector<8x8x4xf32> to vector<64x4xf32>
    %c416 = arith.constant 416 : index
    %c0_23 = arith.constant 0 : index
    %54 = vector.load %arg2[%c416, %c0_23] : memref<1480x128xf32, #tpu.memory_space<vmem>>, vector<4x16xf32>
    %cst_24 = arith.constant dense<0.000000e+00> : vector<64x16xf32>
    %55 = tpu.matmul %53, %54, %cst_24 {dimension_numbers = #tpu.dot_dimension_numbers<[1], [0], [0], [1], [0, 0, 1, 1], [], []>} : vector<64x4xf32>, vector<4x16xf32>, vector<64x16xf32> -> vector<64x16xf32>
    %56 = arith.addf %16, %55 : vector<64x16xf32>
    %c424 = arith.constant 424 : index
    %c0_25 = arith.constant 0 : index
    %57 = vector.load %arg2[%c424, %c0_25] : memref<1480x128xf32, #tpu.memory_space<vmem>>, vector<16x4xf32>
    %cst_26 = arith.constant dense<0.000000e+00> : vector<64x4xf32>
    %58 = tpu.matmul %8, %57, %cst_26 {dimension_numbers = #tpu.dot_dimension_numbers<[1], [0], [0], [1], [0, 0, 1, 1], [], []>} : vector<64x16xf32>, vector<16x4xf32>, vector<64x4xf32> -> vector<64x4xf32>
    %c472 = arith.constant 472 : index
    %c0_27 = arith.constant 0 : index
    %59 = vector.load %arg2[%c472, %c0_27] : memref<1480x128xf32, #tpu.memory_space<vmem>>, vector<1x4xf32>
    %60 = vector.broadcast %59 : vector<1x4xf32> to vector<64x4xf32>
    %61 = arith.addf %58, %60 : vector<64x4xf32>
    %62 = vector.shape_cast %61 : vector<64x4xf32> to vector<8x8x4xf32>
    %c440 = arith.constant 440 : index
    %c0_28 = arith.constant 0 : index
    %63 = vector.load %arg2[%c440, %c0_28] : memref<1480x128xf32, #tpu.memory_space<vmem>>, vector<16x4xf32>
    %cst_29 = arith.constant dense<0.000000e+00> : vector<64x4xf32>
    %64 = tpu.matmul %8, %63, %cst_29 {dimension_numbers = #tpu.dot_dimension_numbers<[1], [0], [0], [1], [0, 0, 1, 1], [], []>} : vector<64x16xf32>, vector<16x4xf32>, vector<64x4xf32> -> vector<64x4xf32>
    %c480 = arith.constant 480 : index
    %c0_30 = arith.constant 0 : index
    %65 = vector.load %arg2[%c480, %c0_30] : memref<1480x128xf32, #tpu.memory_space<vmem>>, vector<1x4xf32>
    %66 = vector.broadcast %65 : vector<1x4xf32> to vector<64x4xf32>
    %67 = arith.addf %64, %66 : vector<64x4xf32>
    %68 = vector.shape_cast %67 : vector<64x4xf32> to vector<8x8x4xf32>
    %c456 = arith.constant 456 : index
    %c0_31 = arith.constant 0 : index
    %69 = vector.load %arg2[%c456, %c0_31] : memref<1480x128xf32, #tpu.memory_space<vmem>>, vector<16x4xf32>
    %cst_32 = arith.constant dense<0.000000e+00> : vector<64x4xf32>
    %70 = tpu.matmul %8, %69, %cst_32 {dimension_numbers = #tpu.dot_dimension_numbers<[1], [0], [0], [1], [0, 0, 1, 1], [], []>} : vector<64x16xf32>, vector<16x4xf32>, vector<64x4xf32> -> vector<64x4xf32>
    %c488 = arith.constant 488 : index
    %c0_33 = arith.constant 0 : index
    %71 = vector.load %arg2[%c488, %c0_33] : memref<1480x128xf32, #tpu.memory_space<vmem>>, vector<1x4xf32>
    %72 = vector.broadcast %71 : vector<1x4xf32> to vector<64x4xf32>
    %73 = arith.addf %70, %72 : vector<64x4xf32>
    %74 = vector.shape_cast %73 : vector<64x4xf32> to vector<8x8x4xf32>
    "tpu.trace_start"() <{level = 10 : i32, message = "bqd,bkd->bqk"}> : () -> ()
    %cst_34 = arith.constant dense<0.000000e+00> : vector<8x8x8xf32>
    %75 = tpu.matmul %62, %68, %cst_34 {dimension_numbers = #tpu.dot_dimension_numbers<[2], [2], [1], [1], [0, 0, 0, 1, 1, 1], [0], [0]>} : vector<8x8x4xf32>, vector<8x8x4xf32>, vector<8x8x8xf32> -> vector<8x8x8xf32>
    "tpu.trace_stop"() : () -> ()
    %cst_35 = arith.constant 5.000000e-01 : f32
    %76 = vector.broadcast %cst_35 : f32 to vector<8x8x8xf32>
    %77 = arith.mulf %75, %76 : vector<8x8x8xf32>
    %cst_36 = arith.constant -1.000000e+30 : f32
    %78 = vector.shape_cast %12 : vector<1x8x8xi1> to vector<1x8x8xi1>
    %79 = vector.broadcast %78 : vector<1x8x8xi1> to vector<8x8x8xi1>
    %80 = vector.broadcast %cst_36 : f32 to vector<8x8x8xf32>
    %81 = arith.select %79, %77, %80 : vector<8x8x8xi1>, vector<8x8x8xf32>
    %cst_37 = arith.constant dense<0xFF800000> : vector<8x8xf32>
    %82 = vector.multi_reduction <maximumf>, %81, %cst_37 [2] : vector<8x8x8xf32> to vector<8x8xf32>
    %83 = vector.shape_cast %82 : vector<8x8xf32> to vector<8x8x1xf32>
    %84 = vector.broadcast %83 : vector<8x8x1xf32> to vector<8x8x8xf32>
    %85 = arith.subf %81, %84 : vector<8x8x8xf32>
    %86 = math.exp %85 : vector<8x8x8xf32>
    %cst_38 = arith.constant dense<0.000000e+00> : vector<8x8xf32>
    %87 = vector.multi_reduction <add>, %86, %cst_38 [2] : vector<8x8x8xf32> to vector<8x8xf32>
    %88 = vector.shape_cast %87 : vector<8x8xf32> to vector<8x8x1xf32>
    %89 = tpu.reciprocal %88 {approx = true} : vector<8x8x1xf32> -> vector<8x8x1xf32>
    %90 = vector.broadcast %89 : vector<8x8x1xf32> to vector<8x8x8xf32>
    %91 = arith.mulf %86, %90 : vector<8x8x8xf32>
    "tpu.trace_start"() <{level = 10 : i32, message = "bqk,bkd->bqd"}> : () -> ()
    %cst_39 = arith.constant dense<0.000000e+00> : vector<8x8x4xf32>
    %92 = tpu.matmul %91, %74, %cst_39 {dimension_numbers = #tpu.dot_dimension_numbers<[2], [1], [1], [2], [0, 0, 0, 1, 1, 2], [0], [0]>} : vector<8x8x8xf32>, vector<8x8x4xf32>, vector<8x8x4xf32> -> vector<8x8x4xf32>
    "tpu.trace_stop"() : () -> ()
    %93 = vector.shape_cast %92 : vector<8x8x4xf32> to vector<64x4xf32>
    %c496 = arith.constant 496 : index
    %c0_40 = arith.constant 0 : index
    %94 = vector.load %arg2[%c496, %c0_40] : memref<1480x128xf32, #tpu.memory_space<vmem>>, vector<4x16xf32>
    %cst_41 = arith.constant dense<0.000000e+00> : vector<64x16xf32>
    %95 = tpu.matmul %93, %94, %cst_41 {dimension_numbers = #tpu.dot_dimension_numbers<[1], [0], [0], [1], [0, 0, 1, 1], [], []>} : vector<64x4xf32>, vector<4x16xf32>, vector<64x16xf32> -> vector<64x16xf32>
    %96 = arith.addf %56, %95 : vector<64x16xf32>
    %c504 = arith.constant 504 : index
    %c0_42 = arith.constant 0 : index
    %97 = vector.load %arg2[%c504, %c0_42] : memref<1480x128xf32, #tpu.memory_space<vmem>>, vector<16x4xf32>
    %cst_43 = arith.constant dense<0.000000e+00> : vector<64x4xf32>
    %98 = tpu.matmul %8, %97, %cst_43 {dimension_numbers = #tpu.dot_dimension_numbers<[1], [0], [0], [1], [0, 0, 1, 1], [], []>} : vector<64x16xf32>, vector<16x4xf32>, vector<64x4xf32> -> vector<64x4xf32>
    %c552 = arith.constant 552 : index
    %c0_44 = arith.constant 0 : index
    %99 = vector.load %arg2[%c552, %c0_44] : memref<1480x128xf32, #tpu.memory_space<vmem>>, vector<1x4xf32>
    %100 = vector.broadcast %99 : vector<1x4xf32> to vector<64x4xf32>
    %101 = arith.addf %98, %100 : vector<64x4xf32>
    %102 = vector.shape_cast %101 : vector<64x4xf32> to vector<8x8x4xf32>
    %c520 = arith.constant 520 : index
    %c0_45 = arith.constant 0 : index
    %103 = vector.load %arg2[%c520, %c0_45] : memref<1480x128xf32, #tpu.memory_space<vmem>>, vector<16x4xf32>
    %cst_46 = arith.constant dense<0.000000e+00> : vector<64x4xf32>
    %104 = tpu.matmul %8, %103, %cst_46 {dimension_numbers = #tpu.dot_dimension_numbers<[1], [0], [0], [1], [0, 0, 1, 1], [], []>} : vector<64x16xf32>, vector<16x4xf32>, vector<64x4xf32> -> vector<64x4xf32>
    %c560 = arith.constant 560 : index
    %c0_47 = arith.constant 0 : index
    %105 = vector.load %arg2[%c560, %c0_47] : memref<1480x128xf32, #tpu.memory_space<vmem>>, vector<1x4xf32>
    %106 = vector.broadcast %105 : vector<1x4xf32> to vector<64x4xf32>
    %107 = arith.addf %104, %106 : vector<64x4xf32>
    %108 = vector.shape_cast %107 : vector<64x4xf32> to vector<8x8x4xf32>
    %c536 = arith.constant 536 : index
    %c0_48 = arith.constant 0 : index
    %109 = vector.load %arg2[%c536, %c0_48] : memref<1480x128xf32, #tpu.memory_space<vmem>>, vector<16x4xf32>
    %cst_49 = arith.constant dense<0.000000e+00> : vector<64x4xf32>
    %110 = tpu.matmul %8, %109, %cst_49 {dimension_numbers = #tpu.dot_dimension_numbers<[1], [0], [0], [1], [0, 0, 1, 1], [], []>} : vector<64x16xf32>, vector<16x4xf32>, vector<64x4xf32> -> vector<64x4xf32>
    %c568 = arith.constant 568 : index
    %c0_50 = arith.constant 0 : index
    %111 = vector.load %arg2[%c568, %c0_50] : memref<1480x128xf32, #tpu.memory_space<vmem>>, vector<1x4xf32>
    %112 = vector.broadcast %111 : vector<1x4xf32> to vector<64x4xf32>
    %113 = arith.addf %110, %112 : vector<64x4xf32>
    %114 = vector.shape_cast %113 : vector<64x4xf32> to vector<8x8x4xf32>
    "tpu.trace_start"() <{level = 10 : i32, message = "bqd,bkd->bqk"}> : () -> ()
    %cst_51 = arith.constant dense<0.000000e+00> : vector<8x8x8xf32>
    %115 = tpu.matmul %102, %108, %cst_51 {dimension_numbers = #tpu.dot_dimension_numbers<[2], [2], [1], [1], [0, 0, 0, 1, 1, 1], [0], [0]>} : vector<8x8x4xf32>, vector<8x8x4xf32>, vector<8x8x8xf32> -> vector<8x8x8xf32>
    "tpu.trace_stop"() : () -> ()
    %cst_52 = arith.constant 5.000000e-01 : f32
    %116 = vector.broadcast %cst_52 : f32 to vector<8x8x8xf32>
    %117 = arith.mulf %115, %116 : vector<8x8x8xf32>
    %cst_53 = arith.constant -1.000000e+30 : f32
    %118 = vector.shape_cast %12 : vector<1x8x8xi1> to vector<1x8x8xi1>
    %119 = vector.broadcast %118 : vector<1x8x8xi1> to vector<8x8x8xi1>
    %120 = vector.broadcast %cst_53 : f32 to vector<8x8x8xf32>
    %121 = arith.select %119, %117, %120 : vector<8x8x8xi1>, vector<8x8x8xf32>
    %cst_54 = arith.constant dense<0xFF800000> : vector<8x8xf32>
    %122 = vector.multi_reduction <maximumf>, %121, %cst_54 [2] : vector<8x8x8xf32> to vector<8x8xf32>
    %123 = vector.shape_cast %122 : vector<8x8xf32> to vector<8x8x1xf32>
    %124 = vector.broadcast %123 : vector<8x8x1xf32> to vector<8x8x8xf32>
    %125 = arith.subf %121, %124 : vector<8x8x8xf32>
    %126 = math.exp %125 : vector<8x8x8xf32>
    %cst_55 = arith.constant dense<0.000000e+00> : vector<8x8xf32>
    %127 = vector.multi_reduction <add>, %126, %cst_55 [2] : vector<8x8x8xf32> to vector<8x8xf32>
    %128 = vector.shape_cast %127 : vector<8x8xf32> to vector<8x8x1xf32>
    %129 = tpu.reciprocal %128 {approx = true} : vector<8x8x1xf32> -> vector<8x8x1xf32>
    %130 = vector.broadcast %129 : vector<8x8x1xf32> to vector<8x8x8xf32>
    %131 = arith.mulf %126, %130 : vector<8x8x8xf32>
    "tpu.trace_start"() <{level = 10 : i32, message = "bqk,bkd->bqd"}> : () -> ()
    %cst_56 = arith.constant dense<0.000000e+00> : vector<8x8x4xf32>
    %132 = tpu.matmul %131, %114, %cst_56 {dimension_numbers = #tpu.dot_dimension_numbers<[2], [1], [1], [2], [0, 0, 0, 1, 1, 2], [0], [0]>} : vector<8x8x8xf32>, vector<8x8x4xf32>, vector<8x8x4xf32> -> vector<8x8x4xf32>
    "tpu.trace_stop"() : () -> ()
    %133 = vector.shape_cast %132 : vector<8x8x4xf32> to vector<64x4xf32>
    %c576 = arith.constant 576 : index
    %c0_57 = arith.constant 0 : index
    %134 = vector.load %arg2[%c576, %c0_57] : memref<1480x128xf32, #tpu.memory_space<vmem>>, vector<4x16xf32>
    %cst_58 = arith.constant dense<0.000000e+00> : vector<64x16xf32>
    %135 = tpu.matmul %133, %134, %cst_58 {dimension_numbers = #tpu.dot_dimension_numbers<[1], [0], [0], [1], [0, 0, 1, 1], [], []>} : vector<64x4xf32>, vector<4x16xf32>, vector<64x16xf32> -> vector<64x16xf32>
    %136 = arith.addf %96, %135 : vector<64x16xf32>
    %c584 = arith.constant 584 : index
    %c0_59 = arith.constant 0 : index
    %137 = vector.load %arg2[%c584, %c0_59] : memref<1480x128xf32, #tpu.memory_space<vmem>>, vector<16x4xf32>
    %cst_60 = arith.constant dense<0.000000e+00> : vector<64x4xf32>
    %138 = tpu.matmul %8, %137, %cst_60 {dimension_numbers = #tpu.dot_dimension_numbers<[1], [0], [0], [1], [0, 0, 1, 1], [], []>} : vector<64x16xf32>, vector<16x4xf32>, vector<64x4xf32> -> vector<64x4xf32>
    %c632 = arith.constant 632 : index
    %c0_61 = arith.constant 0 : index
    %139 = vector.load %arg2[%c632, %c0_61] : memref<1480x128xf32, #tpu.memory_space<vmem>>, vector<1x4xf32>
    %140 = vector.broadcast %139 : vector<1x4xf32> to vector<64x4xf32>
    %141 = arith.addf %138, %140 : vector<64x4xf32>
    %142 = vector.shape_cast %141 : vector<64x4xf32> to vector<8x8x4xf32>
    %c600 = arith.constant 600 : index
    %c0_62 = arith.constant 0 : index
    %143 = vector.load %arg2[%c600, %c0_62] : memref<1480x128xf32, #tpu.memory_space<vmem>>, vector<16x4xf32>
    %cst_63 = arith.constant dense<0.000000e+00> : vector<64x4xf32>
    %144 = tpu.matmul %8, %143, %cst_63 {dimension_numbers = #tpu.dot_dimension_numbers<[1], [0], [0], [1], [0, 0, 1, 1], [], []>} : vector<64x16xf32>, vector<16x4xf32>, vector<64x4xf32> -> vector<64x4xf32>
    %c640 = arith.constant 640 : index
    %c0_64 = arith.constant 0 : index
    %145 = vector.load %arg2[%c640, %c0_64] : memref<1480x128xf32, #tpu.memory_space<vmem>>, vector<1x4xf32>
    %146 = vector.broadcast %145 : vector<1x4xf32> to vector<64x4xf32>
    %147 = arith.addf %144, %146 : vector<64x4xf32>
    %148 = vector.shape_cast %147 : vector<64x4xf32> to vector<8x8x4xf32>
    %c616 = arith.constant 616 : index
    %c0_65 = arith.constant 0 : index
    %149 = vector.load %arg2[%c616, %c0_65] : memref<1480x128xf32, #tpu.memory_space<vmem>>, vector<16x4xf32>
    %cst_66 = arith.constant dense<0.000000e+00> : vector<64x4xf32>
    %150 = tpu.matmul %8, %149, %cst_66 {dimension_numbers = #tpu.dot_dimension_numbers<[1], [0], [0], [1], [0, 0, 1, 1], [], []>} : vector<64x16xf32>, vector<16x4xf32>, vector<64x4xf32> -> vector<64x4xf32>
    %c648 = arith.constant 648 : index
    %c0_67 = arith.constant 0 : index
    %151 = vector.load %arg2[%c648, %c0_67] : memref<1480x128xf32, #tpu.memory_space<vmem>>, vector<1x4xf32>
    %152 = vector.broadcast %151 : vector<1x4xf32> to vector<64x4xf32>
    %153 = arith.addf %150, %152 : vector<64x4xf32>
    %154 = vector.shape_cast %153 : vector<64x4xf32> to vector<8x8x4xf32>
    "tpu.trace_start"() <{level = 10 : i32, message = "bqd,bkd->bqk"}> : () -> ()
    %cst_68 = arith.constant dense<0.000000e+00> : vector<8x8x8xf32>
    %155 = tpu.matmul %142, %148, %cst_68 {dimension_numbers = #tpu.dot_dimension_numbers<[2], [2], [1], [1], [0, 0, 0, 1, 1, 1], [0], [0]>} : vector<8x8x4xf32>, vector<8x8x4xf32>, vector<8x8x8xf32> -> vector<8x8x8xf32>
    "tpu.trace_stop"() : () -> ()
    %cst_69 = arith.constant 5.000000e-01 : f32
    %156 = vector.broadcast %cst_69 : f32 to vector<8x8x8xf32>
    %157 = arith.mulf %155, %156 : vector<8x8x8xf32>
    %cst_70 = arith.constant -1.000000e+30 : f32
    %158 = vector.shape_cast %12 : vector<1x8x8xi1> to vector<1x8x8xi1>
    %159 = vector.broadcast %158 : vector<1x8x8xi1> to vector<8x8x8xi1>
    %160 = vector.broadcast %cst_70 : f32 to vector<8x8x8xf32>
    %161 = arith.select %159, %157, %160 : vector<8x8x8xi1>, vector<8x8x8xf32>
    %cst_71 = arith.constant dense<0xFF800000> : vector<8x8xf32>
    %162 = vector.multi_reduction <maximumf>, %161, %cst_71 [2] : vector<8x8x8xf32> to vector<8x8xf32>
    %163 = vector.shape_cast %162 : vector<8x8xf32> to vector<8x8x1xf32>
    %164 = vector.broadcast %163 : vector<8x8x1xf32> to vector<8x8x8xf32>
    %165 = arith.subf %161, %164 : vector<8x8x8xf32>
    %166 = math.exp %165 : vector<8x8x8xf32>
    %cst_72 = arith.constant dense<0.000000e+00> : vector<8x8xf32>
    %167 = vector.multi_reduction <add>, %166, %cst_72 [2] : vector<8x8x8xf32> to vector<8x8xf32>
    %168 = vector.shape_cast %167 : vector<8x8xf32> to vector<8x8x1xf32>
    %169 = tpu.reciprocal %168 {approx = true} : vector<8x8x1xf32> -> vector<8x8x1xf32>
    %170 = vector.broadcast %169 : vector<8x8x1xf32> to vector<8x8x8xf32>
    %171 = arith.mulf %166, %170 : vector<8x8x8xf32>
    "tpu.trace_start"() <{level = 10 : i32, message = "bqk,bkd->bqd"}> : () -> ()
    %cst_73 = arith.constant dense<0.000000e+00> : vector<8x8x4xf32>
    %172 = tpu.matmul %171, %154, %cst_73 {dimension_numbers = #tpu.dot_dimension_numbers<[2], [1], [1], [2], [0, 0, 0, 1, 1, 2], [0], [0]>} : vector<8x8x8xf32>, vector<8x8x4xf32>, vector<8x8x4xf32> -> vector<8x8x4xf32>
    "tpu.trace_stop"() : () -> ()
    %173 = vector.shape_cast %172 : vector<8x8x4xf32> to vector<64x4xf32>
    %c656 = arith.constant 656 : index
    %c0_74 = arith.constant 0 : index
    %174 = vector.load %arg2[%c656, %c0_74] : memref<1480x128xf32, #tpu.memory_space<vmem>>, vector<4x16xf32>
    %cst_75 = arith.constant dense<0.000000e+00> : vector<64x16xf32>
    %175 = tpu.matmul %173, %174, %cst_75 {dimension_numbers = #tpu.dot_dimension_numbers<[1], [0], [0], [1], [0, 0, 1, 1], [], []>} : vector<64x4xf32>, vector<4x16xf32>, vector<64x16xf32> -> vector<64x16xf32>
    %176 = arith.addf %136, %175 : vector<64x16xf32>
    %177 = arith.addf %8, %176 : vector<64x16xf32>
    %cst_76 = arith.constant dense<0.000000e+00> : vector<64xf32>
    %178 = vector.multi_reduction <add>, %177, %cst_76 [1] : vector<64x16xf32> to vector<64xf32>
    %179 = vector.shape_cast %178 : vector<64xf32> to vector<64x1xf32>
    %cst_77 = arith.constant 1.600000e+01 : f32
    %180 = vector.broadcast %cst_77 : f32 to vector<64x1xf32>
    %181 = arith.divf %179, %180 : vector<64x1xf32>
    %182 = vector.broadcast %181 : vector<64x1xf32> to vector<64x16xf32>
    %183 = arith.subf %177, %182 : vector<64x16xf32>
    %184 = vector.broadcast %181 : vector<64x1xf32> to vector<64x16xf32>
    %185 = arith.subf %177, %184 : vector<64x16xf32>
    %186 = arith.mulf %183, %185 : vector<64x16xf32>
    %cst_78 = arith.constant dense<0.000000e+00> : vector<64xf32>
    %187 = vector.multi_reduction <add>, %186, %cst_78 [1] : vector<64x16xf32> to vector<64xf32>
    %188 = vector.shape_cast %187 : vector<64xf32> to vector<64x1xf32>
    %cst_79 = arith.constant 1.600000e+01 : f32
    %189 = vector.broadcast %cst_79 : f32 to vector<64x1xf32>
    %190 = arith.divf %188, %189 : vector<64x1xf32>
    %191 = vector.broadcast %181 : vector<64x1xf32> to vector<64x16xf32>
    %192 = arith.subf %177, %191 : vector<64x16xf32>
    %cst_80 = arith.constant 9.99999974E-6 : f32
    %193 = vector.broadcast %cst_80 : f32 to vector<64x1xf32>
    %194 = arith.addf %190, %193 : vector<64x1xf32>
    %195 = math.rsqrt %194 : vector<64x1xf32>
    %196 = vector.broadcast %195 : vector<64x1xf32> to vector<64x16xf32>
    %197 = arith.mulf %192, %196 : vector<64x16xf32>
    %c672 = arith.constant 672 : index
    %c0_81 = arith.constant 0 : index
    %198 = vector.load %arg2[%c672, %c0_81] : memref<1480x128xf32, #tpu.memory_space<vmem>>, vector<1x16xf32>
    %199 = vector.broadcast %198 : vector<1x16xf32> to vector<64x16xf32>
    %200 = arith.mulf %197, %199 : vector<64x16xf32>
    %c680 = arith.constant 680 : index
    %c0_82 = arith.constant 0 : index
    %201 = vector.load %arg2[%c680, %c0_82] : memref<1480x128xf32, #tpu.memory_space<vmem>>, vector<1x16xf32>
    %202 = vector.broadcast %201 : vector<1x16xf32> to vector<64x16xf32>
    %203 = arith.addf %200, %202 : vector<64x16xf32>
    %c0_83 = arith.constant 0 : index
    %c0_84 = arith.constant 0 : index
    %204 = vector.load %arg3[%c0_83, %c0_84] : memref<160x256xf32, #tpu.memory_space<vmem>>, vector<16x256xf32>
    %cst_85 = arith.constant dense<0.000000e+00> : vector<64x256xf32>
    %205 = tpu.matmul %203, %204, %cst_85 {dimension_numbers = #tpu.dot_dimension_numbers<[1], [0], [0], [1], [0, 0, 1, 1], [], []>} : vector<64x16xf32>, vector<16x256xf32>, vector<64x256xf32> -> vector<64x256xf32>
    %c16 = arith.constant 16 : index
    %c0_86 = arith.constant 0 : index
    %206 = vector.load %arg3[%c16, %c0_86] : memref<160x256xf32, #tpu.memory_space<vmem>>, vector<1x256xf32>
    %207 = vector.broadcast %206 : vector<1x256xf32> to vector<64x256xf32>
    %208 = arith.addf %205, %207 : vector<64x256xf32>
    %cst_87 = arith.constant 0.000000e+00 : f32
    %209 = vector.broadcast %cst_87 : f32 to vector<64x256xf32>
    %210 = arith.maximumf %208, %209 : vector<64x256xf32>
    %c688 = arith.constant 688 : index
    %c0_88 = arith.constant 0 : index
    %211 = vector.load %arg2[%c688, %c0_88] : memref<1480x128xf32, #tpu.memory_space<vmem>>, vector<256x16xf32>
    %cst_89 = arith.constant dense<0.000000e+00> : vector<64x16xf32>
    %212 = tpu.matmul %210, %211, %cst_89 {dimension_numbers = #tpu.dot_dimension_numbers<[1], [0], [0], [1], [0, 0, 1, 1], [], []>} : vector<64x256xf32>, vector<256x16xf32>, vector<64x16xf32> -> vector<64x16xf32>
    %c944 = arith.constant 944 : index
    %c0_90 = arith.constant 0 : index
    %213 = vector.load %arg2[%c944, %c0_90] : memref<1480x128xf32, #tpu.memory_space<vmem>>, vector<1x16xf32>
    %214 = vector.broadcast %213 : vector<1x16xf32> to vector<64x16xf32>
    %215 = arith.addf %212, %214 : vector<64x16xf32>
    %216 = arith.addf %203, %215 : vector<64x16xf32>
    %cst_91 = arith.constant dense<0.000000e+00> : vector<64xf32>
    %217 = vector.multi_reduction <add>, %216, %cst_91 [1] : vector<64x16xf32> to vector<64xf32>
    %218 = vector.shape_cast %217 : vector<64xf32> to vector<64x1xf32>
    %cst_92 = arith.constant 1.600000e+01 : f32
    %219 = vector.broadcast %cst_92 : f32 to vector<64x1xf32>
    %220 = arith.divf %218, %219 : vector<64x1xf32>
    %221 = vector.broadcast %220 : vector<64x1xf32> to vector<64x16xf32>
    %222 = arith.subf %216, %221 : vector<64x16xf32>
    %223 = vector.broadcast %220 : vector<64x1xf32> to vector<64x16xf32>
    %224 = arith.subf %216, %223 : vector<64x16xf32>
    %225 = arith.mulf %222, %224 : vector<64x16xf32>
    %cst_93 = arith.constant dense<0.000000e+00> : vector<64xf32>
    %226 = vector.multi_reduction <add>, %225, %cst_93 [1] : vector<64x16xf32> to vector<64xf32>
    %227 = vector.shape_cast %226 : vector<64xf32> to vector<64x1xf32>
    %cst_94 = arith.constant 1.600000e+01 : f32
    %228 = vector.broadcast %cst_94 : f32 to vector<64x1xf32>
    %229 = arith.divf %227, %228 : vector<64x1xf32>
    %230 = vector.broadcast %220 : vector<64x1xf32> to vector<64x16xf32>
    %231 = arith.subf %216, %230 : vector<64x16xf32>
    %cst_95 = arith.constant 9.99999974E-6 : f32
    %232 = vector.broadcast %cst_95 : f32 to vector<64x1xf32>
    %233 = arith.addf %229, %232 : vector<64x1xf32>
    %234 = math.rsqrt %233 : vector<64x1xf32>
    %235 = vector.broadcast %234 : vector<64x1xf32> to vector<64x16xf32>
    %236 = arith.mulf %231, %235 : vector<64x16xf32>
    %c952 = arith.constant 952 : index
    %c0_96 = arith.constant 0 : index
    %237 = vector.load %arg2[%c952, %c0_96] : memref<1480x128xf32, #tpu.memory_space<vmem>>, vector<1x16xf32>
    %238 = vector.broadcast %237 : vector<1x16xf32> to vector<64x16xf32>
    %239 = arith.mulf %236, %238 : vector<64x16xf32>
    %c960 = arith.constant 960 : index
    %c0_97 = arith.constant 0 : index
    %240 = vector.load %arg2[%c960, %c0_97] : memref<1480x128xf32, #tpu.memory_space<vmem>>, vector<1x16xf32>
    %241 = vector.broadcast %240 : vector<1x16xf32> to vector<64x16xf32>
    %242 = arith.addf %239, %241 : vector<64x16xf32>
    %243 = tpu.iota {dimensions = array<i32: 0>} : vector<8x64xi32>
    %244 = tpu.iota {dimensions = array<i32: 1>} : vector<8x64xi32>
    %c8_i32 = arith.constant 8 : i32
    %245 = vector.broadcast %c8_i32 : i32 to vector<8x64xi32>
    %246 = arith.muli %243, %245 : vector<8x64xi32>
    %c0_i32 = arith.constant 0 : i32
    %247 = vector.broadcast %c0_i32 : i32 to vector<8x64xi32>
    %248 = arith.addi %246, %247 : vector<8x64xi32>
    %249 = arith.cmpi eq, %244, %248 : vector<8x64xi32>
    %cst_98 = arith.constant 1.000000e+00 : f32
    %cst_99 = arith.constant 0.000000e+00 : f32
    %250 = vector.broadcast %cst_98 : f32 to vector<8x64xf32>
    %251 = vector.broadcast %cst_99 : f32 to vector<8x64xf32>
    %252 = arith.select %249, %250, %251 : vector<8x64xi1>, vector<8x64xf32>
    %cst_100 = arith.constant dense<0.000000e+00> : vector<8x16xf32>
    %253 = tpu.matmul %252, %242, %cst_100 {dimension_numbers = #tpu.dot_dimension_numbers<[1], [0], [0], [1], [0, 0, 1, 1], [], []>} : vector<8x64xf32>, vector<64x16xf32>, vector<8x16xf32> -> vector<8x16xf32>
    %c8_i32_101 = arith.constant 8 : i32
    %254 = vector.broadcast %c8_i32_101 : i32 to vector<8x64xi32>
    %255 = arith.muli %243, %254 : vector<8x64xi32>
    %c1_i32 = arith.constant 1 : i32
    %256 = vector.broadcast %c1_i32 : i32 to vector<8x64xi32>
    %257 = arith.addi %255, %256 : vector<8x64xi32>
    %258 = arith.cmpi eq, %244, %257 : vector<8x64xi32>
    %cst_102 = arith.constant 1.000000e+00 : f32
    %cst_103 = arith.constant 0.000000e+00 : f32
    %259 = vector.broadcast %cst_102 : f32 to vector<8x64xf32>
    %260 = vector.broadcast %cst_103 : f32 to vector<8x64xf32>
    %261 = arith.select %258, %259, %260 : vector<8x64xi1>, vector<8x64xf32>
    %cst_104 = arith.constant dense<0.000000e+00> : vector<8x16xf32>
    %262 = tpu.matmul %261, %242, %cst_104 {dimension_numbers = #tpu.dot_dimension_numbers<[1], [0], [0], [1], [0, 0, 1, 1], [], []>} : vector<8x64xf32>, vector<64x16xf32>, vector<8x16xf32> -> vector<8x16xf32>
    %c8_i32_105 = arith.constant 8 : i32
    %263 = vector.broadcast %c8_i32_105 : i32 to vector<8x64xi32>
    %264 = arith.muli %243, %263 : vector<8x64xi32>
    %c2_i32 = arith.constant 2 : i32
    %265 = vector.broadcast %c2_i32 : i32 to vector<8x64xi32>
    %266 = arith.addi %264, %265 : vector<8x64xi32>
    %267 = arith.cmpi eq, %244, %266 : vector<8x64xi32>
    %cst_106 = arith.constant 1.000000e+00 : f32
    %cst_107 = arith.constant 0.000000e+00 : f32
    %268 = vector.broadcast %cst_106 : f32 to vector<8x64xf32>
    %269 = vector.broadcast %cst_107 : f32 to vector<8x64xf32>
    %270 = arith.select %267, %268, %269 : vector<8x64xi1>, vector<8x64xf32>
    %cst_108 = arith.constant dense<0.000000e+00> : vector<8x16xf32>
    %271 = tpu.matmul %270, %242, %cst_108 {dimension_numbers = #tpu.dot_dimension_numbers<[1], [0], [0], [1], [0, 0, 1, 1], [], []>} : vector<8x64xf32>, vector<64x16xf32>, vector<8x16xf32> -> vector<8x16xf32>
    %c8_i32_109 = arith.constant 8 : i32
    %272 = vector.broadcast %c8_i32_109 : i32 to vector<8x64xi32>
    %273 = arith.muli %243, %272 : vector<8x64xi32>
    %c3_i32 = arith.constant 3 : i32
    %274 = vector.broadcast %c3_i32 : i32 to vector<8x64xi32>
    %275 = arith.addi %273, %274 : vector<8x64xi32>
    %276 = arith.cmpi eq, %244, %275 : vector<8x64xi32>
    %cst_110 = arith.constant 1.000000e+00 : f32
    %cst_111 = arith.constant 0.000000e+00 : f32
    %277 = vector.broadcast %cst_110 : f32 to vector<8x64xf32>
    %278 = vector.broadcast %cst_111 : f32 to vector<8x64xf32>
    %279 = arith.select %276, %277, %278 : vector<8x64xi1>, vector<8x64xf32>
    %cst_112 = arith.constant dense<0.000000e+00> : vector<8x16xf32>
    %280 = tpu.matmul %279, %242, %cst_112 {dimension_numbers = #tpu.dot_dimension_numbers<[1], [0], [0], [1], [0, 0, 1, 1], [], []>} : vector<8x64xf32>, vector<64x16xf32>, vector<8x16xf32> -> vector<8x16xf32>
    %c8_i32_113 = arith.constant 8 : i32
    %281 = vector.broadcast %c8_i32_113 : i32 to vector<8x64xi32>
    %282 = arith.muli %243, %281 : vector<8x64xi32>
    %c4_i32 = arith.constant 4 : i32
    %283 = vector.broadcast %c4_i32 : i32 to vector<8x64xi32>
    %284 = arith.addi %282, %283 : vector<8x64xi32>
    %285 = arith.cmpi eq, %244, %284 : vector<8x64xi32>
    %cst_114 = arith.constant 1.000000e+00 : f32
    %cst_115 = arith.constant 0.000000e+00 : f32
    %286 = vector.broadcast %cst_114 : f32 to vector<8x64xf32>
    %287 = vector.broadcast %cst_115 : f32 to vector<8x64xf32>
    %288 = arith.select %285, %286, %287 : vector<8x64xi1>, vector<8x64xf32>
    %cst_116 = arith.constant dense<0.000000e+00> : vector<8x16xf32>
    %289 = tpu.matmul %288, %242, %cst_116 {dimension_numbers = #tpu.dot_dimension_numbers<[1], [0], [0], [1], [0, 0, 1, 1], [], []>} : vector<8x64xf32>, vector<64x16xf32>, vector<8x16xf32> -> vector<8x16xf32>
    %c8_i32_117 = arith.constant 8 : i32
    %290 = vector.broadcast %c8_i32_117 : i32 to vector<8x64xi32>
    %291 = arith.muli %243, %290 : vector<8x64xi32>
    %c5_i32 = arith.constant 5 : i32
    %292 = vector.broadcast %c5_i32 : i32 to vector<8x64xi32>
    %293 = arith.addi %291, %292 : vector<8x64xi32>
    %294 = arith.cmpi eq, %244, %293 : vector<8x64xi32>
    %cst_118 = arith.constant 1.000000e+00 : f32
    %cst_119 = arith.constant 0.000000e+00 : f32
    %295 = vector.broadcast %cst_118 : f32 to vector<8x64xf32>
    %296 = vector.broadcast %cst_119 : f32 to vector<8x64xf32>
    %297 = arith.select %294, %295, %296 : vector<8x64xi1>, vector<8x64xf32>
    %cst_120 = arith.constant dense<0.000000e+00> : vector<8x16xf32>
    %298 = tpu.matmul %297, %242, %cst_120 {dimension_numbers = #tpu.dot_dimension_numbers<[1], [0], [0], [1], [0, 0, 1, 1], [], []>} : vector<8x64xf32>, vector<64x16xf32>, vector<8x16xf32> -> vector<8x16xf32>
    %c8_i32_121 = arith.constant 8 : i32
    %299 = vector.broadcast %c8_i32_121 : i32 to vector<8x64xi32>
    %300 = arith.muli %243, %299 : vector<8x64xi32>
    %c6_i32 = arith.constant 6 : i32
    %301 = vector.broadcast %c6_i32 : i32 to vector<8x64xi32>
    %302 = arith.addi %300, %301 : vector<8x64xi32>
    %303 = arith.cmpi eq, %244, %302 : vector<8x64xi32>
    %cst_122 = arith.constant 1.000000e+00 : f32
    %cst_123 = arith.constant 0.000000e+00 : f32
    %304 = vector.broadcast %cst_122 : f32 to vector<8x64xf32>
    %305 = vector.broadcast %cst_123 : f32 to vector<8x64xf32>
    %306 = arith.select %303, %304, %305 : vector<8x64xi1>, vector<8x64xf32>
    %cst_124 = arith.constant dense<0.000000e+00> : vector<8x16xf32>
    %307 = tpu.matmul %306, %242, %cst_124 {dimension_numbers = #tpu.dot_dimension_numbers<[1], [0], [0], [1], [0, 0, 1, 1], [], []>} : vector<8x64xf32>, vector<64x16xf32>, vector<8x16xf32> -> vector<8x16xf32>
    %c8_i32_125 = arith.constant 8 : i32
    %308 = vector.broadcast %c8_i32_125 : i32 to vector<8x64xi32>
    %309 = arith.muli %243, %308 : vector<8x64xi32>
    %c7_i32 = arith.constant 7 : i32
    %310 = vector.broadcast %c7_i32 : i32 to vector<8x64xi32>
    %311 = arith.addi %309, %310 : vector<8x64xi32>
    %312 = arith.cmpi eq, %244, %311 : vector<8x64xi32>
    %cst_126 = arith.constant 1.000000e+00 : f32
    %cst_127 = arith.constant 0.000000e+00 : f32
    %313 = vector.broadcast %cst_126 : f32 to vector<8x64xf32>
    %314 = vector.broadcast %cst_127 : f32 to vector<8x64xf32>
    %315 = arith.select %312, %313, %314 : vector<8x64xi1>, vector<8x64xf32>
    %cst_128 = arith.constant dense<0.000000e+00> : vector<8x16xf32>
    %316 = tpu.matmul %315, %242, %cst_128 {dimension_numbers = #tpu.dot_dimension_numbers<[1], [0], [0], [1], [0, 0, 1, 1], [], []>} : vector<8x64xf32>, vector<64x16xf32>, vector<8x16xf32> -> vector<8x16xf32>
    %317 = tpu.concatenate %253, %262, %271, %280, %289, %298, %307, %316 in 1 : vector<8x16xf32>, vector<8x16xf32>, vector<8x16xf32>, vector<8x16xf32>, vector<8x16xf32>, vector<8x16xf32>, vector<8x16xf32>, vector<8x16xf32> -> vector<8x128xf32>
    %c24 = arith.constant 24 : index
    %c0_129 = arith.constant 0 : index
    %318 = vector.load %arg3[%c24, %c0_129] : memref<160x256xf32, #tpu.memory_space<vmem>>, vector<128x256xf32>
    %cst_130 = arith.constant dense<0.000000e+00> : vector<8x256xf32>
    %319 = tpu.matmul %317, %318, %cst_130 {dimension_numbers = #tpu.dot_dimension_numbers<[1], [0], [0], [1], [0, 0, 1, 1], [], []>} : vector<8x128xf32>, vector<128x256xf32>, vector<8x256xf32> -> vector<8x256xf32>
    %c152 = arith.constant 152 : index
    %c0_131 = arith.constant 0 : index
    %320 = vector.load %arg3[%c152, %c0_131] : memref<160x256xf32, #tpu.memory_space<vmem>>, vector<1x256xf32>
    %321 = vector.broadcast %320 : vector<1x256xf32> to vector<8x256xf32>
    %322 = arith.addf %319, %321 : vector<8x256xf32>
    %cst_132 = arith.constant 0.000000e+00 : f32
    %323 = vector.broadcast %cst_132 : f32 to vector<8x256xf32>
    %324 = arith.maximumf %322, %323 : vector<8x256xf32>
    %c968 = arith.constant 968 : index
    %c0_133 = arith.constant 0 : index
    %325 = vector.load %arg2[%c968, %c0_133] : memref<1480x128xf32, #tpu.memory_space<vmem>>, vector<256x128xf32>
    %cst_134 = arith.constant dense<0.000000e+00> : vector<8x128xf32>
    %326 = tpu.matmul %324, %325, %cst_134 {dimension_numbers = #tpu.dot_dimension_numbers<[1], [0], [0], [1], [0, 0, 1, 1], [], []>} : vector<8x256xf32>, vector<256x128xf32>, vector<8x128xf32> -> vector<8x128xf32>
    %c1224 = arith.constant 1224 : index
    %c0_135 = arith.constant 0 : index
    %327 = vector.load %arg2[%c1224, %c0_135] : memref<1480x128xf32, #tpu.memory_space<vmem>>, vector<1x128xf32>
    %328 = vector.broadcast %327 : vector<1x128xf32> to vector<8x128xf32>
    %329 = arith.addf %326, %328 : vector<8x128xf32>
    %cst_136 = arith.constant 0.000000e+00 : f32
    %330 = vector.broadcast %cst_136 : f32 to vector<8x128xf32>
    %331 = arith.maximumf %329, %330 : vector<8x128xf32>
    %c1232 = arith.constant 1232 : index
    %c0_137 = arith.constant 0 : index
    %332 = vector.load %arg2[%c1232, %c0_137] : memref<1480x128xf32, #tpu.memory_space<vmem>>, vector<128x64xf32>
    %cst_138 = arith.constant dense<0.000000e+00> : vector<8x64xf32>
    %333 = tpu.matmul %331, %332, %cst_138 {dimension_numbers = #tpu.dot_dimension_numbers<[1], [0], [0], [1], [0, 0, 1, 1], [], []>} : vector<8x128xf32>, vector<128x64xf32>, vector<8x64xf32> -> vector<8x64xf32>
    %c1360 = arith.constant 1360 : index
    %c0_139 = arith.constant 0 : index
    %334 = vector.load %arg2[%c1360, %c0_139] : memref<1480x128xf32, #tpu.memory_space<vmem>>, vector<1x64xf32>
    %335 = vector.broadcast %334 : vector<1x64xf32> to vector<8x64xf32>
    %336 = arith.addf %333, %335 : vector<8x64xf32>
    %cst_140 = arith.constant 0.000000e+00 : f32
    %337 = vector.broadcast %cst_140 : f32 to vector<8x64xf32>
    %338 = arith.maximumf %336, %337 : vector<8x64xf32>
    %c1368 = arith.constant 1368 : index
    %c0_141 = arith.constant 0 : index
    %339 = vector.load %arg2[%c1368, %c0_141] : memref<1480x128xf32, #tpu.memory_space<vmem>>, vector<64x16xf32>
    %cst_142 = arith.constant dense<0.000000e+00> : vector<8x16xf32>
    %340 = tpu.matmul %338, %339, %cst_142 {dimension_numbers = #tpu.dot_dimension_numbers<[1], [0], [0], [1], [0, 0, 1, 1], [], []>} : vector<8x64xf32>, vector<64x16xf32>, vector<8x16xf32> -> vector<8x16xf32>
    %c1432 = arith.constant 1432 : index
    %c0_143 = arith.constant 0 : index
    %341 = vector.load %arg2[%c1432, %c0_143] : memref<1480x128xf32, #tpu.memory_space<vmem>>, vector<1x16xf32>
    %342 = vector.broadcast %341 : vector<1x16xf32> to vector<8x16xf32>
    %343 = arith.addf %340, %342 : vector<8x16xf32>
    %cst_144 = arith.constant 0.000000e+00 : f32
    %344 = vector.broadcast %cst_144 : f32 to vector<8x16xf32>
    %345 = arith.maximumf %343, %344 : vector<8x16xf32>
    %c1440 = arith.constant 1440 : index
    %c0_145 = arith.constant 0 : index
    %346 = vector.load %arg2[%c1440, %c0_145] : memref<1480x128xf32, #tpu.memory_space<vmem>>, vector<16x4xf32>
    %cst_146 = arith.constant dense<0.000000e+00> : vector<8x4xf32>
    %347 = tpu.matmul %345, %346, %cst_146 {dimension_numbers = #tpu.dot_dimension_numbers<[1], [0], [0], [1], [0, 0, 1, 1], [], []>} : vector<8x16xf32>, vector<16x4xf32>, vector<8x4xf32> -> vector<8x4xf32>
    %c1456 = arith.constant 1456 : index
    %c0_147 = arith.constant 0 : index
    %348 = vector.load %arg2[%c1456, %c0_147] : memref<1480x128xf32, #tpu.memory_space<vmem>>, vector<1x4xf32>
    %349 = vector.broadcast %348 : vector<1x4xf32> to vector<8x4xf32>
    %350 = arith.addf %347, %349 : vector<8x4xf32>
    %cst_148 = arith.constant 0.000000e+00 : f32
    %351 = vector.broadcast %cst_148 : f32 to vector<8x4xf32>
    %352 = arith.maximumf %350, %351 : vector<8x4xf32>
    %c1464 = arith.constant 1464 : index
    %c0_149 = arith.constant 0 : index
    %353 = vector.load %arg2[%c1464, %c0_149] : memref<1480x128xf32, #tpu.memory_space<vmem>>, vector<4x1xf32>
    %cst_150 = arith.constant dense<0.000000e+00> : vector<8x1xf32>
    %354 = tpu.matmul %352, %353, %cst_150 {dimension_numbers = #tpu.dot_dimension_numbers<[1], [0], [0], [1], [0, 0, 1, 1], [], []>} : vector<8x4xf32>, vector<4x1xf32>, vector<8x1xf32> -> vector<8x1xf32>
    %c1472 = arith.constant 1472 : index
    %c0_151 = arith.constant 0 : index
    %355 = vector.load %arg2[%c1472, %c0_151] : memref<1480x128xf32, #tpu.memory_space<vmem>>, vector<1x1xf32>
    %356 = vector.broadcast %355 : vector<1x1xf32> to vector<8x1xf32>
    %357 = arith.addf %354, %356 : vector<8x1xf32>
    %c0_152 = arith.constant 0 : index
    %c0_153 = arith.constant 0 : index
    %358 = vector.load %arg4[%c0_152, %c0_153] : memref<8x1xf32, #tpu.memory_space<vmem>>, vector<8x1xf32>
    tpu.vector_store %arg4[%c0_152, %c0_153], %357 {strides = array<i32>} : memref<8x1xf32, #tpu.memory_space<vmem>>, vector<8x1xf32>,
    return
  }
  func.func @transform_0(%arg0: i32) -> (i32, i32, i32) {
    %c0_i32 = arith.constant 0 : i32
    %c0_i32_0 = arith.constant 0 : i32
    %c0_i32_1 = arith.constant 0 : i32
    %c0_i32_2 = arith.constant 0 : i32
    return %c0_i32, %c0_i32_0, %c0_i32_1 : i32, i32, i32
  }
  func.func @transform_1(%arg0: i32) -> (i32, i32) {
    %c0_i32 = arith.constant 0 : i32
    %c0_i32_0 = arith.constant 0 : i32
    %c0_i32_1 = arith.constant 0 : i32
    return %c0_i32, %c0_i32_0 : i32, i32
  }
  func.func @transform_2(%arg0: i32) -> (i32, i32) {
    %c0_i32 = arith.constant 0 : i32
    %c0_i32_0 = arith.constant 0 : i32
    %c0_i32_1 = arith.constant 0 : i32
    return %c0_i32, %c0_i32_0 : i32, i32
  }
  func.func @transform_3(%arg0: i32) -> (i32, i32) {
    %c0_i32 = arith.constant 0 : i32
    %c0_i32_0 = arith.constant 0 : i32
    %c0_i32_1 = arith.constant 0 : i32
    return %c0_i32, %c0_i32_0 : i32, i32
  }
}

</mosaic_0001>

<bundles_post_ra>
// kernel: tpu_custom_call.1
= control target key start
LH: loop header
LB: loop body
LE: loop exit
PB: predicated region body
PF: predicated region fallthrough
CT: control target
= control target key end

     0   :  { %8 = vsyncpa [#allocation3], 0  ;;  %s6079_s0 = inlined_call_operand.hbm [shape: f32[8,8,270], index: 0, kind: input, shape index: {}]   ;;  %s6080_s1 = inlined_call_operand.hbm [shape: f32[1480,128], index: 1, kind: input, shape index: {}]   ;;  %s6081_s2 = inlined_call_operand.hbm [shape: f32[160,256], index: 2, kind: input, shape index: {}]   ;;  %s6082_s3 = inlined_call_operand.vmem [shape: f32[8,1], index: 3, kind: output, shape index: {}]  }
   0x1   :  { %9 = vsyncpa [#allocation5], 0  ;;  %s27_s14 = sshll.u32 %s6080_s1, 4  ;;  %s4911_s15 = smov [#allocation4]   ;;  %s28_s14 = int_to_ptr.hbm [resolvable:$true] %s27_s14 }
   0x2   :  { %s29_s16 = sshll.u32 %s4911_s15, 4  ;;  %s14_s19 = sshll.u32 %s6079_s0, 4  ;;  %s30_s16 = int_to_ptr.vmem [resolvable:$true] %s29_s16  ;;  %s15_s19 = int_to_ptr.hbm [resolvable:$true] %s14_s19 }
   0x3   :  { %s4912_s20 = smov 128   ;;  %s4913_s21 = smov 8  }
   0x4   :  { %35 = dma.hbm_to_vmem [thread:$0]  %s28_s14, 23680, %s30_s16, [#allocation5], %s4912_s20, %s4912_s20, %s4913_s21  }
   0x5   :  { %s4914_s22 = smov [#allocation2]   ;;  %s4915_s24 = smov 384  }
   0x6   :  { %s16_s23 = sshll.u32 %s4914_s22, 4  ;;  %s4916_s25 = smov 24   ;;  %s17_s23 = int_to_ptr.vmem [resolvable:$true] %s16_s23 }
   0x7   :  { %22 = dma.hbm_to_vmem [thread:$0]  %s15_s19, 3072, %s17_s23, [#allocation3], %s4915_s24, %s4915_s24, %s4916_s25  }
   0x8   :  { %s40_s27 = sshll.u32 %s6081_s2, 4  ;;  %s4917_s28 = smov [#allocation6]   ;;  %s41_s27 = int_to_ptr.hbm [resolvable:$true] %s40_s27 }
   0x9   :  { %s42_s29 = sshll.u32 %s4917_s28, 4  ;;  %s4918_s30 = smov 256   ;;  %s43_s29 = int_to_ptr.vmem [resolvable:$true] %s42_s29 }
   0xa   :  { %s4919_s0 = smov 16  }
   0xb   :  { %48 = dma.hbm_to_vmem [thread:$0]  %s41_s27, 5120, %s43_s29, [#allocation5], %s4918_s30, %s4918_s30, %s4919_s0  }
   0xc   :  { %4907 = dma.done.wait [#allocation3], 3072  }
   0xd   :  { %4908 = vsyncadd [#allocation3], 4294964224 }
   0xe   :  { %4909 = dma.done.wait [#allocation5], 28800  }
   0xf   :  { %4910 = vsyncadd [#allocation5], 4294938496  ;;  %v100_v0 = vld [vmem:[#allocation4 + $0x78] sm:$0xff]  ;;  %v99_v1 = vld [vmem:[#allocation4 + $0x70] sm:$0xff]  ;;  %vm146_vm0 = vcmask 1045504   ;;  %vm121_vm1 = vcmask 113664  }
  0x10   :  { %v116_v2 = vld [vmem:[#allocation4 + $0xf8] sm:$0xff]  ;;  %150 = vmatpush.msra.mxu0 %v100_v0  ;;  %v115_v3 = vld [vmem:[#allocation4 + $0xf0] sm:$0xff]  ;;  %v98_v4 = vld [vmem:[#allocation4 + $0x68] sm:$0xff]  ;;  %vm301_vm2 = vcmask 130048   ;;  %vm457_vm3 = vcmask 31744   ;;  %vm684_vm5 = vcmask 64512  }
  0x11   :  { %191 = vmatpush.msra.mxu1 %v116_v2  ;;  %v114_v5 = vld [vmem:[#allocation4 + $0xe8] sm:$0xff]  ;;  %v97_v6 = vld [vmem:[#allocation4 + $0x60] sm:$0xff]  ;;  %v96_v8 = vld [vmem:[#allocation4 + $0x58] sm:$0xff]  ;;  %vm982_vm6 = vcmask 1043456   ;;  %s4922_s2 = smov 32   ;;  %s4923_s4 = smov 64  }
  0x12   :  { %151 = vmatpush.msra.mxu0 %v99_v1  ;;  %v113_v7 = vld [vmem:[#allocation4 + $0xe0] sm:$0xff]  ;;  %v112_v9 = vld [vmem:[#allocation4 + $0xd8] sm:$0xff]  ;;  %v95_v10 = vld [vmem:[#allocation4 + $0x50] sm:$0xff]  ;;  %s4924_s5 = smov 48   ;;  %s4925_s6 = smov 112  }
  0x13   :  { %192 = vmatpush.msra.mxu1 %v115_v3  ;;  %v111_v11 = vld [vmem:[#allocation4 + $0xd0] sm:$0xff]  ;;  %v118_v12 = vld [vmem:[#allocation4 + $0x108] sm:$0x3f]  ;;  %v117_v15 = vld [vmem:[#allocation4 + $0x100] sm:$0xff]  ;;  %s4926_s7 = smov 80   ;;  %s4927_s8 = smov 96  }
  0x14   :  { %152 = vmatpush.msra.mxu0 %v98_v4  ;;  %v94_v13 = vld [vmem:[#allocation4 + $0x48] sm:$0xff]  ;;  %4366 = vmatpush.msk.msra.mxu2 %vm146_vm0, %v118_v12  ;;  %v63_v16 = vld [vmem:[#allocation2 + $0x10] sm:$0xff]  ;;  %v93_v17 = vld [vmem:[#allocation4 + $0x40] sm:$0xff] }
  0x15   :  { %193 = vmatpush.msra.mxu1 %v114_v5  ;;  %v110_v14 = vld [vmem:[#allocation4 + $0xc8] sm:$0xff]  ;;  %v109_v18 = vld [vmem:[#allocation4 + $0xc0] sm:$0xff]  ;;  %v92_v19 = vld [vmem:[#allocation4 + $0x38] sm:$0xff] }
  0x16   :  { %153 = vmatpush.msra.mxu0 %v97_v6  ;;  %247 = vmatpush.msra.mxu2 %v117_v15  ;;  %v108_v20 = vld [vmem:[#allocation4 + $0xb8] sm:$0xff]  ;;  %v91_v21 = vld [vmem:[#allocation4 + $0x30] sm:$0xff]  ;;  %v90_v22 = vld [vmem:[#allocation4 + $0x28] sm:$0xff] }
  0x17   :  { %194 = vmatpush.msra.mxu1 %v113_v7  ;;  %4367 = vmatmul.msk.f32.vlgmr.msra.gmra.mxu2 %vm121_vm1, %v63_v16  ;;  %v107_v23 = vld [vmem:[#allocation4 + $0xb0] sm:$0xff]  ;;  %v106_v24 = vld [vmem:[#allocation4 + $0xa8] sm:$0xff]  ;;  %v89_v26 = vld [vmem:[#allocation4 + $0x20] sm:$0xff] }
  0x18   :  { %154 = vmatpush.msra.mxu0 %v96_v8  ;;  %v66_v25 = vld [vmem:[#allocation2 + $0x28] sm:$0xff]  ;;  %v105_v27 = vld [vmem:[#allocation4 + $0xa0] sm:$0xff]  ;;  %v88_v28 = vld [vmem:[#allocation4 + $0x18] sm:$0xff] }
  0x19   :  { %195 = vmatpush.msra.mxu1 %v112_v9  ;;  %v104_v29 = vld [vmem:[#allocation4 + $0x98] sm:$0xff]  ;;  %v87_v30 = vld [vmem:[#allocation4 + $0x10] sm:$0xff]  ;;  %v86_v32 = vld [vmem:[#allocation4 + $0x8] sm:$0xff] }
  0x1a   :  { %155 = vmatpush.msra.mxu0 %v95_v10  ;;  %v103_v31 = vld [vmem:[#allocation4 + $0x90] sm:$0xff]  ;;  %v102_v33 = vld [vmem:[#allocation4 + $0x88] sm:$0xff]  ;;  %v69_v34 = vld [vmem:[#allocation2 + $0x40] sm:$0xff] }
  0x1b   :  { %196 = vmatpush.msra.mxu1 %v111_v11  ;;  %v85_v35 = vld [vmem:[#allocation4] sm:$0xff]  ;;  %v62_v38 = vld [vmem:[#allocation2 + $0x8] sm:$0xff]  ;;  %v72_v39 = vld [vmem:[#allocation2 + $0x58] sm:$0xff] }
  0x1c   :  { %156 = vmatpush.msra.mxu0 %v94_v13  ;;  %v101_v36 = vld [vmem:[#allocation4 + $0x80] sm:$0xff]  ;;  %v64_v40 = vld [vmem:[#allocation2 + $0x18] sm:$0xff]  ;;  %v75_v42 = vld [vmem:[#allocation2 + $0x70] sm:$0xff] }
  0x1d   :  { %197 = vmatpush.msra.mxu1 %v110_v14  ;;  %v61_v37 = vld [vmem:[#allocation2] sm:$0xff]  ;;  %v67_v43 = vld [vmem:[#allocation2 + $0x30] sm:$0xff]  ;;  %v68_v44 = vld [vmem:[#allocation2 + $0x38] sm:$0xff] }
  0x1e   :  { %157 = vmatpush.msra.mxu0 %v93_v17  ;;  %v65_v41 = vld [vmem:[#allocation2 + $0x20] sm:$0xff]  ;;  %v78_v45 = vld [vmem:[#allocation2 + $0x88] sm:$0xff]  ;;  %v71_v47 = vld [vmem:[#allocation2 + $0x50] sm:$0xff] }
  0x1f   :  { %198 = vmatpush.msra.mxu1 %v109_v18  ;;  %4368 = vmatmul.msk.f32.gmra.mxu2 %vm121_vm1, %v66_v25  ;;  %v70_v46 = vld [vmem:[#allocation2 + $0x48] sm:$0xff]  ;;  %v368_v48 = vld [vmem:[#allocation4 + $0x170] sm:$0xff]  ;;  %v81_v49 = vld [vmem:[#allocation2 + $0xa0] sm:$0xff] }
  0x20   :  { %158 = vmatpush.msra.mxu0 %v92_v19  ;;  %385 = vmatpush.msrb.mxu2 %v368_v48  ;;  %v73_v50 = vld [vmem:[#allocation2 + $0x60] sm:$0xff]  ;;  %v74_v51 = vld [vmem:[#allocation2 + $0x68] sm:$0xff]  ;;  %v84_v52 = vld [vmem:[#allocation2 + $0xb8] sm:$0xff] }
  0x21   :  { %199 = vmatpush.msra.mxu1 %v108_v20  ;;  %v76_v53 = vld [vmem:[#allocation2 + $0x78] sm:$0xff]  ;;  %v77_v54 = vld [vmem:[#allocation2 + $0x80] sm:$0xff]  ;;  %v79_v55 = vld [vmem:[#allocation2 + $0x90] sm:$0xff] }
  0x22   :  { %159 = vmatpush.msra.mxu0 %v91_v21  ;;  %v80_v56 = vld [vmem:[#allocation2 + $0x98] sm:$0xff]  ;;  %v82_v57 = vld [vmem:[#allocation2 + $0xa8] sm:$0xff]  ;;  %v83_v58 = vld [vmem:[#allocation2 + $0xb0] sm:$0xff] }
  0x23   :  { %200 = vmatpush.msra.mxu1 %v107_v23  ;;  %v298_v59 = vld [vmem:[#allocation4 + $0x160] sm:$0xff]  ;;  %v297_v60 = vld [vmem:[#allocation4 + $0x158] sm:$0xff]  ;;  %v367_v61 = vld [vmem:[#allocation4 + $0x168] sm:$0xff] }
  0x24   :  { %160 = vmatpush.msra.mxu0 %v90_v22  ;;  %340 = vmatpush.msra.mxu3 %v298_v59  ;;  %v4966_v63 = vld [vmem:[#allocation4 + $0x110] ss:$0 sm:$0xff]  ;;  %v273_v5 = vld [vmem:[#allocation4 + $0x118] sm:$0xff]  ;;  %v274_v13 = vld [vmem:[#allocation4 + $0x120] sm:$0xff] }
  0x25   :  { %201 = vmatpush.msra.mxu1 %v106_v24  ;;  %386 = vmatpush.msrb.mxu2 %v367_v61  ;;  %v275_v21 = vld [vmem:[#allocation4 + $0x128] sm:$0xff] }
  0x26   :  { %161 = vmatpush.msra.mxu0 %v89_v26  ;;  %341 = vmatpush.msra.mxu3 %v297_v60 }
  0x27   :  { %202 = vmatpush.msra.mxu1 %v105_v27  ;;  %4369 = vmatmul.msk.f32.gmra.mxu2 %vm121_vm1, %v69_v34 }
  0x28   :  { %162 = vmatpush.msra.mxu0 %v88_v28 }
  0x29   :  { %203 = vmatpush.msra.mxu1 %v104_v29  ;;  %v276_v29 = vld [vmem:[#allocation4 + $0x130] sm:$0xff] }
  0x2a   :  { %163 = vmatpush.msra.mxu0 %v87_v30 }
  0x2b   :  { %204 = vmatpush.msra.mxu1 %v103_v31 }
  0x2c   :  { %164 = vmatpush.msra.mxu0 %v86_v32 }
  0x2d   :  { %205 = vmatpush.msra.mxu1 %v102_v33 }
  0x2e   :  { %165 = vmatpush.msra.mxu0 %v85_v35  ;;  %v413_v35 = vld [vmem:[#allocation4 + $0x180] sm:$0xff] }
  0x2f   :  { %206 = vmatpush.msra.mxu1 %v101_v36  ;;  %166 = vmatmul.f32.vlgmr.msra.gmra.mxu0 %v61_v37  ;;  %v412_v36 = vld [vmem:[#allocation4 + $0x178] sm:$0xff] }
  0x30   :  { %207 = vmatmul.f32.vlgmr.msra.gmra.mxu1 %v62_v38  ;;  %4370 = vmatmul.msk.f32.gmra.mxu2 %vm121_vm1, %v72_v39  ;;  %v277_v38 = vld [vmem:[#allocation4 + $0x138] sm:$0xff] }
  0x31   :  { %430 = vmatpush.msrb.mxu3 %v413_v35 }
  0x33   :  { %431 = vmatpush.msrb.mxu3 %v412_v36 }
  0x37   :  { %169 = vmatmul.f32.gmra.mxu0 %v64_v40 }
  0x38   :  { %210 = vmatmul.f32.gmra.mxu1 %v65_v41  ;;  %4371 = vmatmul.msk.f32.gmra.mxu2 %vm121_vm1, %v75_v42 }
  0x3f   :  { %172 = vmatmul.f32.gmra.mxu0 %v67_v43 }
  0x40   :  { %213 = vmatmul.f32.gmra.mxu1 %v68_v44  ;;  %4372 = vmatmul.msk.f32.gmra.mxu2 %vm121_vm1, %v78_v45 }
  0x47   :  { %175 = vmatmul.f32.gmra.mxu0 %v70_v46  ;;  %v278_v46 = vld [vmem:[#allocation4 + $0x140] sm:$0xff] }
  0x48   :  { %216 = vmatmul.f32.gmra.mxu1 %v71_v47  ;;  %4373 = vmatmul.msk.f32.gmra.mxu2 %vm121_vm1, %v81_v49 }
  0x4f   :  { %178 = vmatmul.f32.gmra.mxu0 %v73_v50 }
  0x50   :  { %219 = vmatmul.f32.gmra.mxu1 %v74_v51  ;;  %4374 = vmatmul.msk.f32.gmra.mxu2 %vm121_vm1, %v84_v52 }
  0x57   :  { %181 = vmatmul.f32.gmra.mxu0 %v76_v53 }
  0x58   :  { %222 = vmatmul.f32.gmra.mxu1 %v77_v54  ;;  %v279_v54 = vld [vmem:[#allocation4 + $0x148] sm:$0xff] }
  0x5f   :  { %184 = vmatmul.f32.gmra.mxu0 %v79_v55 }
  0x60   :  { %225 = vmatmul.f32.gmra.mxu1 %v80_v56 }
  0x67   :  { %187 = vmatmul.f32.gmra.mxu0 %v82_v57 }
  0x68   :  { %228 = vmatmul.f32.gmra.mxu1 %v83_v58 }
  0x9a   :  { %v249_v62 = vpop.f32.mrf.mxu2 }
  0xa2   :  { %v252_v0 = vpop.f32.mrf.mxu2 }
  0xaa   :  { %v255_v8 = vpop.f32.mrf.mxu2 }
  0xac   :  { %v167_v1 = vpop.f32.mrf.mxu0 }
  0xad   :  { %v208_v2 = vpop.f32.mrf.mxu1  ;;  %v168_v3 = vadd.f32 %v4966_v63, %v167_v1 }
  0xaf   :  { %v209_v4 = vadd.f32 %v208_v2, %v168_v3  ;;  %v4650_v2 = vld [vmem:[#allocation4 + $0x188] ss:$0 sm:$0xff] }
  0xb1   :  { %v250_v6 = vadd.f32 %v249_v62, %v209_v4  ;;  %v280_v62 = vld [vmem:[#allocation4 + $0x150] sm:$0xff] }
  0xb3   :  { %v4969_v7 = vadd.f32 %v273_v5, %v250_v6  ;;  %v258_v19 = vpop.f32.mrf.mxu2 }
  0xb4   :  { %v170_v9 = vpop.f32.mrf.mxu0 }
  0xb5   :  { %v211_v10 = vpop.f32.mrf.mxu1  ;;  %v171_v11 = vadd.f32 %v4966_v63, %v170_v9  ;;  %4375 = vmatmul.msk.f32.vlgmr.msra.gmra.mxu3 %vm301_vm2, %v4969_v7  ;;  %4383 = vmatmul.msk.f32.vlgmr.msrb.gmra.mxu2 %vm301_vm2, %v4969_v7 }
  0xb7   :  { %v212_v12 = vadd.f32 %v211_v10, %v171_v11 }
  0xb9   :  { %v253_v14 = vadd.f32 %v252_v0, %v212_v12 }
  0xbb   :  { %v4976_v15 = vadd.f32 %v274_v13, %v253_v14  ;;  %v261_v28 = vpop.f32.mrf.mxu2 }
  0xbc   :  { %v173_v16 = vpop.f32.mrf.mxu0 }
  0xbd   :  { %v214_v17 = vpop.f32.mrf.mxu1  ;;  %v174_v18 = vadd.f32 %v4966_v63, %v173_v16  ;;  %4376 = vmatmul.msk.f32.gmra.mxu3 %vm301_vm2, %v4976_v15  ;;  %4384 = vmatmul.msk.f32.gmra.mxu2 %vm301_vm2, %v4976_v15 }
  0xbf   :  { %v215_v20 = vadd.f32 %v214_v17, %v174_v18 }
  0xc1   :  { %v256_v22 = vadd.f32 %v255_v8, %v215_v20 }
  0xc3   :  { %v4983_v23 = vadd.f32 %v275_v21, %v256_v22  ;;  %v264_v40 = vpop.f32.mrf.mxu2 }
  0xc4   :  { %v176_v24 = vpop.f32.mrf.mxu0 }
  0xc5   :  { %v217_v25 = vpop.f32.mrf.mxu1  ;;  %v177_v26 = vadd.f32 %v4966_v63, %v176_v24  ;;  %4377 = vmatmul.msk.f32.gmra.mxu3 %vm301_vm2, %v4983_v23  ;;  %4385 = vmatmul.msk.f32.gmra.mxu2 %vm301_vm2, %v4983_v23 }
  0xc7   :  { %v218_v27 = vadd.f32 %v217_v25, %v177_v26 }
  0xc9   :  { %v259_v30 = vadd.f32 %v258_v19, %v218_v27 }
  0xcb   :  { %v4990_v31 = vadd.f32 %v276_v29, %v259_v30  ;;  %v267_v49 = vpop.f32.mrf.mxu2 }
  0xcc   :  { %v179_v32 = vpop.f32.mrf.mxu0 }
  0xcd   :  { %v220_v33 = vpop.f32.mrf.mxu1  ;;  %v180_v34 = vadd.f32 %v4966_v63, %v179_v32  ;;  %4378 = vmatmul.msk.f32.gmra.mxu3 %vm301_vm2, %v4990_v31  ;;  %4386 = vmatmul.msk.f32.gmra.mxu2 %vm301_vm2, %v4990_v31 }
  0xcf   :  { %v221_v37 = vadd.f32 %v220_v33, %v180_v34 }
  0xd1   :  { %v262_v39 = vadd.f32 %v261_v28, %v221_v37 }
  0xd3   :  { %v4997_v41 = vadd.f32 %v277_v38, %v262_v39  ;;  %v270_v60 = vpop.f32.mrf.mxu2  ;;  %v5055_v39 = vld [vmem:[#allocation4 + $0x198] ss:$0 sm:$0xff] }
  0xd4   :  { %v182_v42 = vpop.f32.mrf.mxu0 }
  0xd5   :  { %v223_v43 = vpop.f32.mrf.mxu1  ;;  %v183_v44 = vadd.f32 %v4966_v63, %v182_v42  ;;  %4379 = vmatmul.msk.f32.gmra.mxu3 %vm301_vm2, %v4997_v41  ;;  %4387 = vmatmul.msk.f32.gmra.mxu2 %vm301_vm2, %v4997_v41 }
  0xd7   :  { %v224_v45 = vadd.f32 %v223_v43, %v183_v44 }
  0xd9   :  { %v265_v47 = vadd.f32 %v264_v40, %v224_v45 }
  0xdb   :  { %v5004_v48 = vadd.f32 %v278_v46, %v265_v47 }
  0xdc   :  { %v185_v50 = vpop.f32.mrf.mxu0 }
  0xdd   :  { %v226_v51 = vpop.f32.mrf.mxu1  ;;  %v186_v52 = vadd.f32 %v4966_v63, %v185_v50  ;;  %4380 = vmatmul.msk.f32.gmra.mxu3 %vm301_vm2, %v5004_v48  ;;  %4388 = vmatmul.msk.f32.gmra.mxu2 %vm301_vm2, %v5004_v48 }
  0xdf   :  { %v227_v53 = vadd.f32 %v226_v51, %v186_v52 }
  0xe1   :  { %v268_v55 = vadd.f32 %v267_v49, %v227_v53 }
  0xe3   :  { %v5011_v56 = vadd.f32 %v279_v54, %v268_v55 }
  0xe4   :  { %v188_v57 = vpop.f32.mrf.mxu0 }
  0xe5   :  { %v229_v58 = vpop.f32.mrf.mxu1  ;;  %v189_v59 = vadd.f32 %v4966_v63, %v188_v57  ;;  %4381 = vmatmul.msk.f32.gmra.mxu3 %vm301_vm2, %v5011_v56  ;;  %4389 = vmatmul.msk.f32.gmra.mxu2 %vm301_vm2, %v5011_v56  ;;  %v4651_v63 = vld [vmem:[#allocation4 + $0x190] ss:$0 sm:$0xff]  ;;  %v289_v57 = vlaneseq }
  0xe7   :  { %v230_v61 = vadd.f32 %v229_v58, %v189_v59  ;;  %v5068_v58 = vshrl.u32 %v289_v57, 7  ;;  %v5070_v59 = vand.u32 127, %v289_v57 }
  0xe9   :  { %v271_v0 = vadd.f32 %v270_v60, %v230_v61  ;;  %vm5074_vm4 = vcmp.le.s32.totalorder %v5070_v59, %v5068_v58 }
  0xeb   :  { %v5018_v1 = vadd.f32 %v280_v62, %v271_v0 }
  0xed   :  { %4382 = vmatmul.msk.f32.gmra.mxu3 %vm301_vm2, %v5018_v1  ;;  %4390 = vmatmul.msk.f32.gmra.mxu2 %vm301_vm2, %v5018_v1 }
  0xf5   :  { %4391 = vmatmul.msk.f32.vlgmr.msrb.gmra.mxu3 %vm301_vm2, %v4969_v7 }
  0xfd   :  { %4392 = vmatmul.msk.f32.gmra.mxu3 %vm301_vm2, %v4976_v15 }
 0x105   :  { %4393 = vmatmul.msk.f32.gmra.mxu3 %vm301_vm2, %v4983_v23 }
 0x10d   :  { %4394 = vmatmul.msk.f32.gmra.mxu3 %vm301_vm2, %v4990_v31 }
 0x115   :  { %4395 = vmatmul.msk.f32.gmra.mxu3 %vm301_vm2, %v4997_v41 }
 0x11d   :  { %4396 = vmatmul.msk.f32.gmra.mxu3 %vm301_vm2, %v5004_v48 }
 0x125   :  { %4397 = vmatmul.msk.f32.gmra.mxu3 %vm301_vm2, %v5011_v56 }
 0x12d   :  { %4398 = vmatmul.msk.f32.gmra.mxu3 %vm301_vm2, %v5018_v1 }
 0x138   :  { %v343_v3 = vpop.f32.mrf.mxu3  ;;  %v388_v4 = vpop.f32.mrf.mxu2 }
 0x139   :  { %v389_v5 = vadd.f32 %v4651_v63, %v388_v4  ;;  %v344_v6 = vadd.f32 %v4650_v2, %v343_v3 }
 0x13b   :  { %4399 = vmatpush.xpose.msk.msrb.mxu0 %vm457_vm3, %v389_v5 }
 0x13e   :  { %4400 = vmatmul.msk.f32.vlgmr.msrb.gmra.mxu0 %vm457_vm3, %v344_v6 }
 0x140   :  { %v346_v8 = vpop.f32.mrf.mxu3  ;;  %v391_v9 = vpop.f32.mrf.mxu2 }
 0x141   :  { %v392_v10 = vadd.f32 %v4651_v63, %v391_v9  ;;  %v347_v11 = vadd.f32 %v4650_v2, %v346_v8 }
 0x143   :  { %4401 = vmatpush.xpose.msk.msrb.mxu1 %vm457_vm3, %v392_v10 }
 0x146   :  { %4402 = vmatmul.msk.f32.vlgmr.msrb.gmra.mxu1 %vm457_vm3, %v347_v11 }
 0x148   :  { %v349_v12 = vpop.f32.mrf.mxu3  ;;  %v394_v13 = vpop.f32.mrf.mxu2 }
 0x149   :  { %v395_v14 = vadd.f32 %v4651_v63, %v394_v13  ;;  %v350_v16 = vadd.f32 %v4650_v2, %v349_v12 }
 0x14b   :  { %4403 = vmatpush.xpose.msk.msra.mxu0 %vm457_vm3, %v395_v14 }
 0x14e   :  { %4404 = vmatmul.msk.f32.vlgmr.msra.gmra.mxu0 %vm457_vm3, %v350_v16 }
 0x150   :  { %v352_v17 = vpop.f32.mrf.mxu3  ;;  %v397_v18 = vpop.f32.mrf.mxu2 }
 0x151   :  { %v398_v19 = vadd.f32 %v4651_v63, %v397_v18  ;;  %v353_v20 = vadd.f32 %v4650_v2, %v352_v17 }
 0x153   :  { %4405 = vmatpush.xpose.msk.msra.mxu1 %vm457_vm3, %v398_v19 }
 0x156   :  { %4406 = vmatmul.msk.f32.vlgmr.msra.gmra.mxu1 %vm457_vm3, %v353_v20 }
 0x158   :  { %v355_v21 = vpop.f32.mrf.mxu3  ;;  %v400_v22 = vpop.f32.mrf.mxu2 }
 0x159   :  { %v401_v24 = vadd.f32 %v4651_v63, %v400_v22  ;;  %v356_v25 = vadd.f32 %v4650_v2, %v355_v21 }
 0x15b   :  { %4407 = vmatpush.xpose.msk.msrb.mxu0 %vm457_vm3, %v401_v24 }
 0x15e   :  { %4408 = vmatmul.msk.f32.vlgmr.msrb.gmra.mxu0 %vm457_vm3, %v356_v25 }
 0x160   :  { %v358_v26 = vpop.f32.mrf.mxu3  ;;  %v403_v27 = vpop.f32.mrf.mxu2 }
 0x161   :  { %v404_v28 = vadd.f32 %v4651_v63, %v403_v27  ;;  %v359_v29 = vadd.f32 %v4650_v2, %v358_v26 }
 0x163   :  { %4409 = vmatpush.xpose.msk.msrb.mxu1 %vm457_vm3, %v404_v28 }
 0x166   :  { %4410 = vmatmul.msk.f32.vlgmr.msrb.gmra.mxu1 %vm457_vm3, %v359_v29 }
 0x168   :  { %v361_v30 = vpop.f32.mrf.mxu3  ;;  %v406_v32 = vpop.f32.mrf.mxu2 }
 0x169   :  { %v407_v33 = vadd.f32 %v4651_v63, %v406_v32  ;;  %v362_v34 = vadd.f32 %v4650_v2, %v361_v30 }
 0x16b   :  { %4411 = vmatpush.xpose.msk.msra.mxu0 %vm457_vm3, %v407_v33 }
 0x16e   :  { %4412 = vmatmul.msk.f32.vlgmr.msra.gmra.mxu0 %vm457_vm3, %v362_v34 }
 0x170   :  { %v364_v35 = vpop.f32.mrf.mxu3  ;;  %v409_v36 = vpop.f32.mrf.mxu2 }
 0x171   :  { %v410_v37 = vadd.f32 %v4651_v63, %v409_v36  ;;  %v365_v38 = vadd.f32 %v4650_v2, %v364_v35 }
 0x173   :  { %4413 = vmatpush.xpose.msk.msra.mxu1 %vm457_vm3, %v410_v37 }
 0x176   :  { %4414 = vmatmul.msk.f32.vlgmr.msra.gmra.mxu1 %vm457_vm3, %v365_v38 }
 0x178   :  { %v433_v40 = vpop.f32.mrf.mxu3 }
 0x179   :  { %v434_v42 = vadd.f32 %v5055_v39, %v433_v40 }
 0x17b   :  { %791 = vmatpush.msrb.mxu0 %v434_v42 }
 0x180   :  { %v436_v43 = vpop.f32.mrf.mxu3 }
 0x181   :  { %v437_v44 = vadd.f32 %v5055_v39, %v436_v43 }
 0x183   :  { %814 = vmatpush.msrb.mxu1 %v437_v44 }
 0x188   :  { %v439_v45 = vpop.f32.mrf.mxu3 }
 0x189   :  { %v440_v46 = vadd.f32 %v5055_v39, %v439_v45 }
 0x18b   :  { %837 = vmatpush.msra.mxu0 %v440_v46 }
 0x190   :  { %v5061_v47 = vpop.f32.mrf.mxu3 }
 0x198   :  { %v5063_v49 = vpop.f32.mrf.mxu3 }
 0x1a0   :  { %v448_v50 = vpop.f32.mrf.mxu3 }
 0x1a1   :  { %v449_v51 = vadd.f32 %v5055_v39, %v448_v50 }
 0x1a3   :  { %906 = vmatpush.msra.mxu1 %v449_v51 }
 0x1a8   :  { %v451_v52 = vpop.f32.mrf.mxu3 }
 0x1a9   :  { %v452_v53 = vadd.f32 %v5055_v39, %v451_v52 }
 0x1ab   :  { %929 = vmatpush.msra.mxu2 %v452_v53 }
 0x1b0   :  { %v454_v54 = vpop.f32.mrf.mxu3 }
 0x1b1   :  { %v455_v55 = vadd.f32 %v5055_v39, %v454_v54 }
 0x1b3   :  { %952 = vmatpush.msra.mxu3 %v455_v55 }
 0x1bb   :  { %v481_v60 = vpop.f32.mrf.mxu0 }
 0x1bc   :  { %v666_v62 = vmul.f32 0.5, %v481_v60 }
 0x1be   :  { %v676_v0 = vsel %vm5074_vm4, %v666_v62, -1e+30 }
 0x1bf   :  { %v685_v63 = vsel %vm684_vm5, %v676_v0, -inf }
 0x1c0   :  { %686 = vmax.xlane.f32.xlu0 %v685_v63 }
 0x1c3   :  { %v507_v2 = vpop.f32.mrf.mxu1 }
 0x1c4   :  { %v667_v3 = vmul.f32 0.5, %v507_v2 }
 0x1c6   :  { %v677_v4 = vsel %vm5074_vm4, %v667_v3, -1e+30 }
 0x1c7   :  { %v688_v5 = vsel %vm684_vm5, %v677_v4, -inf }
 0x1c8   :  { %689 = vmax.xlane.f32.xlu0 %v688_v5 }
 0x1cb   :  { %v533_v6 = vpop.f32.mrf.mxu0 }
 0x1cc   :  { %v668_v26 = vmul.f32 0.5, %v533_v6 }
 0x1ce   :  { %v678_v28 = vsel %vm5074_vm4, %v668_v26, -1e+30 }
 0x1cf   :  { %v691_v30 = vsel %vm684_vm5, %v678_v28, -inf }
 0x1d3   :  { %v559_v8 = vpop.f32.mrf.mxu1 }
 0x1d4   :  { %v669_v18 = vmul.f32 0.5, %v559_v8 }
 0x1d6   :  { %v679_v21 = vsel %vm5074_vm4, %v669_v18, -1e+30 }
 0x1d7   :  { %v694_v24 = vsel %vm684_vm5, %v679_v21, -inf }
 0x1db   :  { %v585_v9 = vpop.f32.mrf.mxu0 }
 0x1dc   :  { %v670_v10 = vmul.f32 0.5, %v585_v9 }
 0x1de   :  { %v5086_v11 = vsel %vm5074_vm4, %v670_v10, -1e+30 }
 0x1df   :  { %v697_v12 = vsel %vm684_vm5, %v5086_v11, -inf }
 0x1e0   :  { %698 = vmax.xlane.f32.xlu0 %v697_v12 }
 0x1e3   :  { %v611_v13 = vpop.f32.mrf.mxu1 }
 0x1e4   :  { %v671_v14 = vmul.f32 0.5, %v611_v13 }
 0x1e6   :  { %v681_v16 = vsel %vm5074_vm4, %v671_v14, -1e+30 }
 0x1e7   :  { %v700_v17 = vsel %vm684_vm5, %v681_v16, -inf }
 0x1e8   :  { %701 = vmax.xlane.f32.xlu2 %v700_v17 }
 0x1eb   :  { %v637_v19 = vpop.f32.mrf.mxu0 }
 0x1ec   :  { %v672_v20 = vmul.f32 0.5, %v637_v19 }
 0x1ee   :  { %v682_v22 = vsel %vm5074_vm4, %v672_v20, -1e+30 }
 0x1ef   :  { %v703_v25 = vsel %vm684_vm5, %v682_v22, -inf }
 0x1f0   :  { %695 = vmax.xlane.f32.xlu2 %v694_v24  ;;  %704 = vmax.xlane.f32.xlu1 %v703_v25 }
 0x1f3   :  { %v663_v27 = vpop.f32.mrf.mxu1 }
 0x1f4   :  { %v673_v29 = vmul.f32 0.5, %v663_v27  ;;  %v443_v27 = vadd.f32 %v5055_v39, %v5061_v47  ;;  %v1125_v47 = vld [vmem:[#allocation4 + $0x1c8] sm:$0xff] }
 0x1f6   :  { %v683_v32 = vsel %vm5074_vm4, %v673_v29, -1e+30 }
 0x1f7   :  { %v706_v33 = vsel %vm684_vm5, %v683_v32, -inf }
 0x1f8   :  { %692 = vmax.xlane.f32.xlu1 %v691_v30  ;;  %v1036_v30 = vld [vmem:[#allocation4 + $0x1b0] sm:$0xff] }
 0x200   :  { %707 = vmax.xlane.f32.xlu1 %v706_v33  ;;  %v1081_v33 = vld [vmem:[#allocation4 + $0x1c0] sm:$0xff] }
 0x201   :  { %1098 = vmatpush.msrb.mxu2 %v1081_v33 }
 0x233   :  { %v687_v34 = vpop.xlane.xlu0 %686 }
 0x234   :  { %v709_v35 = vsub.f32 %v676_v0, %v687_v34  ;;  %v1080_v34 = vld [vmem:[#allocation4 + $0x1b8] sm:$0xff] }
 0x235   :  { %1099 = vmatpush.msrb.mxu2 %v1080_v34 }
 0x236   :  { %v717_v36 = vmul.f32 1.442695, %v709_v35 }
 0x238   :  { %4673 = vpow2.f32 %v717_v36  ;;  %v1126_v36 = vld [vmem:[#allocation4 + $0x1d0] sm:$0xff] }
 0x239   :  { %1143 = vmatpush.msrb.mxu3 %v1126_v36 }
 0x23b   :  { %v690_v37 = vpop.xlane.xlu0 %689  ;;  %1144 = vmatpush.msrb.mxu3 %v1125_v47 }
 0x23c   :  { %v710_v38 = vsub.f32 %v677_v4, %v690_v37 }
 0x23e   :  { %v4674_v40 = vpop.eup %4673  ;;  %v719_v42 = vmul.f32 1.442695, %v710_v38 }
 0x23f   :  { %v733_v43 = vsel %vm684_vm5, %v4674_v40, 0.0 }
 0x240   :  { %4675 = vpow2.f32 %v719_v42  ;;  %734 = vadd.xlane.f32.xlu2 %v733_v43 }
 0x246   :  { %v4676_v44 = vpop.eup %4675 }
 0x247   :  { %v736_v45 = vsel %vm684_vm5, %v4676_v44, 0.0 }
 0x248   :  { %737 = vadd.xlane.f32.xlu0 %v736_v45 }
 0x253   :  { %v699_v0 = vpop.xlane.xlu0 %698 }
 0x254   :  { %v713_v4 = vsub.f32 %v5086_v11, %v699_v0 }
 0x256   :  { %v725_v9 = vmul.f32 1.442695, %v713_v4 }
 0x25b   :  { %v702_v46 = vpop.xlane.xlu2 %701 }
 0x25c   :  { %v714_v50 = vsub.f32 %v681_v16, %v702_v46 }
 0x25e   :  { %v727_v51 = vmul.f32 1.442695, %v714_v50 }
 0x260   :  { %4677 = vpow2.f32 %v727_v51 }
 0x263   :  { %v705_v52 = vpop.xlane.xlu1 %704  ;;  %v696_v53 = vpop.xlane.xlu2 %695 }
 0x264   :  { %v715_v54 = vsub.f32 %v682_v22, %v705_v52  ;;  %v712_v60 = vsub.f32 %v679_v21, %v696_v53  ;;  %v446_v52 = vadd.f32 %v5055_v39, %v5063_v49 }
 0x266   :  { %v4678_v55 = vpop.eup %4677  ;;  %v729_v57 = vmul.f32 1.442695, %v715_v54  ;;  %v723_v63 = vmul.f32 1.442695, %v712_v60 }
 0x267   :  { %v748_v62 = vsel %vm684_vm5, %v4678_v55, 0.0 }
 0x268   :  { %749 = vadd.xlane.f32.xlu0 %v748_v62  ;;  %4679 = vpow2.f32 %v729_v57  ;;  %v957_v62 = vld [vmem:[#allocation4 + $0x1a0] sm:$0xf] }
 0x269   :  { %4681 = vpow2.f32 %v723_v63 }
 0x26b   :  { %v693_v2 = vpop.xlane.xlu1 %692 }
 0x26c   :  { %v711_v3 = vsub.f32 %v678_v28, %v693_v2 }
 0x26e   :  { %v721_v5 = vmul.f32 1.442695, %v711_v3  ;;  %v4680_v6 = vpop.eup %4679 }
 0x26f   :  { %v751_v8 = vsel %vm684_vm5, %v4680_v6, 0.0  ;;  %v5110_v13 = vpop.eup %4681 }
 0x270   :  { %4683 = vpow2.f32 %v721_v5  ;;  %752 = vadd.xlane.f32.xlu1 %v751_v8  ;;  %v742_v11 = vsel %vm684_vm5, %v5110_v13, 0.0  ;;  %v5186_v8 = vld [vmem:[#allocation4 + $0x1e0] ss:$0 sm:$0xff] }
 0x271   :  { %4685 = vpow2.f32 %v725_v9 }
 0x273   :  { %v708_v10 = vpop.xlane.xlu1 %707 }
 0x274   :  { %v716_v12 = vsub.f32 %v683_v32, %v708_v10  ;;  %v1035_v32 = vld [vmem:[#allocation4 + $0x1a8] sm:$0xff] }
 0x276   :  { %v4684_v14 = vpop.eup %4683  ;;  %v731_v16 = vmul.f32 1.442695, %v716_v12 }
 0x277   :  { %v739_v17 = vsel %vm684_vm5, %v4684_v14, 0.0  ;;  %v5115_v18 = vpop.eup %4685 }
 0x278   :  { %4687 = vpow2.f32 %v731_v16  ;;  %740 = vadd.xlane.f32.xlu2 %v739_v17  ;;  %743 = vadd.xlane.f32.xlu1 %v742_v11  ;;  %v745_v20 = vsel %vm684_vm5, %v5115_v18, 0.0 }
 0x27e   :  { %v4688_v19 = vpop.eup %4687 }
 0x27f   :  { %v754_v21 = vsel %vm684_vm5, %v4688_v19, 0.0 }
 0x280   :  { %746 = vadd.xlane.f32.xlu2 %v745_v20  ;;  %755 = vadd.xlane.f32.xlu0 %v754_v21 }
 0x2b3   :  { %v735_v22 = vpop.xlane.xlu2 %734 }
 0x2b4   :  { %4689 = vrcp.f32 %v735_v22 }
 0x2ba   :  { %v4690_v24 = vpop.eup %4689 }
 0x2bb   :  { %v765_v25 = vmul.f32 %v4690_v24, %v4674_v40  ;;  %v738_v26 = vpop.xlane.xlu0 %737 }
 0x2bc   :  { %4691 = vrcp.f32 %v738_v26 }
 0x2bd   :  { %4415 = vmatmul.msk.f32.vlgmr.msrb.gmra.mxu0 %vm684_vm5, %v765_v25 }
 0x2be   :  { %860 = vmatpush.msrb.mxu0 %v443_v27 }
 0x2c2   :  { %v4692_v28 = vpop.eup %4691 }
 0x2c3   :  { %v766_v29 = vmul.f32 %v4692_v28, %v4676_v44 }
 0x2c5   :  { %4416 = vmatmul.msk.f32.vlgmr.msrb.gmra.mxu1 %vm684_vm5, %v766_v29 }
 0x2c6   :  { %1053 = vmatpush.msrb.mxu1 %v1036_v30 }
 0x2c8   :  { %1054 = vmatpush.msrb.mxu1 %v1035_v32 }
 0x2db   :  { %v750_v35 = vpop.xlane.xlu0 %749 }
 0x2dc   :  { %4693 = vrcp.f32 %v750_v35  ;;  %v4655_v35 = vld [vmem:[#allocation4 + $0x1e8] ss:$0 sm:$0xff] }
 0x2e2   :  { %v4694_v37 = vpop.eup %4693 }
 0x2e3   :  { %v770_v38 = vmul.f32 %v4694_v37, %v4678_v55  ;;  %v753_v40 = vpop.xlane.xlu1 %752 }
 0x2e4   :  { %4695 = vrcp.f32 %v753_v40 }
 0x2e5   :  { %4420 = vmatmul.msk.f32.vlgmr.msra.gmra.mxu1 %vm684_vm5, %v770_v38 }
 0x2ea   :  { %v4696_v42 = vpop.eup %4695 }
 0x2eb   :  { %v741_v43 = vpop.xlane.xlu2 %740  ;;  %v771_v44 = vmul.f32 %v4696_v42, %v4680_v6  ;;  %v744_v45 = vpop.xlane.xlu1 %743 }
 0x2ec   :  { %4697 = vrcp.f32 %v741_v43 }
 0x2ed   :  { %4432 = vmatmul.msk.f32.vlgmr.msrb.gmra.mxu1 %vm301_vm2, %v4969_v7  ;;  %4421 = vmatmul.msk.f32.vlgmr.msra.gmra.mxu2 %vm684_vm5, %v771_v44  ;;  %4699 = vrcp.f32 %v744_v45 }
 0x2f2   :  { %v4698_v46 = vpop.eup %4697 }
 0x2f3   :  { %v767_v50 = vmul.f32 %v4698_v46, %v4684_v14  ;;  %v756_v51 = vpop.xlane.xlu0 %755  ;;  %v747_v53 = vpop.xlane.xlu2 %746 }
 0x2f4   :  { %4701 = vrcp.f32 %v756_v51  ;;  %v4700_v54 = vpop.eup %4699 }
 0x2f5   :  { %4417 = vmatmul.msk.f32.vlgmr.msra.gmra.mxu0 %vm684_vm5, %v767_v50  ;;  %4433 = vmatmul.msk.f32.gmra.mxu1 %vm301_vm2, %v4976_v15  ;;  %4703 = vrcp.f32 %v747_v53  ;;  %v768_v57 = vmul.f32 %v4700_v54, %v5110_v13 }
 0x2f6   :  { %883 = vmatpush.msra.mxu0 %v446_v52  ;;  %4440 = vmatmul.msk.f32.vlgmr.msrb.gmra.mxu2 %vm301_vm2, %v4969_v7 }
 0x2fa   :  { %v4702_v55 = vpop.eup %4701 }
 0x2fb   :  { %v772_v60 = vmul.f32 %v4702_v55, %v4688_v19  ;;  %v4704_v39 = vpop.eup %4703 }
 0x2fc   :  { %v769_v49 = vmul.f32 %v4704_v39, %v5115_v18  ;;  %v4653_v18 = vld [vmem:[#allocation4 + $0x1d8] ss:$0 sm:$0xff] }
 0x2fd   :  { %4418 = vmatmul.msk.f32.vlgmr.msrb.gmra.mxu0 %vm684_vm5, %v768_v57  ;;  %4434 = vmatmul.msk.f32.gmra.mxu1 %vm301_vm2, %v4983_v23 }
 0x2fe   :  { %4422 = vmatmul.msk.f32.vlgmr.msra.gmra.mxu3 %vm684_vm5, %v772_v60  ;;  %4441 = vmatmul.msk.f32.gmra.mxu2 %vm301_vm2, %v4976_v15 }
 0x2ff   :  { %4423 = vmatpush.msk.msrb.mxu0 %vm982_vm6, %v957_v62 }
 0x305   :  { %4419 = vmatmul.msk.f32.vlgmr.msra.gmra.mxu0 %vm684_vm5, %v769_v49  ;;  %4435 = vmatmul.msk.f32.gmra.mxu1 %vm301_vm2, %v4990_v31 }
 0x306   :  { %4442 = vmatmul.msk.f32.gmra.mxu2 %vm301_vm2, %v4983_v23  ;;  %4448 = vmatmul.msk.f32.vlgmr.msrb.gmra.mxu3 %vm301_vm2, %v4969_v7 }
 0x30d   :  { %4436 = vmatmul.msk.f32.gmra.mxu1 %vm301_vm2, %v4997_v41 }
 0x30e   :  { %4443 = vmatmul.msk.f32.gmra.mxu2 %vm301_vm2, %v4990_v31  ;;  %4449 = vmatmul.msk.f32.gmra.mxu3 %vm301_vm2, %v4976_v15 }
 0x315   :  { %4437 = vmatmul.msk.f32.gmra.mxu1 %vm301_vm2, %v5004_v48 }
 0x316   :  { %4444 = vmatmul.msk.f32.gmra.mxu2 %vm301_vm2, %v4997_v41  ;;  %4450 = vmatmul.msk.f32.gmra.mxu3 %vm301_vm2, %v4983_v23 }
 0x31d   :  { %4438 = vmatmul.msk.f32.gmra.mxu1 %vm301_vm2, %v5011_v56 }
 0x31e   :  { %4445 = vmatmul.msk.f32.gmra.mxu2 %vm301_vm2, %v5004_v48  ;;  %4451 = vmatmul.msk.f32.gmra.mxu3 %vm301_vm2, %v4990_v31 }
 0x325   :  { %4439 = vmatmul.msk.f32.gmra.mxu1 %vm301_vm2, %v5018_v1 }
 0x326   :  { %4446 = vmatmul.msk.f32.gmra.mxu2 %vm301_vm2, %v5011_v56  ;;  %4452 = vmatmul.msk.f32.gmra.mxu3 %vm301_vm2, %v4997_v41 }
 0x32e   :  { %4447 = vmatmul.msk.f32.gmra.mxu2 %vm301_vm2, %v5018_v1  ;;  %4453 = vmatmul.msk.f32.gmra.mxu3 %vm301_vm2, %v5004_v48 }
 0x336   :  { %4454 = vmatmul.msk.f32.gmra.mxu3 %vm301_vm2, %v5011_v56 }
 0x33a   :  { %v793_v0 = vpop.f32.mrf.mxu0 }
 0x33b   :  { %4424 = vmatmul.msk.f32.vlgmr.msrb.gmra.mxu0 %vm457_vm3, %v793_v0 }
 0x33e   :  { %4455 = vmatmul.msk.f32.gmra.mxu3 %vm301_vm2, %v5018_v1 }
 0x342   :  { %v816_v63 = vpop.f32.mrf.mxu1 }
 0x343   :  { %4425 = vmatmul.msk.f32.gmra.mxu0 %vm457_vm3, %v816_v63 }
 0x362   :  { %v908_v2 = vpop.f32.mrf.mxu1 }
 0x36a   :  { %v1056_v3 = vpop.f32.mrf.mxu1 }
 0x36b   :  { %v1057_v47 = vadd.f32 %v4653_v18, %v1056_v3 }
 0x370   :  { %v931_v4 = vpop.f32.mrf.mxu2 }
 0x372   :  { %v839_v5 = vpop.f32.mrf.mxu0  ;;  %v1059_v6 = vpop.f32.mrf.mxu1 }
 0x373   :  { %4426 = vmatmul.msk.f32.gmra.mxu0 %vm457_vm3, %v839_v5  ;;  %v1060_v19 = vadd.f32 %v4653_v18, %v1059_v6 }
 0x379   :  { %v1101_v9 = vpop.f32.mrf.mxu2 }
 0x37a   :  { %v1102_v10 = vadd.f32 %v5186_v8, %v1101_v9  ;;  %v862_v12 = vpop.f32.mrf.mxu0  ;;  %v1062_v13 = vpop.f32.mrf.mxu1 }
 0x37b   :  { %4427 = vmatmul.msk.f32.gmra.mxu0 %vm457_vm3, %v862_v12  ;;  %v1063_v25 = vadd.f32 %v4653_v18, %v1062_v13 }
 0x37c   :  { %4456 = vmatpush.xpose.msk.msra.mxu0 %vm457_vm3, %v1102_v10 }
 0x381   :  { %v954_v14 = vpop.f32.mrf.mxu3  ;;  %v1104_v16 = vpop.f32.mrf.mxu2 }
 0x382   :  { %v1105_v17 = vadd.f32 %v5186_v8, %v1104_v16  ;;  %v885_v11 = vpop.f32.mrf.mxu0  ;;  %v1065_v22 = vpop.f32.mrf.mxu1 }
 0x383   :  { %4428 = vmatmul.msk.f32.gmra.mxu0 %vm457_vm3, %v885_v11  ;;  %v1066_v30 = vadd.f32 %v4653_v18, %v1065_v22 }
 0x384   :  { %4458 = vmatpush.xpose.msk.msra.mxu1 %vm457_vm3, %v1105_v17 }
 0x387   :  { %4459 = vmatmul.msk.f32.vlgmr.msra.gmra.mxu1 %vm457_vm3, %v1060_v19 }
 0x389   :  { %v1107_v20 = vpop.f32.mrf.mxu2  ;;  %v1146_v21 = vpop.f32.mrf.mxu3 }
 0x38a   :  { %v1108_v24 = vadd.f32 %v5186_v8, %v1107_v20  ;;  %v1068_v29 = vpop.f32.mrf.mxu1  ;;  %v1147_v40 = vadd.f32 %v4655_v35, %v1146_v21 }
 0x38b   :  { %4429 = vmatmul.msk.f32.gmra.mxu0 %vm457_vm3, %v908_v2  ;;  %v1069_v46 = vadd.f32 %v4653_v18, %v1068_v29 }
 0x38c   :  { %4460 = vmatpush.xpose.msk.msra.mxu2 %vm457_vm3, %v1108_v24 }
 0x38f   :  { %4461 = vmatmul.msk.f32.vlgmr.msra.gmra.mxu2 %vm457_vm3, %v1063_v25 }
 0x391   :  { %v1110_v26 = vpop.f32.mrf.mxu2  ;;  %v1149_v27 = vpop.f32.mrf.mxu3 }
 0x392   :  { %v1111_v28 = vadd.f32 %v5186_v8, %v1110_v26  ;;  %v1071_v36 = vpop.f32.mrf.mxu1  ;;  %v1150_v43 = vadd.f32 %v4655_v35, %v1149_v27 }
 0x393   :  { %4430 = vmatmul.msk.f32.gmra.mxu0 %vm457_vm3, %v931_v4  ;;  %v1072_v44 = vadd.f32 %v4653_v18, %v1071_v36 }
 0x394   :  { %4462 = vmatpush.xpose.msk.msra.mxu3 %vm457_vm3, %v1111_v28 }
 0x397   :  { %4463 = vmatmul.msk.f32.vlgmr.msra.gmra.mxu3 %vm457_vm3, %v1066_v30 }
 0x399   :  { %v1113_v32 = vpop.f32.mrf.mxu2  ;;  %v1152_v33 = vpop.f32.mrf.mxu3 }
 0x39a   :  { %v1114_v34 = vadd.f32 %v5186_v8, %v1113_v32  ;;  %v1074_v45 = vpop.f32.mrf.mxu1  ;;  %v1153_v54 = vadd.f32 %v4655_v35, %v1152_v33 }
 0x39b   :  { %4431 = vmatmul.msk.f32.gmra.mxu0 %vm457_vm3, %v954_v14  ;;  %v1075_v55 = vadd.f32 %v4653_v18, %v1074_v45 }
 0x39c   :  { %4464 = vmatpush.xpose.msk.msrb.mxu0 %vm457_vm3, %v1114_v34 }
 0x3a1   :  { %v1116_v37 = vpop.f32.mrf.mxu2  ;;  %v1155_v38 = vpop.f32.mrf.mxu3 }
 0x3a2   :  { %v1117_v42 = vadd.f32 %v5186_v8, %v1116_v37  ;;  %v1077_v39 = vpop.f32.mrf.mxu1  ;;  %v1156_v0 = vadd.f32 %v4655_v35, %v1155_v38 }
 0x3a3   :  { %4457 = vmatmul.msk.f32.vlgmr.msra.gmra.mxu0 %vm457_vm3, %v1057_v47  ;;  %v1078_v63 = vadd.f32 %v4653_v18, %v1077_v39 }
 0x3a4   :  { %4466 = vmatpush.xpose.msk.msrb.mxu1 %vm457_vm3, %v1117_v42  ;;  %1500 = vmatpush.msra.mxu0 %v1147_v40 }
 0x3a7   :  { %4467 = vmatmul.msk.f32.vlgmr.msrb.gmra.mxu1 %vm457_vm3, %v1072_v44 }
 0x3a8   :  { %1523 = vmatpush.msra.mxu1 %v1150_v43 }
 0x3a9   :  { %v1119_v50 = vpop.f32.mrf.mxu2  ;;  %v1158_v51 = vpop.f32.mrf.mxu3 }
 0x3aa   :  { %v1120_v52 = vadd.f32 %v5186_v8, %v1119_v50  ;;  %v1159_v53 = vadd.f32 %v4655_v35, %v1158_v51 }
 0x3ab   :  { %4465 = vmatmul.msk.f32.vlgmr.msrb.gmra.mxu0 %vm457_vm3, %v1069_v46 }
 0x3ac   :  { %4468 = vmatpush.xpose.msk.msrb.mxu2 %vm457_vm3, %v1120_v52  ;;  %1592 = vmatpush.msrb.mxu0 %v1159_v53 }
 0x3af   :  { %4469 = vmatmul.msk.f32.vlgmr.msrb.gmra.mxu2 %vm457_vm3, %v1075_v55 }
 0x3b0   :  { %1546 = vmatpush.msra.mxu2 %v1153_v54 }
 0x3b1   :  { %v1122_v57 = vpop.f32.mrf.mxu2  ;;  %v1161_v60 = vpop.f32.mrf.mxu3 }
 0x3b2   :  { %v1123_v49 = vadd.f32 %v5186_v8, %v1122_v57  ;;  %v1162_v62 = vadd.f32 %v4655_v35, %v1161_v60 }
 0x3b4   :  { %4470 = vmatpush.xpose.msk.msrb.mxu3 %vm457_vm3, %v1123_v49  ;;  %1615 = vmatpush.msrb.mxu1 %v1162_v62 }
 0x3b7   :  { %4471 = vmatmul.msk.f32.vlgmr.msrb.gmra.mxu3 %vm457_vm3, %v1078_v63 }
 0x3b8   :  { %1569 = vmatpush.msra.mxu3 %v1156_v0  ;;  %v5217_v6 = vpop.f32.mrf.mxu0 }
 0x3b9   :  { %v1164_v2 = vpop.f32.mrf.mxu3 }
 0x3ba   :  { %v1165_v3 = vadd.f32 %v4655_v35, %v1164_v2 }
 0x3bc   :  { %1638 = vmatpush.msrb.mxu2 %v1165_v3 }
 0x3c0   :  { %v5219_v9 = vpop.f32.mrf.mxu0 }
 0x3c1   :  { %v1167_v4 = vpop.f32.mrf.mxu3 }
 0x3c2   :  { %v1168_v5 = vadd.f32 %v4655_v35, %v1167_v4 }
 0x3c4   :  { %1661 = vmatpush.msrb.mxu3 %v1168_v5 }
 0x3f0   :  { %v5221_v8 = vpop.f32.mrf.mxu0 }
 0x3f8   :  { %v5223_v10 = vpop.f32.mrf.mxu0 }
 0x400   :  { %v5225_v12 = vpop.f32.mrf.mxu0 }
 0x404   :  { %v1219_v13 = vpop.f32.mrf.mxu1 }
 0x405   :  { %v1379_v14 = vmul.f32 0.5, %v1219_v13 }
 0x407   :  { %v1387_v16 = vsel %vm5074_vm4, %v1379_v14, -1e+30 }
 0x408   :  { %v1397_v17 = vsel %vm684_vm5, %v1387_v16, -inf  ;;  %v5230_v11 = vpop.f32.mrf.mxu0 }
 0x409   :  { %1398 = vmax.xlane.f32.xlu2 %v1397_v17 }
 0x410   :  { %v5232_v18 = vpop.f32.mrf.mxu0 }
 0x412   :  { %v1245_v19 = vpop.f32.mrf.mxu2 }
 0x413   :  { %v1380_v20 = vmul.f32 0.5, %v1245_v19 }
 0x415   :  { %v1388_v21 = vsel %vm5074_vm4, %v1380_v20, -1e+30 }
 0x416   :  { %v1400_v22 = vsel %vm684_vm5, %v1388_v21, -inf }
 0x417   :  { %1401 = vmax.xlane.f32.xlu0 %v1400_v22 }
 0x418   :  { %v5237_v24 = vpop.f32.mrf.mxu0 }
 0x41a   :  { %v1271_v27 = vpop.f32.mrf.mxu3 }
 0x41b   :  { %v1381_v32 = vmul.f32 0.5, %v1271_v27 }
 0x41d   :  { %v1389_v36 = vsel %vm5074_vm4, %v1381_v32, -1e+30 }
 0x41e   :  { %v1403_v37 = vsel %vm684_vm5, %v1389_v36, -inf }
 0x420   :  { %v1193_v25 = vpop.f32.mrf.mxu0 }
 0x421   :  { %v1378_v26 = vmul.f32 0.5, %v1193_v25 }
 0x423   :  { %v1386_v28 = vsel %vm5074_vm4, %v1378_v26, -1e+30 }
 0x424   :  { %v1323_v29 = vpop.f32.mrf.mxu1  ;;  %v1394_v30 = vsel %vm684_vm5, %v1386_v28, -inf }
 0x425   :  { %v1383_v33 = vmul.f32 0.5, %v1323_v29  ;;  %1395 = vmax.xlane.f32.xlu1 %v1394_v30 }
 0x427   :  { %v1391_v34 = vsel %vm5074_vm4, %v1383_v33, -1e+30 }
 0x428   :  { %v1409_v35 = vsel %vm684_vm5, %v1391_v34, -inf  ;;  %v1297_v47 = vpop.f32.mrf.mxu0 }
 0x429   :  { %1410 = vmax.xlane.f32.xlu0 %v1409_v35  ;;  %v1382_v38 = vmul.f32 0.5, %v1297_v47 }
 0x42b   :  { %v1390_v40 = vsel %vm5074_vm4, %v1382_v38, -1e+30 }
 0x42c   :  { %v1406_v44 = vsel %vm684_vm5, %v1390_v40, -inf }
 0x42d   :  { %1404 = vmax.xlane.f32.xlu1 %v1403_v37 }
 0x432   :  { %v1349_v42 = vpop.f32.mrf.mxu2 }
 0x433   :  { %v1384_v43 = vmul.f32 0.5, %v1349_v42 }
 0x435   :  { %1407 = vmax.xlane.f32.xlu1 %v1406_v44  ;;  %v1392_v45 = vsel %vm5074_vm4, %v1384_v43, -1e+30 }
 0x436   :  { %v1412_v46 = vsel %vm684_vm5, %v1392_v45, -inf }
 0x437   :  { %1413 = vmax.xlane.f32.xlu2 %v1412_v46 }
 0x43a   :  { %v1375_v50 = vpop.f32.mrf.mxu3 }
 0x43b   :  { %v1385_v51 = vmul.f32 0.5, %v1375_v50 }
 0x43d   :  { %v1393_v52 = vsel %vm5074_vm4, %v1385_v51, -1e+30 }
 0x43e   :  { %v1415_v53 = vsel %vm684_vm5, %v1393_v52, -inf }
 0x43f   :  { %1416 = vmax.xlane.f32.xlu2 %v1415_v53  ;;  %v1744_v53 = vld [vmem:[#allocation4 + $0x200] sm:$0xff] }
 0x47c   :  { %v1399_v54 = vpop.xlane.xlu2 %1398 }
 0x47d   :  { %v1419_v55 = vsub.f32 %v1387_v16, %v1399_v54  ;;  %v1743_v54 = vld [vmem:[#allocation4 + $0x1f8] sm:$0xff] }
 0x47f   :  { %v1428_v57 = vmul.f32 1.442695, %v1419_v55 }
 0x481   :  { %4705 = vpow2.f32 %v1428_v57 }
 0x487   :  { %v4706_v60 = vpop.eup %4705 }
 0x488   :  { %v1445_v39 = vsel %vm684_vm5, %v4706_v60, 0.0 }
 0x489   :  { %1446 = vadd.xlane.f32.xlu1 %v1445_v39 }
 0x48a   :  { %v1402_v49 = vpop.xlane.xlu0 %1401 }
 0x48b   :  { %v1420_v62 = vsub.f32 %v1388_v21, %v1402_v49  ;;  %v1789_v49 = vld [vmem:[#allocation4 + $0x210] sm:$0xff] }
 0x48d   :  { %v1430_v0 = vmul.f32 1.442695, %v1420_v62  ;;  %v1788_v62 = vld [vmem:[#allocation4 + $0x208] sm:$0xff] }
 0x48f   :  { %4707 = vpow2.f32 %v1430_v0 }
 0x495   :  { %v4708_v63 = vpop.eup %4707 }
 0x496   :  { %v1448_v2 = vsel %vm684_vm5, %v4708_v63, 0.0 }
 0x497   :  { %1449 = vadd.xlane.f32.xlu2 %v1448_v2 }
 0x498   :  { %v1396_v3 = vpop.xlane.xlu1 %1395 }
 0x499   :  { %v1418_v4 = vsub.f32 %v1386_v28, %v1396_v3 }
 0x49b   :  { %v1426_v5 = vmul.f32 1.442695, %v1418_v4 }
 0x49c   :  { %v1411_v13 = vpop.xlane.xlu0 %1410 }
 0x49d   :  { %4709 = vpow2.f32 %v1426_v5  ;;  %v1423_v14 = vsub.f32 %v1391_v34, %v1411_v13 }
 0x49f   :  { %v1436_v16 = vmul.f32 1.442695, %v1423_v14 }
 0x4a0   :  { %v1405_v17 = vpop.xlane.xlu1 %1404 }
 0x4a1   :  { %4711 = vpow2.f32 %v1436_v16  ;;  %v1421_v19 = vsub.f32 %v1389_v36, %v1405_v17  ;;  %v1834_v16 = vld [vmem:[#allocation4 + $0x220] sm:$0xff] }
 0x4a3   :  { %v4710_v20 = vpop.eup %4709  ;;  %v1432_v22 = vmul.f32 1.442695, %v1421_v19  ;;  %v1833_v19 = vld [vmem:[#allocation4 + $0x218] sm:$0xff] }
 0x4a4   :  { %v1442_v21 = vsel %vm684_vm5, %v4710_v20, 0.0 }
 0x4a5   :  { %4713 = vpow2.f32 %v1432_v22  ;;  %1443 = vadd.xlane.f32.xlu0 %v1442_v21 }
 0x4a7   :  { %v4712_v25 = vpop.eup %4711 }
 0x4a8   :  { %v1457_v26 = vsel %vm684_vm5, %v4712_v25, 0.0  ;;  %v1408_v27 = vpop.xlane.xlu1 %1407 }
 0x4a9   :  { %1458 = vadd.xlane.f32.xlu2 %v1457_v26  ;;  %v1422_v28 = vsub.f32 %v1390_v40, %v1408_v27 }
 0x4aa   :  { %v1414_v29 = vpop.xlane.xlu2 %1413 }
 0x4ab   :  { %v4714_v30 = vpop.eup %4713  ;;  %v1434_v32 = vmul.f32 1.442695, %v1422_v28  ;;  %v1424_v33 = vsub.f32 %v1392_v45, %v1414_v29  ;;  %v1666_v29 = vld [vmem:[#allocation4 + $0x1f0] sm:$0xf] }
 0x4ac   :  { %v1451_v34 = vsel %vm684_vm5, %v4714_v30, 0.0 }
 0x4ad   :  { %4715 = vpow2.f32 %v1434_v32  ;;  %v1438_v35 = vmul.f32 1.442695, %v1424_v33  ;;  %1452 = vadd.xlane.f32.xlu0 %v1451_v34 }
 0x4af   :  { %4717 = vpow2.f32 %v1438_v35 }
 0x4b2   :  { %v1417_v36 = vpop.xlane.xlu2 %1416 }
 0x4b3   :  { %v4716_v47 = vpop.eup %4715  ;;  %v1425_v37 = vsub.f32 %v1393_v52, %v1417_v36 }
 0x4b4   :  { %v1454_v38 = vsel %vm684_vm5, %v4716_v47, 0.0 }
 0x4b5   :  { %v4718_v42 = vpop.eup %4717  ;;  %v1440_v43 = vmul.f32 1.442695, %v1425_v37  ;;  %1455 = vadd.xlane.f32.xlu0 %v1454_v38  ;;  %v5326_v38 = vld [vmem:[#allocation4 + $0x230] ss:$0 sm:$0xff] }
 0x4b6   :  { %v1460_v40 = vsel %vm684_vm5, %v4718_v42, 0.0 }
 0x4b7   :  { %4719 = vpow2.f32 %v1440_v43  ;;  %1461 = vadd.xlane.f32.xlu1 %v1460_v40 }
 0x4bd   :  { %v4720_v44 = vpop.eup %4719 }
 0x4be   :  { %v1463_v45 = vsel %vm684_vm5, %v4720_v44, 0.0 }
 0x4bf   :  { %1464 = vadd.xlane.f32.xlu1 %v1463_v45 }
 0x4fc   :  { %v1447_v46 = vpop.xlane.xlu1 %1446 }
 0x4fd   :  { %4721 = vrcp.f32 %v1447_v46 }
 0x503   :  { %v4722_v50 = vpop.eup %4721 }
 0x504   :  { %v1475_v51 = vmul.f32 %v4722_v50, %v4706_v60 }
 0x506   :  { %4473 = vmatmul.msk.f32.vlgmr.msra.gmra.mxu1 %vm684_vm5, %v1475_v51 }
 0x507   :  { %1761 = vmatpush.msra.mxu1 %v1744_v53 }
 0x509   :  { %1762 = vmatpush.msra.mxu1 %v1743_v54 }
 0x50a   :  { %v1450_v52 = vpop.xlane.xlu2 %1449 }
 0x50b   :  { %4723 = vrcp.f32 %v1450_v52  ;;  %v4657_v52 = vld [vmem:[#allocation4 + $0x228] ss:$0 sm:$0xff] }
 0x511   :  { %v4724_v55 = vpop.eup %4723 }
 0x512   :  { %v1476_v57 = vmul.f32 %v4724_v55, %v4708_v63 }
 0x514   :  { %4474 = vmatmul.msk.f32.vlgmr.msra.gmra.mxu2 %vm684_vm5, %v1476_v57 }
 0x515   :  { %1806 = vmatpush.msra.mxu2 %v1789_v49 }
 0x517   :  { %1807 = vmatpush.msra.mxu2 %v1788_v62 }
 0x518   :  { %v1444_v39 = vpop.xlane.xlu0 %1443 }
 0x519   :  { %4725 = vrcp.f32 %v1444_v39 }
 0x51c   :  { %v1459_v0 = vpop.xlane.xlu2 %1458 }
 0x51d   :  { %4727 = vrcp.f32 %v1459_v0 }
 0x51f   :  { %v4726_v60 = vpop.eup %4725 }
 0x520   :  { %v1474_v2 = vmul.f32 %v4726_v60, %v4710_v20  ;;  %v1453_v3 = vpop.xlane.xlu0 %1452 }
 0x521   :  { %4729 = vrcp.f32 %v1453_v3 }
 0x522   :  { %4472 = vmatmul.msk.f32.vlgmr.msra.gmra.mxu0 %vm684_vm5, %v1474_v2 }
 0x523   :  { %v4728_v4 = vpop.eup %4727  ;;  %4480 = vmatpush.msk.msra.mxu0 %vm982_vm6, %v1666_v29 }
 0x524   :  { %v1479_v5 = vmul.f32 %v4728_v4, %v4712_v25  ;;  %v4659_v4 = vld [vmem:[#allocation4 + $0x238] ss:$0 sm:$0xff] }
 0x526   :  { %4477 = vmatmul.msk.f32.vlgmr.msrb.gmra.mxu1 %vm684_vm5, %v1479_v5 }
 0x527   :  { %v4730_v63 = vpop.eup %4729 }
 0x528   :  { %v1477_v13 = vmul.f32 %v4730_v63, %v4714_v30  ;;  %v1456_v14 = vpop.xlane.xlu0 %1455 }
 0x529   :  { %4731 = vrcp.f32 %v1456_v14 }
 0x52a   :  { %v1462_v17 = vpop.xlane.xlu1 %1461  ;;  %4475 = vmatmul.msk.f32.vlgmr.msra.gmra.mxu3 %vm684_vm5, %v1477_v13 }
 0x52b   :  { %4733 = vrcp.f32 %v1462_v17  ;;  %1851 = vmatpush.msra.mxu3 %v1834_v16 }
 0x52d   :  { %1852 = vmatpush.msra.mxu3 %v1833_v19 }
 0x52e   :  { %4489 = vmatmul.msk.f32.vlgmr.msra.gmra.mxu1 %vm301_vm2, %v4969_v7 }
 0x52f   :  { %v4732_v20 = vpop.eup %4731 }
 0x530   :  { %v1478_v22 = vmul.f32 %v4732_v20, %v4716_v47 }
 0x531   :  { %v4734_v21 = vpop.eup %4733 }
 0x532   :  { %v1480_v25 = vmul.f32 %v4734_v21, %v4718_v42  ;;  %v1465_v26 = vpop.xlane.xlu1 %1464  ;;  %4476 = vmatmul.msk.f32.vlgmr.msrb.gmra.mxu0 %vm684_vm5, %v1478_v22 }
 0x533   :  { %4735 = vrcp.f32 %v1465_v26 }
 0x534   :  { %4478 = vmatmul.msk.f32.vlgmr.msrb.gmra.mxu2 %vm684_vm5, %v1480_v25 }
 0x536   :  { %4490 = vmatmul.msk.f32.gmra.mxu1 %vm301_vm2, %v4976_v15 }
 0x539   :  { %v4736_v27 = vpop.eup %4735 }
 0x53a   :  { %v1481_v28 = vmul.f32 %v4736_v27, %v4720_v44 }
 0x53c   :  { %4479 = vmatmul.msk.f32.vlgmr.msrb.gmra.mxu3 %vm684_vm5, %v1481_v28  ;;  %4497 = vmatmul.msk.f32.vlgmr.msra.gmra.mxu2 %vm301_vm2, %v4969_v7 }
 0x53e   :  { %4491 = vmatmul.msk.f32.gmra.mxu1 %vm301_vm2, %v4983_v23 }
 0x544   :  { %4498 = vmatmul.msk.f32.gmra.mxu2 %vm301_vm2, %v4976_v15  ;;  %4505 = vmatmul.msk.f32.vlgmr.msra.gmra.mxu3 %vm301_vm2, %v4969_v7 }
 0x546   :  { %4492 = vmatmul.msk.f32.gmra.mxu1 %vm301_vm2, %v4990_v31 }
 0x54c   :  { %4499 = vmatmul.msk.f32.gmra.mxu2 %vm301_vm2, %v4983_v23  ;;  %4506 = vmatmul.msk.f32.gmra.mxu3 %vm301_vm2, %v4976_v15 }
 0x54e   :  { %4493 = vmatmul.msk.f32.gmra.mxu1 %vm301_vm2, %v4997_v41 }
 0x554   :  { %4500 = vmatmul.msk.f32.gmra.mxu2 %vm301_vm2, %v4990_v31  ;;  %4507 = vmatmul.msk.f32.gmra.mxu3 %vm301_vm2, %v4983_v23 }
 0x556   :  { %4494 = vmatmul.msk.f32.gmra.mxu1 %vm301_vm2, %v5004_v48 }
 0x55c   :  { %4501 = vmatmul.msk.f32.gmra.mxu2 %vm301_vm2, %v4997_v41  ;;  %4508 = vmatmul.msk.f32.gmra.mxu3 %vm301_vm2, %v4990_v31 }
 0x55e   :  { %4495 = vmatmul.msk.f32.gmra.mxu1 %vm301_vm2, %v5011_v56 }
 0x564   :  { %4502 = vmatmul.msk.f32.gmra.mxu2 %vm301_vm2, %v5004_v48  ;;  %4509 = vmatmul.msk.f32.gmra.mxu3 %vm301_vm2, %v4997_v41 }
 0x566   :  { %4496 = vmatmul.msk.f32.gmra.mxu1 %vm301_vm2, %v5018_v1 }
 0x56c   :  { %4503 = vmatmul.msk.f32.gmra.mxu2 %vm301_vm2, %v5011_v56  ;;  %4510 = vmatmul.msk.f32.gmra.mxu3 %vm301_vm2, %v5004_v48 }
 0x574   :  { %4504 = vmatmul.msk.f32.gmra.mxu2 %vm301_vm2, %v5018_v1  ;;  %4511 = vmatmul.msk.f32.gmra.mxu3 %vm301_vm2, %v5011_v56 }
 0x57c   :  { %4512 = vmatmul.msk.f32.gmra.mxu3 %vm301_vm2, %v5018_v1 }
 0x583   :  { %v1525_v32 = vpop.f32.mrf.mxu1 }
 0x597   :  { %v1548_v34 = vpop.f32.mrf.mxu2 }
 0x59f   :  { %v1502_v30 = vpop.f32.mrf.mxu0 }
 0x5a0   :  { %4481 = vmatmul.msk.f32.vlgmr.msra.gmra.mxu0 %vm457_vm3, %v1502_v30 }
 0x5a3   :  { %v1617_v33 = vpop.f32.mrf.mxu1 }
 0x5a8   :  { %4482 = vmatmul.msk.f32.gmra.mxu0 %vm457_vm3, %v1525_v32 }
 0x5ab   :  { %v1764_v35 = vpop.f32.mrf.mxu1 }
 0x5ac   :  { %v1765_v5 = vadd.f32 %v4657_v52, %v1764_v35 }
 0x5ad   :  { %v1571_v36 = vpop.f32.mrf.mxu3 }
 0x5af   :  { %v1594_v42 = vpop.f32.mrf.mxu0 }
 0x5b0   :  { %4483 = vmatmul.msk.f32.gmra.mxu0 %vm457_vm3, %v1548_v34 }
 0x5b3   :  { %v1767_v37 = vpop.f32.mrf.mxu1 }
 0x5b4   :  { %v1768_v53 = vadd.f32 %v4657_v52, %v1767_v37 }
 0x5b7   :  { %v1640_v47 = vpop.f32.mrf.mxu2 }
 0x5b8   :  { %4484 = vmatmul.msk.f32.gmra.mxu0 %vm457_vm3, %v1571_v36 }
 0x5bb   :  { %v1770_v45 = vpop.f32.mrf.mxu1 }
 0x5bc   :  { %v1771_v49 = vadd.f32 %v4657_v52, %v1770_v45 }
 0x5bf   :  { %v1663_v43 = vpop.f32.mrf.mxu3  ;;  %v1809_v40 = vpop.f32.mrf.mxu2 }
 0x5c0   :  { %v1810_v44 = vadd.f32 %v5326_v38, %v1809_v40  ;;  %4485 = vmatmul.msk.f32.gmra.mxu0 %vm457_vm3, %v1594_v42 }
 0x5c2   :  { %4513 = vmatpush.xpose.msk.msrb.mxu0 %vm457_vm3, %v1810_v44 }
 0x5c3   :  { %v1773_v57 = vpop.f32.mrf.mxu1 }
 0x5c4   :  { %v1774_v3 = vadd.f32 %v4657_v52, %v1773_v57 }
 0x5c7   :  { %v1812_v46 = vpop.f32.mrf.mxu2  ;;  %v1854_v50 = vpop.f32.mrf.mxu3 }
 0x5c8   :  { %v1813_v51 = vadd.f32 %v5326_v38, %v1812_v46  ;;  %4486 = vmatmul.msk.f32.gmra.mxu0 %vm457_vm3, %v1617_v33  ;;  %v1855_v16 = vadd.f32 %v4659_v4, %v1854_v50 }
 0x5ca   :  { %4515 = vmatpush.xpose.msk.msrb.mxu1 %vm457_vm3, %v1813_v51 }
 0x5cb   :  { %v1776_v2 = vpop.f32.mrf.mxu1 }
 0x5cc   :  { %v1777_v19 = vadd.f32 %v4657_v52, %v1776_v2 }
 0x5cd   :  { %4516 = vmatmul.msk.f32.vlgmr.msrb.gmra.mxu1 %vm457_vm3, %v1768_v53 }
 0x5cf   :  { %v1815_v54 = vpop.f32.mrf.mxu2  ;;  %v1857_v55 = vpop.f32.mrf.mxu3 }
 0x5d0   :  { %v1816_v39 = vadd.f32 %v5326_v38, %v1815_v54  ;;  %4487 = vmatmul.msk.f32.gmra.mxu0 %vm457_vm3, %v1640_v47  ;;  %v1858_v26 = vadd.f32 %v4659_v4, %v1857_v55 }
 0x5d2   :  { %4517 = vmatpush.xpose.msk.msrb.mxu2 %vm457_vm3, %v1816_v39 }
 0x5d3   :  { %v1779_v17 = vpop.f32.mrf.mxu1 }
 0x5d4   :  { %v1780_v27 = vadd.f32 %v4657_v52, %v1779_v17 }
 0x5d5   :  { %4518 = vmatmul.msk.f32.vlgmr.msrb.gmra.mxu2 %vm457_vm3, %v1771_v49 }
 0x5d7   :  { %v1818_v62 = vpop.f32.mrf.mxu2  ;;  %v1860_v0 = vpop.f32.mrf.mxu3 }
 0x5d8   :  { %v1819_v60 = vadd.f32 %v5326_v38, %v1818_v62  ;;  %4488 = vmatmul.msk.f32.gmra.mxu0 %vm457_vm3, %v1663_v43  ;;  %v1861_v34 = vadd.f32 %v4659_v4, %v1860_v0 }
 0x5da   :  { %4519 = vmatpush.xpose.msk.msrb.mxu3 %vm457_vm3, %v1819_v60 }
 0x5db   :  { %v1782_v28 = vpop.f32.mrf.mxu1 }
 0x5dc   :  { %v1783_v35 = vadd.f32 %v4657_v52, %v1782_v28 }
 0x5dd   :  { %4520 = vmatmul.msk.f32.vlgmr.msrb.gmra.mxu3 %vm457_vm3, %v1774_v3 }
 0x5df   :  { %v1821_v63 = vpop.f32.mrf.mxu2  ;;  %v1863_v13 = vpop.f32.mrf.mxu3 }
 0x5e0   :  { %v1822_v14 = vadd.f32 %v5326_v38, %v1821_v63  ;;  %4514 = vmatmul.msk.f32.vlgmr.msrb.gmra.mxu0 %vm457_vm3, %v1765_v5  ;;  %v1864_v40 = vadd.f32 %v4659_v4, %v1863_v13 }
 0x5e2   :  { %4521 = vmatpush.xpose.msk.msra.mxu0 %vm457_vm3, %v1822_v14 }
 0x5e3   :  { %v1785_v37 = vpop.f32.mrf.mxu1 }
 0x5e4   :  { %v1786_v44 = vadd.f32 %v4657_v52, %v1785_v37 }
 0x5e6   :  { %2208 = vmatpush.msrb.mxu0 %v1855_v16 }
 0x5e7   :  { %v1824_v20 = vpop.f32.mrf.mxu2  ;;  %v1866_v22 = vpop.f32.mrf.mxu3 }
 0x5e8   :  { %v1825_v21 = vadd.f32 %v5326_v38, %v1824_v20  ;;  %v1867_v25 = vadd.f32 %v4659_v4, %v1866_v22  ;;  %4522 = vmatmul.msk.f32.vlgmr.msra.gmra.mxu0 %vm457_vm3, %v1777_v19 }
 0x5ea   :  { %4523 = vmatpush.xpose.msk.msra.mxu1 %vm457_vm3, %v1825_v21  ;;  %2300 = vmatpush.msra.mxu0 %v1867_v25 }
 0x5ed   :  { %4524 = vmatmul.msk.f32.vlgmr.msra.gmra.mxu1 %vm457_vm3, %v1780_v27 }
 0x5ee   :  { %2231 = vmatpush.msrb.mxu1 %v1858_v26 }
 0x5ef   :  { %v1827_v29 = vpop.f32.mrf.mxu2  ;;  %v1869_v30 = vpop.f32.mrf.mxu3 }
 0x5f0   :  { %v1828_v32 = vadd.f32 %v5326_v38, %v1827_v29  ;;  %v1870_v33 = vadd.f32 %v4659_v4, %v1869_v30 }
 0x5f2   :  { %4525 = vmatpush.xpose.msk.msra.mxu2 %vm457_vm3, %v1828_v32  ;;  %2323 = vmatpush.msra.mxu1 %v1870_v33 }
 0x5f5   :  { %4526 = vmatmul.msk.f32.vlgmr.msra.gmra.mxu2 %vm457_vm3, %v1783_v35 }
 0x5f6   :  { %2254 = vmatpush.msrb.mxu2 %v1861_v34 }
 0x5f7   :  { %v1830_v36 = vpop.f32.mrf.mxu2  ;;  %v1872_v47 = vpop.f32.mrf.mxu3 }
 0x5f8   :  { %v1831_v42 = vadd.f32 %v5326_v38, %v1830_v36  ;;  %v1873_v43 = vadd.f32 %v4659_v4, %v1872_v47 }
 0x5fa   :  { %4527 = vmatpush.xpose.msk.msra.mxu3 %vm457_vm3, %v1831_v42  ;;  %2346 = vmatpush.msra.mxu2 %v1873_v43 }
 0x5fd   :  { %4528 = vmatmul.msk.f32.vlgmr.msra.gmra.mxu3 %vm457_vm3, %v1786_v44 }
 0x5fe   :  { %2277 = vmatpush.msrb.mxu3 %v1864_v40 }
 0x5ff   :  { %v1875_v45 = vpop.f32.mrf.mxu3 }
 0x600   :  { %v1876_v46 = vadd.f32 %v4659_v4, %v1875_v45 }
 0x602   :  { %2369 = vmatpush.msra.mxu3 %v1876_v46 }
 0x61d   :  { %v5356_v50 = vpop.f32.mrf.mxu0 }
 0x625   :  { %v5358_v51 = vpop.f32.mrf.mxu0 }
 0x62d   :  { %v5360_v53 = vpop.f32.mrf.mxu0 }
 0x635   :  { %v5362_v54 = vpop.f32.mrf.mxu0 }
 0x63d   :  { %v5364_v38 = vpop.f32.mrf.mxu0 }
 0x645   :  { %v5366_v55 = vpop.f32.mrf.mxu0 }
 0x64a   :  { %v1927_v57 = vpop.f32.mrf.mxu1 }
 0x64b   :  { %v2087_v52 = vmul.f32 0.5, %v1927_v57 }
 0x64d   :  { %v5368_v39 = vpop.f32.mrf.mxu0  ;;  %v2095_v49 = vsel %vm5074_vm4, %v2087_v52, -1e+30 }
 0x64e   :  { %v2105_v62 = vsel %vm684_vm5, %v2095_v49, -inf }
 0x64f   :  { %2106 = vmax.xlane.f32.xlu0 %v2105_v62 }
 0x655   :  { %v5373_v0 = vpop.f32.mrf.mxu0 }
 0x658   :  { %v1953_v60 = vpop.f32.mrf.mxu2 }
 0x659   :  { %v2088_v2 = vmul.f32 0.5, %v1953_v60 }
 0x65b   :  { %v2096_v3 = vsel %vm5074_vm4, %v2088_v2, -1e+30 }
 0x65c   :  { %v2108_v4 = vsel %vm684_vm5, %v2096_v3, -inf }
 0x65d   :  { %2109 = vmax.xlane.f32.xlu1 %v2108_v4  ;;  %v1901_v5 = vpop.f32.mrf.mxu0 }
 0x65e   :  { %v2086_v63 = vmul.f32 0.5, %v1901_v5 }
 0x660   :  { %v1979_v13 = vpop.f32.mrf.mxu3  ;;  %v2094_v14 = vsel %vm5074_vm4, %v2086_v63, -1e+30 }
 0x661   :  { %v2102_v16 = vsel %vm684_vm5, %v2094_v14, -inf  ;;  %v2089_v17 = vmul.f32 0.5, %v1979_v13 }
 0x662   :  { %2103 = vmax.xlane.f32.xlu2 %v2102_v16 }
 0x663   :  { %v2097_v22 = vsel %vm5074_vm4, %v2089_v17, -1e+30 }
 0x664   :  { %v2111_v25 = vsel %vm684_vm5, %v2097_v22, -inf }
 0x665   :  { %v2005_v19 = vpop.f32.mrf.mxu0 }
 0x666   :  { %v2090_v20 = vmul.f32 0.5, %v2005_v19 }
 0x668   :  { %v2098_v21 = vsel %vm5074_vm4, %v2090_v20, -1e+30 }
 0x669   :  { %v2114_v26 = vsel %vm684_vm5, %v2098_v21, -inf }
 0x66a   :  { %v2031_v27 = vpop.f32.mrf.mxu1  ;;  %2112 = vmax.xlane.f32.xlu2 %v2111_v25  ;;  %2115 = vmax.xlane.f32.xlu1 %v2114_v26 }
 0x66b   :  { %v2091_v28 = vmul.f32 0.5, %v2031_v27 }
 0x66d   :  { %v2099_v29 = vsel %vm5074_vm4, %v2091_v28, -1e+30 }
 0x66e   :  { %v2117_v30 = vsel %vm684_vm5, %v2099_v29, -inf }
 0x672   :  { %2118 = vmax.xlane.f32.xlu2 %v2117_v30 }
 0x678   :  { %v2057_v32 = vpop.f32.mrf.mxu2 }
 0x679   :  { %v2092_v33 = vmul.f32 0.5, %v2057_v32 }
 0x67b   :  { %v2100_v34 = vsel %vm5074_vm4, %v2092_v33, -1e+30 }
 0x67c   :  { %v2120_v35 = vsel %vm684_vm5, %v2100_v34, -inf }
 0x67d   :  { %2121 = vmax.xlane.f32.xlu0 %v2120_v35 }
 0x680   :  { %v2083_v36 = vpop.f32.mrf.mxu3 }
 0x681   :  { %v2093_v47 = vmul.f32 0.5, %v2083_v36 }
 0x683   :  { %v2101_v37 = vsel %vm5074_vm4, %v2093_v47, -1e+30 }
 0x684   :  { %v2123_v42 = vsel %vm684_vm5, %v2101_v37, -inf }
 0x685   :  { %2124 = vmax.xlane.f32.xlu0 %v2123_v42 }
 0x6c2   :  { %v2107_v43 = vpop.xlane.xlu0 %2106 }
 0x6c3   :  { %v2127_v40 = vsub.f32 %v2095_v49, %v2107_v43 }
 0x6c5   :  { %v2136_v44 = vmul.f32 1.442695, %v2127_v40 }
 0x6c7   :  { %4737 = vpow2.f32 %v2136_v44 }
 0x6cd   :  { %v4738_v45 = vpop.eup %4737 }
 0x6ce   :  { %v2153_v46 = vsel %vm684_vm5, %v4738_v45, 0.0 }
 0x6cf   :  { %2154 = vadd.xlane.f32.xlu2 %v2153_v46 }
 0x6d0   :  { %v2110_v57 = vpop.xlane.xlu1 %2109 }
 0x6d1   :  { %v2128_v52 = vsub.f32 %v2096_v3, %v2110_v57 }
 0x6d3   :  { %v2138_v62 = vmul.f32 1.442695, %v2128_v52 }
 0x6d5   :  { %4739 = vpow2.f32 %v2138_v62  ;;  %v2104_v60 = vpop.xlane.xlu2 %2103 }
 0x6d6   :  { %v2126_v2 = vsub.f32 %v2094_v14, %v2104_v60 }
 0x6d8   :  { %v2134_v4 = vmul.f32 1.442695, %v2126_v2  ;;  %v2452_v2 = vld [vmem:[#allocation4 + $0x250] sm:$0xff] }
 0x6da   :  { %4741 = vpow2.f32 %v2134_v4  ;;  %v2451_v4 = vld [vmem:[#allocation4 + $0x248] sm:$0xff] }
 0x6db   :  { %v4740_v5 = vpop.eup %4739 }
 0x6dc   :  { %v2156_v63 = vsel %vm684_vm5, %v4740_v5, 0.0 }
 0x6dd   :  { %2157 = vadd.xlane.f32.xlu0 %v2156_v63  ;;  %v2113_v13 = vpop.xlane.xlu2 %2112  ;;  %v2116_v49 = vpop.xlane.xlu1 %2115 }
 0x6de   :  { %v2129_v16 = vsub.f32 %v2097_v22, %v2113_v13  ;;  %v2130_v17 = vsub.f32 %v2098_v21, %v2116_v49 }
 0x6e0   :  { %v4742_v19 = vpop.eup %4741  ;;  %v2140_v20 = vmul.f32 1.442695, %v2129_v16  ;;  %v2142_v25 = vmul.f32 1.442695, %v2130_v17 }
 0x6e1   :  { %v2150_v26 = vsel %vm684_vm5, %v4742_v19, 0.0 }
 0x6e2   :  { %4743 = vpow2.f32 %v2140_v20  ;;  %2151 = vadd.xlane.f32.xlu1 %v2150_v26 }
 0x6e3   :  { %4745 = vpow2.f32 %v2142_v25  ;;  %v2496_v25 = vld [vmem:[#allocation4 + $0x258] sm:$0xff] }
 0x6e5   :  { %v2119_v3 = vpop.xlane.xlu2 %2118 }
 0x6e6   :  { %v2131_v14 = vsub.f32 %v2099_v29, %v2119_v3 }
 0x6e8   :  { %v4744_v27 = vpop.eup %4743  ;;  %v2144_v28 = vmul.f32 1.442695, %v2131_v14 }
 0x6e9   :  { %v4746_v30 = vpop.eup %4745  ;;  %v2159_v32 = vsel %vm684_vm5, %v4744_v27, 0.0 }
 0x6ea   :  { %4747 = vpow2.f32 %v2144_v28  ;;  %2160 = vadd.xlane.f32.xlu1 %v2159_v32  ;;  %v2162_v22 = vsel %vm684_vm5, %v4746_v30, 0.0  ;;  %v2542_v32 = vld [vmem:[#allocation4 + $0x270] sm:$0xff] }
 0x6eb   :  { %2163 = vadd.xlane.f32.xlu0 %v2162_v22 }
 0x6f0   :  { %v4748_v21 = vpop.eup %4747  ;;  %v2122_v33 = vpop.xlane.xlu0 %2121 }
 0x6f1   :  { %v2132_v35 = vsub.f32 %v2100_v34, %v2122_v33  ;;  %v2165_v36 = vsel %vm684_vm5, %v4748_v21, 0.0 }
 0x6f2   :  { %2166 = vadd.xlane.f32.xlu1 %v2165_v36 }
 0x6f3   :  { %v2146_v47 = vmul.f32 1.442695, %v2132_v35 }
 0x6f5   :  { %4749 = vpow2.f32 %v2146_v47 }
 0x6f8   :  { %v2125_v42 = vpop.xlane.xlu0 %2124 }
 0x6f9   :  { %v2133_v29 = vsub.f32 %v2101_v37, %v2125_v42 }
 0x6fb   :  { %v4750_v43 = vpop.eup %4749  ;;  %v2148_v40 = vmul.f32 1.442695, %v2133_v29 }
 0x6fc   :  { %v2168_v44 = vsel %vm684_vm5, %v4750_v43, 0.0 }
 0x6fd   :  { %4751 = vpow2.f32 %v2148_v40  ;;  %2169 = vadd.xlane.f32.xlu2 %v2168_v44 }
 0x703   :  { %v4752_v46 = vpop.eup %4751 }
 0x704   :  { %v2171_v57 = vsel %vm684_vm5, %v4752_v46, 0.0 }
 0x705   :  { %2172 = vadd.xlane.f32.xlu2 %v2171_v57 }
 0x742   :  { %v2155_v52 = vpop.xlane.xlu2 %2154 }
 0x743   :  { %4753 = vrcp.f32 %v2155_v52 }
 0x749   :  { %v4754_v34 = vpop.eup %4753 }
 0x74a   :  { %v2183_v62 = vmul.f32 %v4754_v34, %v4738_v45  ;;  %v2497_v45 = vld [vmem:[#allocation4 + $0x260] sm:$0xff] }
 0x74c   :  { %4530 = vmatmul.msk.f32.vlgmr.msrb.gmra.mxu1 %vm684_vm5, %v2183_v62 }
 0x74d   :  { %2469 = vmatpush.msrb.mxu1 %v2452_v2 }
 0x74f   :  { %2470 = vmatpush.msrb.mxu1 %v2451_v4 }
 0x750   :  { %v2158_v60 = vpop.xlane.xlu0 %2157 }
 0x751   :  { %4755 = vrcp.f32 %v2158_v60  ;;  %v5466_v60 = vld [vmem:[#allocation4 + $0x280] ss:$0 sm:$0xff] }
 0x755   :  { %v2152_v37 = vpop.xlane.xlu1 %2151 }
 0x756   :  { %4757 = vrcp.f32 %v2152_v37 }
 0x757   :  { %v4756_v63 = vpop.eup %4755 }
 0x758   :  { %v2184_v13 = vmul.f32 %v4756_v63, %v4740_v5 }
 0x75a   :  { %4531 = vmatmul.msk.f32.vlgmr.msrb.gmra.mxu2 %vm684_vm5, %v2184_v13 }
 0x75b   :  { %2514 = vmatpush.msrb.mxu2 %v2497_v45 }
 0x75c   :  { %v4758_v49 = vpop.eup %4757 }
 0x75d   :  { %v2182_v16 = vmul.f32 %v4758_v49, %v4742_v19  ;;  %v2161_v17 = vpop.xlane.xlu1 %2160  ;;  %2515 = vmatpush.msrb.mxu2 %v2496_v25  ;;  %v2541_v19 = vld [vmem:[#allocation4 + $0x268] sm:$0xff] }
 0x75e   :  { %v2164_v20 = vpop.xlane.xlu0 %2163  ;;  %4759 = vrcp.f32 %v2161_v17  ;;  %v4660_v17 = vld [vmem:[#allocation4 + $0x278] ss:$0 sm:$0xff] }
 0x75f   :  { %4761 = vrcp.f32 %v2164_v20  ;;  %4529 = vmatmul.msk.f32.vlgmr.msrb.gmra.mxu0 %vm684_vm5, %v2182_v16 }
 0x764   :  { %v4760_v26 = vpop.eup %4759 }
 0x765   :  { %v4762_v3 = vpop.eup %4761  ;;  %v2185_v14 = vmul.f32 %v4760_v26, %v4744_v27  ;;  %v2167_v28 = vpop.xlane.xlu1 %2166 }
 0x766   :  { %v2186_v5 = vmul.f32 %v4762_v3, %v4746_v30  ;;  %4763 = vrcp.f32 %v2167_v28 }
 0x767   :  { %4532 = vmatmul.msk.f32.vlgmr.msrb.gmra.mxu3 %vm684_vm5, %v2185_v14 }
 0x768   :  { %4533 = vmatmul.msk.f32.vlgmr.msra.gmra.mxu0 %vm684_vm5, %v2186_v5  ;;  %2559 = vmatpush.msrb.mxu3 %v2542_v32 }
 0x76a   :  { %2560 = vmatpush.msrb.mxu3 %v2541_v19 }
 0x76c   :  { %v4764_v22 = vpop.eup %4763 }
 0x76d   :  { %v2187_v33 = vmul.f32 %v4764_v22, %v4748_v21  ;;  %v2374_v21 = vld [vmem:[#allocation4 + $0x240] sm:$0xf] }
 0x76e   :  { %4537 = vmatpush.msk.msrb.mxu0 %vm982_vm6, %v2374_v21 }
 0x76f   :  { %4534 = vmatmul.msk.f32.vlgmr.msra.gmra.mxu1 %vm684_vm5, %v2187_v33 }
 0x770   :  { %v2170_v35 = vpop.xlane.xlu2 %2169 }
 0x771   :  { %4765 = vrcp.f32 %v2170_v35  ;;  %v4662_v35 = vld [vmem:[#allocation4 + $0x288] ss:$0 sm:$0xff] }
 0x777   :  { %v4766_v36 = vpop.eup %4765  ;;  %4546 = vmatmul.msk.f32.vlgmr.msrb.gmra.mxu1 %vm301_vm2, %v4969_v7 }
 0x778   :  { %v2188_v27 = vmul.f32 %v4766_v36, %v4750_v43  ;;  %v2173_v30 = vpop.xlane.xlu2 %2172 }
 0x779   :  { %4767 = vrcp.f32 %v2173_v30 }
 0x77a   :  { %4535 = vmatmul.msk.f32.vlgmr.msra.gmra.mxu2 %vm684_vm5, %v2188_v27 }
 0x77f   :  { %v4768_v47 = vpop.eup %4767  ;;  %4547 = vmatmul.msk.f32.gmra.mxu1 %vm301_vm2, %v4976_v15 }
 0x780   :  { %v2189_v42 = vmul.f32 %v4768_v47, %v4752_v46 }
 0x782   :  { %4536 = vmatmul.msk.f32.vlgmr.msra.gmra.mxu3 %vm684_vm5, %v2189_v42  ;;  %4554 = vmatmul.msk.f32.vlgmr.msrb.gmra.mxu2 %vm301_vm2, %v4969_v7 }
 0x787   :  { %4548 = vmatmul.msk.f32.gmra.mxu1 %vm301_vm2, %v4983_v23 }
 0x78a   :  { %4555 = vmatmul.msk.f32.gmra.mxu2 %vm301_vm2, %v4976_v15  ;;  %4562 = vmatmul.msk.f32.vlgmr.msrb.gmra.mxu3 %vm301_vm2, %v4969_v7 }
 0x78f   :  { %4549 = vmatmul.msk.f32.gmra.mxu1 %vm301_vm2, %v4990_v31 }
 0x792   :  { %4556 = vmatmul.msk.f32.gmra.mxu2 %vm301_vm2, %v4983_v23  ;;  %4563 = vmatmul.msk.f32.gmra.mxu3 %vm301_vm2, %v4976_v15 }
 0x797   :  { %4550 = vmatmul.msk.f32.gmra.mxu1 %vm301_vm2, %v4997_v41 }
 0x79a   :  { %4557 = vmatmul.msk.f32.gmra.mxu2 %vm301_vm2, %v4990_v31  ;;  %4564 = vmatmul.msk.f32.gmra.mxu3 %vm301_vm2, %v4983_v23 }
 0x79f   :  { %4551 = vmatmul.msk.f32.gmra.mxu1 %vm301_vm2, %v5004_v48 }
 0x7a2   :  { %4558 = vmatmul.msk.f32.gmra.mxu2 %vm301_vm2, %v4997_v41  ;;  %4565 = vmatmul.msk.f32.gmra.mxu3 %vm301_vm2, %v4990_v31 }
 0x7a7   :  { %4552 = vmatmul.msk.f32.gmra.mxu1 %vm301_vm2, %v5011_v56 }
 0x7aa   :  { %4559 = vmatmul.msk.f32.gmra.mxu2 %vm301_vm2, %v5004_v48  ;;  %4566 = vmatmul.msk.f32.gmra.mxu3 %vm301_vm2, %v4997_v41 }
 0x7af   :  { %4553 = vmatmul.msk.f32.gmra.mxu1 %vm301_vm2, %v5018_v1 }
 0x7b2   :  { %4560 = vmatmul.msk.f32.gmra.mxu2 %vm301_vm2, %v5011_v56  ;;  %4567 = vmatmul.msk.f32.gmra.mxu3 %vm301_vm2, %v5004_v48 }
 0x7ba   :  { %4561 = vmatmul.msk.f32.gmra.mxu2 %vm301_vm2, %v5018_v1  ;;  %4568 = vmatmul.msk.f32.gmra.mxu3 %vm301_vm2, %v5011_v56 }
 0x7c2   :  { %4569 = vmatmul.msk.f32.gmra.mxu3 %vm301_vm2, %v5018_v1 }
 0x7c9   :  { %v2233_v43 = vpop.f32.mrf.mxu1 }
 0x7dc   :  { %v2210_v29 = vpop.f32.mrf.mxu0 }
 0x7dd   :  { %4538 = vmatmul.msk.f32.vlgmr.msrb.gmra.mxu0 %vm457_vm3, %v2210_v29  ;;  %v2256_v40 = vpop.f32.mrf.mxu2 }
 0x7e5   :  { %4539 = vmatmul.msk.f32.gmra.mxu0 %vm457_vm3, %v2233_v43  ;;  %v2302_v52 = vpop.f32.mrf.mxu0 }
 0x7ea   :  { %v2279_v46 = vpop.f32.mrf.mxu3 }
 0x7ec   :  { %v2325_v44 = vpop.f32.mrf.mxu1 }
 0x7ed   :  { %4540 = vmatmul.msk.f32.gmra.mxu0 %vm457_vm3, %v2256_v40 }
 0x7f4   :  { %v2472_v57 = vpop.f32.mrf.mxu1 }
 0x7f5   :  { %4541 = vmatmul.msk.f32.gmra.mxu0 %vm457_vm3, %v2279_v46  ;;  %v2473_v28 = vadd.f32 %v4660_v17, %v2472_v57 }
 0x7fc   :  { %v2475_v62 = vpop.f32.mrf.mxu1 }
 0x7fd   :  { %v2348_v34 = vpop.f32.mrf.mxu2  ;;  %4542 = vmatmul.msk.f32.gmra.mxu0 %vm457_vm3, %v2302_v52  ;;  %v2476_v20 = vadd.f32 %v4660_v17, %v2475_v62 }
 0x804   :  { %v2478_v63 = vpop.f32.mrf.mxu1 }
 0x805   :  { %v2371_v2 = vpop.f32.mrf.mxu3  ;;  %v2517_v37 = vpop.f32.mrf.mxu2  ;;  %4543 = vmatmul.msk.f32.gmra.mxu0 %vm457_vm3, %v2325_v44  ;;  %v2479_v14 = vadd.f32 %v4660_v17, %v2478_v63 }
 0x806   :  { %v2518_v4 = vadd.f32 %v5466_v60, %v2517_v37 }
 0x808   :  { %4570 = vmatpush.xpose.msk.msra.mxu0 %vm457_vm3, %v2518_v4 }
 0x80c   :  { %v2481_v26 = vpop.f32.mrf.mxu1 }
 0x80d   :  { %v2520_v13 = vpop.f32.mrf.mxu2  ;;  %v2562_v49 = vpop.f32.mrf.mxu3  ;;  %4544 = vmatmul.msk.f32.gmra.mxu0 %vm457_vm3, %v2348_v34  ;;  %v2482_v33 = vadd.f32 %v4660_v17, %v2481_v26 }
 0x80e   :  { %v2521_v16 = vadd.f32 %v5466_v60, %v2520_v13  ;;  %v2563_v47 = vadd.f32 %v4662_v35, %v2562_v49 }
 0x810   :  { %4572 = vmatpush.xpose.msk.msra.mxu1 %vm457_vm3, %v2521_v16 }
 0x813   :  { %4573 = vmatmul.msk.f32.vlgmr.msra.gmra.mxu1 %vm457_vm3, %v2476_v20 }
 0x814   :  { %v2484_v22 = vpop.f32.mrf.mxu1 }
 0x815   :  { %v2523_v45 = vpop.f32.mrf.mxu2  ;;  %v2565_v25 = vpop.f32.mrf.mxu3  ;;  %4545 = vmatmul.msk.f32.gmra.mxu0 %vm457_vm3, %v2371_v2  ;;  %v2485_v42 = vadd.f32 %v4660_v17, %v2484_v22 }
 0x816   :  { %v2524_v3 = vadd.f32 %v5466_v60, %v2523_v45  ;;  %v2566_v46 = vadd.f32 %v4662_v35, %v2565_v25 }
 0x818   :  { %4574 = vmatpush.xpose.msk.msra.mxu2 %vm457_vm3, %v2524_v3 }
 0x81b   :  { %4575 = vmatmul.msk.f32.vlgmr.msra.gmra.mxu2 %vm457_vm3, %v2479_v14 }
 0x81c   :  { %v2487_v21 = vpop.f32.mrf.mxu1 }
 0x81d   :  { %v2526_v32 = vpop.f32.mrf.mxu2  ;;  %v2568_v5 = vpop.f32.mrf.mxu3  ;;  %4571 = vmatmul.msk.f32.vlgmr.msra.gmra.mxu0 %vm457_vm3, %v2473_v28  ;;  %v2488_v57 = vadd.f32 %v4660_v17, %v2487_v21 }
 0x81e   :  { %v2527_v19 = vadd.f32 %v5466_v60, %v2526_v32  ;;  %v2569_v4 = vadd.f32 %v4662_v35, %v2568_v5 }
 0x820   :  { %4576 = vmatpush.xpose.msk.msra.mxu3 %vm457_vm3, %v2527_v19 }
 0x823   :  { %4577 = vmatmul.msk.f32.vlgmr.msra.gmra.mxu3 %vm457_vm3, %v2482_v33 }
 0x824   :  { %v2490_v52 = vpop.f32.mrf.mxu1 }
 0x825   :  { %v2529_v36 = vpop.f32.mrf.mxu2  ;;  %v2571_v27 = vpop.f32.mrf.mxu3  ;;  %v2491_v63 = vadd.f32 %v4660_v17, %v2490_v52 }
 0x826   :  { %v2530_v30 = vadd.f32 %v5466_v60, %v2529_v36  ;;  %v2572_v25 = vadd.f32 %v4662_v35, %v2571_v27 }
 0x828   :  { %4578 = vmatpush.xpose.msk.msrb.mxu0 %vm457_vm3, %v2530_v30 }
 0x82b   :  { %4579 = vmatmul.msk.f32.vlgmr.msrb.gmra.mxu0 %vm457_vm3, %v2485_v42 }
 0x82c   :  { %2916 = vmatpush.msra.mxu0 %v2563_v47  ;;  %v2493_v16 = vpop.f32.mrf.mxu1 }
 0x82d   :  { %v2532_v29 = vpop.f32.mrf.mxu2  ;;  %v2574_v43 = vpop.f32.mrf.mxu3  ;;  %v2494_v26 = vadd.f32 %v4660_v17, %v2493_v16 }
 0x82e   :  { %v2533_v40 = vadd.f32 %v5466_v60, %v2532_v29  ;;  %v2575_v44 = vadd.f32 %v4662_v35, %v2574_v43 }
 0x830   :  { %4580 = vmatpush.xpose.msk.msrb.mxu1 %vm457_vm3, %v2533_v40  ;;  %3008 = vmatpush.msrb.mxu0 %v2575_v44 }
 0x833   :  { %4581 = vmatmul.msk.f32.vlgmr.msrb.gmra.mxu1 %vm457_vm3, %v2488_v57 }
 0x834   :  { %2939 = vmatpush.msra.mxu1 %v2566_v46 }
 0x835   :  { %v2535_v34 = vpop.f32.mrf.mxu2  ;;  %v2577_v62 = vpop.f32.mrf.mxu3 }
 0x836   :  { %v2536_v2 = vadd.f32 %v5466_v60, %v2535_v34  ;;  %v2578_v37 = vadd.f32 %v4662_v35, %v2577_v62 }
 0x838   :  { %4582 = vmatpush.xpose.msk.msrb.mxu2 %vm457_vm3, %v2536_v2  ;;  %3031 = vmatpush.msrb.mxu1 %v2578_v37 }
 0x83b   :  { %4583 = vmatmul.msk.f32.vlgmr.msrb.gmra.mxu2 %vm457_vm3, %v2491_v63 }
 0x83c   :  { %2962 = vmatpush.msra.mxu2 %v2569_v4 }
 0x83d   :  { %v2538_v13 = vpop.f32.mrf.mxu2  ;;  %v2580_v49 = vpop.f32.mrf.mxu3 }
 0x83e   :  { %v2539_v20 = vadd.f32 %v5466_v60, %v2538_v13  ;;  %v2581_v45 = vadd.f32 %v4662_v35, %v2580_v49 }
 0x840   :  { %4584 = vmatpush.xpose.msk.msrb.mxu3 %vm457_vm3, %v2539_v20  ;;  %3054 = vmatpush.msrb.mxu2 %v2581_v45 }
 0x843   :  { %4585 = vmatmul.msk.f32.vlgmr.msrb.gmra.mxu3 %vm457_vm3, %v2494_v26 }
 0x844   :  { %2985 = vmatpush.msra.mxu3 %v2572_v25 }
 0x845   :  { %v2583_v3 = vpop.f32.mrf.mxu3 }
 0x846   :  { %v2584_v14 = vadd.f32 %v4662_v35, %v2583_v3 }
 0x848   :  { %3077 = vmatpush.msrb.mxu3 %v2584_v14 }
 0x85a   :  { %v5495_v28 = vpop.f32.mrf.mxu0 }
 0x862   :  { %v5497_v32 = vpop.f32.mrf.mxu0 }
 0x86a   :  { %v5499_v5 = vpop.f32.mrf.mxu0 }
 0x872   :  { %v5501_v19 = vpop.f32.mrf.mxu0 }
 0x87a   :  { %v5503_v60 = vpop.f32.mrf.mxu0 }
 0x882   :  { %v5505_v22 = vpop.f32.mrf.mxu0 }
 0x88a   :  { %v5507_v33 = vpop.f32.mrf.mxu0 }
 0x890   :  { %v2635_v17 = vpop.f32.mrf.mxu1 }
 0x891   :  { %v2795_v36 = vmul.f32 0.5, %v2635_v17 }
 0x892   :  { %v5509_v27 = vpop.f32.mrf.mxu0 }
 0x893   :  { %v2803_v35 = vsel %vm5074_vm4, %v2795_v36, -1e+30 }
 0x894   :  { %v2813_v30 = vsel %vm684_vm5, %v2803_v35, -inf }
 0x895   :  { %2814 = vmax.xlane.f32.xlu1 %v2813_v30 }
 0x89a   :  { %v2609_v47 = vpop.f32.mrf.mxu0 }
 0x89b   :  { %v2794_v42 = vmul.f32 0.5, %v2609_v47 }
 0x89d   :  { %v2802_v21 = vsel %vm5074_vm4, %v2794_v42, -1e+30 }
 0x89e   :  { %v2661_v29 = vpop.f32.mrf.mxu2  ;;  %v2810_v43 = vsel %vm684_vm5, %v2802_v21, -inf }
 0x89f   :  { %v2796_v40 = vmul.f32 0.5, %v2661_v29  ;;  %2811 = vmax.xlane.f32.xlu0 %v2810_v43 }
 0x8a1   :  { %v2804_v44 = vsel %vm5074_vm4, %v2796_v40, -1e+30 }
 0x8a2   :  { %v2816_v46 = vsel %vm684_vm5, %v2804_v44, -inf }
 0x8a3   :  { %2817 = vmax.xlane.f32.xlu2 %v2816_v46 }
 0x8a6   :  { %v2687_v57 = vpop.f32.mrf.mxu3 }
 0x8a7   :  { %v2797_v52 = vmul.f32 0.5, %v2687_v57 }
 0x8a8   :  { %v2713_v34 = vpop.f32.mrf.mxu0 }
 0x8a9   :  { %v2798_v62 = vmul.f32 0.5, %v2713_v34  ;;  %v2805_v2 = vsel %vm5074_vm4, %v2797_v52, -1e+30 }
 0x8aa   :  { %v2819_v37 = vsel %vm684_vm5, %v2805_v2, -inf }
 0x8ab   :  { %2820 = vmax.xlane.f32.xlu0 %v2819_v37  ;;  %v2806_v4 = vsel %vm5074_vm4, %v2798_v62, -1e+30 }
 0x8ac   :  { %v2822_v63 = vsel %vm684_vm5, %v2806_v4, -inf }
 0x8ad   :  { %2823 = vmax.xlane.f32.xlu1 %v2822_v63 }
 0x8b0   :  { %v2739_v13 = vpop.f32.mrf.mxu1 }
 0x8b1   :  { %v2799_v49 = vmul.f32 0.5, %v2739_v13 }
 0x8b3   :  { %v2807_v16 = vsel %vm5074_vm4, %v2799_v49, -1e+30 }
 0x8b4   :  { %v2825_v20 = vsel %vm684_vm5, %v2807_v16, -inf }
 0x8b5   :  { %2826 = vmax.xlane.f32.xlu2 %v2825_v20 }
 0x8be   :  { %v2765_v45 = vpop.f32.mrf.mxu2 }
 0x8bf   :  { %v2800_v25 = vmul.f32 0.5, %v2765_v45 }
 0x8c1   :  { %v2808_v26 = vsel %vm5074_vm4, %v2800_v25, -1e+30 }
 0x8c2   :  { %v2828_v3 = vsel %vm684_vm5, %v2808_v26, -inf }
 0x8c3   :  { %2829 = vmax.xlane.f32.xlu0 %v2828_v3 }
 0x8c6   :  { %v2791_v14 = vpop.f32.mrf.mxu3 }
 0x8c7   :  { %v2801_v17 = vmul.f32 0.5, %v2791_v14 }
 0x8c9   :  { %v2809_v36 = vsel %vm5074_vm4, %v2801_v17, -1e+30 }
 0x8ca   :  { %v2831_v30 = vsel %vm684_vm5, %v2809_v36, -inf }
 0x8cb   :  { %2832 = vmax.xlane.f32.xlu1 %v2831_v30 }
 0x908   :  { %v2815_v47 = vpop.xlane.xlu1 %2814 }
 0x909   :  { %v2835_v42 = vsub.f32 %v2803_v35, %v2815_v47 }
 0x90b   :  { %v2844_v29 = vmul.f32 1.442695, %v2835_v42 }
 0x90d   :  { %4769 = vpow2.f32 %v2844_v29 }
 0x912   :  { %v2812_v43 = vpop.xlane.xlu0 %2811 }
 0x913   :  { %v4770_v40 = vpop.eup %4769  ;;  %v2834_v46 = vsub.f32 %v2802_v21, %v2812_v43 }
 0x914   :  { %v2861_v57 = vsel %vm684_vm5, %v4770_v40, 0.0 }
 0x915   :  { %v2842_v52 = vmul.f32 1.442695, %v2834_v46  ;;  %2862 = vadd.xlane.f32.xlu0 %v2861_v57 }
 0x916   :  { %v2818_v34 = vpop.xlane.xlu2 %2817 }
 0x917   :  { %4771 = vpow2.f32 %v2842_v52  ;;  %v2836_v62 = vsub.f32 %v2804_v44, %v2818_v34 }
 0x919   :  { %v2846_v37 = vmul.f32 1.442695, %v2836_v62 }
 0x91b   :  { %4773 = vpow2.f32 %v2846_v37 }
 0x91d   :  { %v4772_v61 = vpop.eup %4771 }
 0x91e   :  { %v2821_v63 = vpop.xlane.xlu0 %2820  ;;  %v2858_v13 = vsel %vm684_vm5, %v4772_v61, 0.0 }
 0x91f   :  { %v2837_v49 = vsub.f32 %v2805_v2, %v2821_v63  ;;  %2859 = vadd.xlane.f32.xlu2 %v2858_v13 }
 0x920   :  { %v2824_v35 = vpop.xlane.xlu1 %2823 }
 0x921   :  { %v4774_v20 = vpop.eup %4773  ;;  %v2848_v45 = vmul.f32 1.442695, %v2837_v49  ;;  %v2838_v25 = vsub.f32 %v2806_v4, %v2824_v35 }
 0x922   :  { %v2864_v21 = vsel %vm684_vm5, %v4774_v20, 0.0 }
 0x923   :  { %4775 = vpow2.f32 %v2848_v45  ;;  %v2850_v3 = vmul.f32 1.442695, %v2838_v25  ;;  %2865 = vadd.xlane.f32.xlu1 %v2864_v21 }
 0x925   :  { %4777 = vpow2.f32 %v2850_v3 }
 0x928   :  { %v2827_v14 = vpop.xlane.xlu2 %2826 }
 0x929   :  { %v4776_v44 = vpop.eup %4775  ;;  %v2839_v17 = vsub.f32 %v2807_v16, %v2827_v14 }
 0x92a   :  { %v2867_v30 = vsel %vm684_vm5, %v4776_v44, 0.0 }
 0x92b   :  { %v4778_v47 = vpop.eup %4777  ;;  %v2852_v42 = vmul.f32 1.442695, %v2839_v17  ;;  %2868 = vadd.xlane.f32.xlu2 %v2867_v30 }
 0x92c   :  { %v2870_v2 = vsel %vm684_vm5, %v4778_v47, 0.0 }
 0x92d   :  { %4779 = vpow2.f32 %v2852_v42  ;;  %2871 = vadd.xlane.f32.xlu0 %v2870_v2 }
 0x933   :  { %v4780_v29 = vpop.eup %4779 }
 0x934   :  { %v2873_v4 = vsel %vm684_vm5, %v4780_v29, 0.0 }
 0x935   :  { %2874 = vadd.xlane.f32.xlu1 %v2873_v4 }
 0x936   :  { %v2830_v43 = vpop.xlane.xlu0 %2829 }
 0x937   :  { %v2840_v46 = vsub.f32 %v2808_v26, %v2830_v43 }
 0x939   :  { %v2854_v57 = vmul.f32 1.442695, %v2840_v46 }
 0x93b   :  { %4781 = vpow2.f32 %v2854_v57 }
 0x93e   :  { %v2833_v52 = vpop.xlane.xlu1 %2832 }
 0x93f   :  { %v2841_v34 = vsub.f32 %v2809_v36, %v2833_v52 }
 0x941   :  { %v4782_v16 = vpop.eup %4781  ;;  %v2856_v62 = vmul.f32 1.442695, %v2841_v34 }
 0x942   :  { %v2876_v37 = vsel %vm684_vm5, %v4782_v16, 0.0 }
 0x943   :  { %4783 = vpow2.f32 %v2856_v62  ;;  %2877 = vadd.xlane.f32.xlu2 %v2876_v37  ;;  %v3082_v62 = vld [vmem:[#allocation4 + $0x290] sm:$0xf] }
 0x949   :  { %v4784_v63 = vpop.eup %4783 }
 0x94a   :  { %v2879_v13 = vsel %vm684_vm5, %v4784_v63, 0.0 }
 0x94b   :  { %2880 = vadd.xlane.f32.xlu0 %v2879_v13 }
 0x988   :  { %v2863_v49 = vpop.xlane.xlu0 %2862 }
 0x989   :  { %4785 = vrcp.f32 %v2863_v49 }
 0x98f   :  { %v4786_v35 = vpop.eup %4785 }
 0x990   :  { %v2891_v45 = vmul.f32 %v4786_v35, %v4770_v40 }
 0x992   :  { %4587 = vmatmul.msk.f32.vlgmr.msra.gmra.mxu1 %vm684_vm5, %v2891_v45  ;;  %v2860_v26 = vpop.xlane.xlu2 %2859 }
 0x993   :  { %4787 = vrcp.f32 %v2860_v26  ;;  %v5561_v26 = vld [vmem:[#allocation4 + $0x298] ss:$0 sm:$0xff] }
 0x996   :  { %v2866_v25 = vpop.xlane.xlu1 %2865 }
 0x997   :  { %4789 = vrcp.f32 %v2866_v25  ;;  %v1027_v25 = vadd.f32 %v5561_v26, %v5217_v6 }
 0x999   :  { %v4788_v36 = vpop.eup %4787 }
 0x99a   :  { %v2890_v21 = vmul.f32 %v4788_v36, %v4772_v61  ;;  %v1735_v36 = vadd.f32 %v5356_v50, %v1027_v25 }
 0x99c   :  { %4586 = vmatmul.msk.f32.vlgmr.msra.gmra.mxu0 %vm684_vm5, %v2890_v21  ;;  %v2443_v21 = vadd.f32 %v5495_v28, %v1735_v36  ;;  %v1029_v28 = vadd.f32 %v5561_v26, %v5221_v8  ;;  %v1030_v8 = vadd.f32 %v5561_v26, %v5223_v10 }
 0x99d   :  { %v4790_v3 = vpop.eup %4789  ;;  %4594 = vmatpush.msk.msra.mxu0 %vm982_vm6, %v3082_v62 }
 0x99e   :  { %v2892_v14 = vmul.f32 %v4790_v3, %v4774_v20  ;;  %v2869_v17 = vpop.xlane.xlu2 %2868 }
 0x99f   :  { %4791 = vrcp.f32 %v2869_v17  ;;  %v1028_v17 = vadd.f32 %v5561_v26, %v5219_v9  ;;  %v1737_v9 = vadd.f32 %v5360_v53, %v1029_v28 }
 0x9a0   :  { %v2872_v30 = vpop.xlane.xlu0 %2871  ;;  %4588 = vmatmul.msk.f32.vlgmr.msra.gmra.mxu2 %vm684_vm5, %v2892_v14 }
 0x9a1   :  { %4793 = vrcp.f32 %v2872_v30 }
 0x9a5   :  { %v4792_v42 = vpop.eup %4791 }
 0x9a6   :  { %v2893_v40 = vmul.f32 %v4792_v42, %v4776_v44  ;;  %v1736_v42 = vadd.f32 %v5358_v51, %v1028_v17  ;;  %v1031_v51 = vadd.f32 %v5561_v26, %v5225_v12  ;;  %v1032_v12 = vadd.f32 %v5561_v26, %v5230_v11 }
 0x9a7   :  { %v4794_v2 = vpop.eup %4793 }
 0x9a8   :  { %v2894_v4 = vmul.f32 %v4794_v2, %v4778_v47  ;;  %4589 = vmatmul.msk.f32.vlgmr.msra.gmra.mxu3 %vm684_vm5, %v2893_v40  ;;  %v2875_v43 = vpop.xlane.xlu1 %2874  ;;  %v2444_v6 = vadd.f32 %v5497_v32, %v1736_v42  ;;  %v1740_v10 = vadd.f32 %v5366_v55, %v1032_v12  ;;  %v1033_v55 = vadd.f32 %v5561_v26, %v5232_v18 }
 0x9a9   :  { %4795 = vrcp.f32 %v2875_v43  ;;  %4631 = vmatpush.msk.msra.mxu3 %vm982_vm6, %v3082_v62  ;;  %v2445_v43 = vadd.f32 %v5499_v5, %v1737_v9 }
 0x9aa   :  { %4590 = vmatmul.msk.f32.vlgmr.msrb.gmra.mxu0 %vm684_vm5, %v2894_v4 }
 0x9af   :  { %v4796_v61 = vpop.eup %4795 }
 0x9b0   :  { %v2895_v46 = vmul.f32 %v4796_v61, %v4780_v29  ;;  %v1739_v61 = vadd.f32 %v5364_v38, %v1031_v51 }
 0x9b2   :  { %4591 = vmatmul.msk.f32.vlgmr.msrb.gmra.mxu1 %vm684_vm5, %v2895_v46 }
 0x9b6   :  { %v2878_v20 = vpop.xlane.xlu2 %2877 }
 0x9b7   :  { %4797 = vrcp.f32 %v2878_v20 }
 0x9bd   :  { %v4798_v57 = vpop.eup %4797 }
 0x9be   :  { %v2896_v52 = vmul.f32 %v4798_v57, %v4782_v16  ;;  %v2881_v34 = vpop.xlane.xlu0 %2880  ;;  %v1738_v57 = vadd.f32 %v5362_v54, %v1030_v8  ;;  %v2448_v54 = vadd.f32 %v5505_v22, %v1740_v10 }
 0x9bf   :  { %4799 = vrcp.f32 %v2881_v34 }
 0x9c0   :  { %4592 = vmatmul.msk.f32.vlgmr.msrb.gmra.mxu2 %vm684_vm5, %v2896_v52  ;;  %v2446_v38 = vadd.f32 %v5501_v19, %v1738_v57  ;;  %v1741_v19 = vadd.f32 %v5368_v39, %v1033_v55 }
 0x9c5   :  { %v4800_v44 = vpop.eup %4799 }
 0x9c6   :  { %v2897_v47 = vmul.f32 %v4800_v44, %v4784_v63 }
 0x9c8   :  { %4593 = vmatmul.msk.f32.vlgmr.msrb.gmra.mxu3 %vm684_vm5, %v2897_v47 }
 0xa0f   :  { %v2941_v37 = vpop.f32.mrf.mxu1 }
 0xa19   :  { %v2918_v29 = vpop.f32.mrf.mxu0 }
 0xa1a   :  { %4595 = vmatmul.msk.f32.vlgmr.msra.gmra.mxu0 %vm457_vm3, %v2918_v29 }
 0xa22   :  { %4596 = vmatmul.msk.f32.gmra.mxu0 %vm457_vm3, %v2941_v37 }
 0xa23   :  { %v2964_v13 = vpop.f32.mrf.mxu2 }
 0xa27   :  { %v3010_v16 = vpop.f32.mrf.mxu0 }
 0xa28   :  { %4599 = vmatmul.msk.f32.vlgmr.msra.gmra.mxu3 %vm457_vm3, %v3010_v16  ;;  %v2449_v16 = vadd.f32 %v5507_v33, %v1741_v19  ;;  %v1034_v33 = vadd.f32 %v5561_v26, %v5237_v24 }
 0xa2a   :  { %4597 = vmatmul.msk.f32.gmra.mxu0 %vm457_vm3, %v2964_v13 }
 0xa2b   :  { %v2987_v49 = vpop.f32.mrf.mxu3 }
 0xa2f   :  { %v3033_v63 = vpop.f32.mrf.mxu1 }
 0xa30   :  { %4600 = vmatmul.msk.f32.gmra.mxu3 %vm457_vm3, %v3033_v63 }
 0xa32   :  { %4598 = vmatmul.msk.f32.gmra.mxu0 %vm457_vm3, %v2987_v49  ;;  %v4920_v49 = vmov 16.0  }
 0xa33   :  { %4801 = vrcp.f32 %v4920_v49 }
 0xa43   :  { %v3056_v35 = vpop.f32.mrf.mxu2 }
 0xa44   :  { %4601 = vmatmul.msk.f32.gmra.mxu3 %vm457_vm3, %v3056_v35 }
 0xa4b   :  { %v3079_v45 = vpop.f32.mrf.mxu3 }
 0xa4c   :  { %4602 = vmatmul.msk.f32.gmra.mxu3 %vm457_vm3, %v3079_v45 }
 0xa97   :  { %v3127_v3 = vpop.f32.mrf.mxu0 }
 0xa98   :  { %v3151_v14 = vadd.f32 %v3127_v3, %v2443_v21 }
 0xa9a   :  { %v5570_v30 = vadd.f32 %v3151_v14, %v4969_v7 }
 0xa9c   :  { %v3167_v40 = vsel %vm301_vm2, %v5570_v30, 0.0 }
 0xa9d   :  { %3168 = vadd.xlane.f32.xlu1 %v3167_v40 }
 0xa9f   :  { %v3130_v2 = vpop.f32.mrf.mxu0 }
 0xaa0   :  { %v3152_v50 = vadd.f32 %v3130_v2, %v2444_v6 }
 0xaa2   :  { %v5579_v4 = vadd.f32 %v3152_v50, %v4976_v15  ;;  %v2447_v15 = vadd.f32 %v5503_v60, %v1739_v61 }
 0xaa4   :  { %v3170_v7 = vsel %vm301_vm2, %v5579_v4, 0.0 }
 0xaa5   :  { %3171 = vadd.xlane.f32.xlu2 %v3170_v7 }
 0xaa7   :  { %v3133_v32 = vpop.f32.mrf.mxu0 }
 0xaa8   :  { %v3153_v46 = vadd.f32 %v3133_v32, %v2445_v43 }
 0xaaa   :  { %v3161_v53 = vadd.f32 %v3153_v46, %v4983_v23 }
 0xaab   :  { %v3139_v20 = vpop.f32.mrf.mxu3 }
 0xaac   :  { %v3155_v52 = vadd.f32 %v3139_v20, %v2447_v15  ;;  %v3173_v34 = vsel %vm301_vm2, %v3161_v53, 0.0 }
 0xaad   :  { %3174 = vadd.xlane.f32.xlu0 %v3173_v34 }
 0xaae   :  { %v3163_v5 = vadd.f32 %v3155_v52, %v4997_v41 }
 0xaaf   :  { %v3136_v44 = vpop.f32.mrf.mxu0 }
 0xab0   :  { %v3154_v60 = vadd.f32 %v3136_v44, %v2446_v38  ;;  %v3179_v23 = vsel %vm301_vm2, %v3163_v5, 0.0 }
 0xab1   :  { %3180 = vadd.xlane.f32.xlu2 %v3179_v23 }
 0xab2   :  { %v3162_v47 = vadd.f32 %v3154_v60, %v4990_v31 }
 0xab3   :  { %v3142_v62 = vpop.f32.mrf.mxu3 }
 0xab4   :  { %v3156_v29 = vadd.f32 %v3142_v62, %v2448_v54  ;;  %v3176_v37 = vsel %vm301_vm2, %v3162_v47, 0.0  ;;  %v3373_v62 = vld [vmem:[#allocation6 + $0x18] sm:$0xff] }
 0xab5   :  { %3177 = vadd.xlane.f32.xlu1 %v3176_v37  ;;  %3460 = vmatpush.msra.mxu2 %v3373_v62  ;;  %v3371_v37 = vld [vmem:[#allocation6 + $0x8] sm:$0xff] }
 0xab6   :  { %v3164_v11 = vadd.f32 %v3156_v29, %v5004_v48  ;;  %v4802_v48 = vpop.eup %4801  ;;  %v3370_v29 = vld [vmem:[#allocation6] sm:$0xff] }
 0xab7   :  { %v3192_v35 = vmul.f32 16.0, %v4802_v48  ;;  %vm3196_vm7 = vweird.f32 %v4802_v48  ;;  %3461 = vmatpush.msra.mxu2 %v3371_v37 }
 0xab8   :  { %v3182_v41 = vsel %vm301_vm2, %v3164_v11, 0.0 }
 0xab9   :  { %3183 = vadd.xlane.f32.xlu0 %v3182_v41  ;;  %v3193_v45 = vsub.f32 1.0, %v3192_v35 }
 0xabb   :  { %v3194_v25 = vmul.f32 %v4802_v48, %v3193_v45 }
 0xabd   :  { %v3195_v36 = vadd.f32 %v4802_v48, %v3194_v25 }
 0xabf   :  { %v5611_v18 = vsel %vm3196_vm7, %v4802_v48, %v3195_v36 }
 0xac7   :  { %v3145_v22 = vpop.f32.mrf.mxu3 }
 0xac8   :  { %v3157_v13 = vadd.f32 %v3145_v22, %v2449_v16 }
 0xaca   :  { %v3165_v31 = vadd.f32 %v3157_v13, %v5011_v56  ;;  %v1742_v56 = vadd.f32 %v5373_v0, %v1034_v33 }
 0xacc   :  { %v3185_v63 = vsel %vm301_vm2, %v3165_v31, 0.0  ;;  %v2450_v17 = vadd.f32 %v5509_v27, %v1742_v56 }
 0xacd   :  { %3186 = vadd.xlane.f32.xlu2 %v3185_v63 }
 0xacf   :  { %v3148_v14 = vpop.f32.mrf.mxu3 }
 0xad0   :  { %v3158_v40 = vadd.f32 %v3148_v14, %v2450_v17 }
 0xad2   :  { %v3166_v0 = vadd.f32 %v3158_v40, %v5018_v1 }
 0xad4   :  { %v3188_v50 = vsel %vm301_vm2, %v3166_v0, 0.0 }
 0xb10   :  { %v3169_v39 = vpop.xlane.xlu1 %3168 }
 0xb11   :  { %v3198_v21 = vmul.f32 %v5611_v18, %v3169_v39 }
 0xb13   :  { %v5618_v3 = vsub.f32 %v5570_v30, %v3198_v21 }
 0xb15   :  { %v3214_v42 = vmul.f32 %v5618_v3, %v5618_v3 }
 0xb17   :  { %v3222_v6 = vsel %vm301_vm2, %v3214_v42, 0.0 }
 0xb18   :  { %v3172_v2 = vpop.xlane.xlu2 %3171  ;;  %3223 = vadd.xlane.f32.xlu1 %v3222_v6  ;;  %v5672_v6 = vld [vmem:[#allocation4 + $0x2a0] ss:$0 sm:$0xff] }
 0xb19   :  { %v3199_v24 = vmul.f32 %v5611_v18, %v3172_v2 }
 0xb1b   :  { %v5626_v26 = vsub.f32 %v5579_v4, %v3199_v24 }
 0xb1d   :  { %v3215_v30 = vmul.f32 %v5626_v26, %v5626_v26 }
 0xb1f   :  { %v3225_v27 = vsel %vm301_vm2, %v3215_v30, 0.0  ;;  %v5675_v30 = vld [vmem:[#allocation4 + $0x2a8] ss:$0 sm:$0xff] }
 0xb20   :  { %v3175_v28 = vpop.xlane.xlu0 %3174  ;;  %3226 = vadd.xlane.f32.xlu0 %v3225_v27  ;;  %3189 = vadd.xlane.f32.xlu1 %v3188_v50 }
 0xb21   :  { %v3200_v9 = vmul.f32 %v5611_v18, %v3175_v28 }
 0xb23   :  { %v5634_v7 = vsub.f32 %v3161_v53, %v3200_v9 }
 0xb24   :  { %v3181_v51 = vpop.xlane.xlu2 %3180 }
 0xb25   :  { %v3202_v4 = vmul.f32 %v5611_v18, %v3181_v51  ;;  %v3216_v1 = vmul.f32 %v5634_v7, %v5634_v7 }
 0xb27   :  { %v5639_v43 = vsub.f32 %v3163_v5, %v3202_v4  ;;  %v3228_v32 = vsel %vm301_vm2, %v3216_v1, 0.0 }
 0xb28   :  { %3229 = vadd.xlane.f32.xlu2 %v3228_v32  ;;  %v3178_v61 = vpop.xlane.xlu1 %3177 }
 0xb29   :  { %v3201_v46 = vmul.f32 %v5611_v18, %v3178_v61  ;;  %v3218_v8 = vmul.f32 %v5639_v43, %v5639_v43 }
 0xb2b   :  { %v5645_v15 = vsub.f32 %v3162_v47, %v3201_v46  ;;  %v3234_v53 = vsel %vm301_vm2, %v3218_v8, 0.0  ;;  %v3372_v47 = vld [vmem:[#allocation6 + $0x10] sm:$0xff] }
 0xb2c   :  { %v3184_v20 = vpop.xlane.xlu0 %3183  ;;  %3235 = vadd.xlane.f32.xlu1 %v3234_v53  ;;  %3419 = vmatpush.msra.mxu1 %v3372_v47 }
 0xb2d   :  { %v3203_v57 = vmul.f32 %v5611_v18, %v3184_v20  ;;  %v3217_v52 = vmul.f32 %v5645_v15, %v5645_v15 }
 0xb2e   :  { %3420 = vmatpush.msra.mxu1 %v3370_v29 }
 0xb2f   :  { %v5651_v34 = vsub.f32 %v3164_v11, %v3203_v57  ;;  %v3231_v12 = vsel %vm301_vm2, %v3217_v52, 0.0 }
 0xb30   :  { %3232 = vadd.xlane.f32.xlu0 %v3231_v12 }
 0xb31   :  { %v3219_v38 = vmul.f32 %v5651_v34, %v5651_v34 }
 0xb33   :  { %v3237_v5 = vsel %vm301_vm2, %v3219_v38, 0.0 }
 0xb34   :  { %3238 = vadd.xlane.f32.xlu2 %v3237_v5 }
 0xb40   :  { %v3187_v44 = vpop.xlane.xlu2 %3186 }
 0xb41   :  { %v3204_v10 = vmul.f32 %v5611_v18, %v3187_v44 }
 0xb43   :  { %v5658_v60 = vsub.f32 %v3165_v31, %v3204_v10 }
 0xb45   :  { %v3220_v23 = vmul.f32 %v5658_v60, %v5658_v60 }
 0xb47   :  { %v3240_v54 = vsel %vm301_vm2, %v3220_v23, 0.0 }
 0xb48   :  { %3241 = vadd.xlane.f32.xlu0 %v3240_v54 }
 0xb8b   :  { %v3224_v11 = vpop.xlane.xlu1 %3223 }
 0xb8c   :  { %v3246_v41 = vmul.f32 %v3224_v11, %v5611_v18 }
 0xb8e   :  { %v3254_v55 = vadd.f32 1e-05, %v3246_v41 }
 0xb90   :  { %4803 = vrsqrt.f32 %v3254_v55  ;;  %vm3268_vm9 = vweird.f32 %v3254_v55 }
 0xb93   :  { %v3227_v19 = vpop.xlane.xlu0 %3226  ;;  %v3190_v16 = vpop.xlane.xlu1 %3189 }
 0xb94   :  { %v3247_v22 = vmul.f32 %v3227_v19, %v5611_v18  ;;  %v3205_v13 = vmul.f32 %v5611_v18, %v3190_v16 }
 0xb96   :  { %v4804_v31 = vpop.eup %4803  ;;  %v3255_v63 = vadd.f32 1e-05, %v3247_v22  ;;  %v5666_v49 = vsub.f32 %v3166_v0, %v3205_v13 }
 0xb97   :  { %v3263_v48 = vmul.f32 %v4804_v31, %v3254_v55  ;;  %vm3269_vm8 = vweird.f32 %v4804_v31 }
 0xb98   :  { %4805 = vrsqrt.f32 %v3255_v63  ;;  %v3221_v35 = vmul.f32 %v5666_v49, %v5666_v49  ;;  %vm3270_vm10 = vmor %vm3268_vm9, %vm3269_vm8  ;;  %vm3278_vm12 = vweird.f32 %v3255_v63 }
 0xb99   :  { %v3264_v45 = vmul.f32 %v4804_v31, %v3263_v48 }
 0xb9a   :  { %v3243_v25 = vsel %vm301_vm2, %v3221_v35, 0.0 }
 0xb9b   :  { %v3265_v36 = vmul.f32 0.5, %v3264_v45  ;;  %v3230_v39 = vpop.xlane.xlu2 %3229  ;;  %3244 = vadd.xlane.f32.xlu1 %v3243_v25 }
 0xb9c   :  { %v3248_v33 = vmul.f32 %v3230_v39, %v5611_v18 }
 0xb9d   :  { %v3266_v21 = vsub.f32 1.5, %v3265_v36 }
 0xb9e   :  { %v4806_v56 = vpop.eup %4805  ;;  %v3256_v14 = vadd.f32 1e-05, %v3248_v33  ;;  %v3517_v33 = vld [vmem:[#allocation4 + $0x320] sm:$0xff] }
 0xb9f   :  { %v3267_v17 = vmul.f32 %v4804_v31, %v3266_v21  ;;  %v3273_v42 = vmul.f32 %v4806_v56, %v3255_v63  ;;  %v3236_v40 = vpop.xlane.xlu1 %3235  ;;  %vm3279_vm11 = vweird.f32 %v4806_v56 }
 0xba0   :  { %4807 = vrsqrt.f32 %v3256_v14  ;;  %v3250_v2 = vmul.f32 %v3236_v40, %v5611_v18  ;;  %vm3280_vm13 = vmor %vm3278_vm12, %vm3279_vm11  ;;  %vm3288_vm15 = vweird.f32 %v3256_v14 }
 0xba1   :  { %v3271_v24 = vsel %vm3270_vm10, %v4804_v31, %v3267_v17  ;;  %v3274_v0 = vmul.f32 %v4806_v56, %v3273_v42 }
 0xba2   :  { %v3342_v27 = vmul.f32 %v3271_v24, %v5618_v3  ;;  %v5678_v50 = vadd.f32 1e-05, %v3250_v2 }
 0xba3   :  { %v3275_v28 = vmul.f32 0.5, %v3274_v0  ;;  %v3233_v9 = vpop.xlane.xlu0 %3232 }
 0xba4   :  { %v3352_v51 = vmul.f32 %v5672_v6, %v3342_v27  ;;  %4809 = vrsqrt.f32 %v5678_v50  ;;  %v3249_v4 = vmul.f32 %v3233_v9, %v5611_v18  ;;  %vm3308_vm8 = vweird.f32 %v5678_v50 }
 0xba5   :  { %v3276_v1 = vsub.f32 1.5, %v3275_v28 }
 0xba6   :  { %v4808_v32 = vpop.eup %4807  ;;  %v5684_v61 = vadd.f32 %v5675_v30, %v3352_v51  ;;  %v3257_v46 = vadd.f32 1e-05, %v3249_v4 }
 0xba7   :  { %v3277_v8 = vmul.f32 %v4806_v56, %v3276_v1  ;;  %v3283_v3 = vmul.f32 %v4808_v32, %v3256_v14  ;;  %v3239_v53 = vpop.xlane.xlu2 %3238  ;;  %vm3289_vm14 = vweird.f32 %v4808_v32 }
 0xba8   :  { %4811 = vrsqrt.f32 %v3257_v46  ;;  %v3251_v20 = vmul.f32 %v3239_v53, %v5611_v18  ;;  %4603 = vmatmul.msk.f32.vlgmr.msra.gmra.mxu1 %vm301_vm2, %v5684_v61  ;;  %4611 = vmatmul.msk.f32.vlgmr.msra.gmra.mxu2 %vm301_vm2, %v5684_v61  ;;  %vm3290_vm0 = vmor %vm3288_vm15, %vm3289_vm14  ;;  %vm3298_vm4 = vweird.f32 %v3257_v46 }
 0xba9   :  { %v3281_v57 = vsel %vm3280_vm13, %v4806_v56, %v3277_v8  ;;  %v3284_v52 = vmul.f32 %v4808_v32, %v3283_v3 }
 0xbaa   :  { %v4810_v12 = vpop.eup %4809  ;;  %v3343_v38 = vmul.f32 %v3281_v57, %v5626_v26  ;;  %v3259_v5 = vadd.f32 1e-05, %v3251_v20 }
 0xbab   :  { %v3285_v44 = vmul.f32 0.5, %v3284_v52  ;;  %v3303_v10 = vmul.f32 %v4810_v12, %v5678_v50  ;;  %vm3309_vm5 = vweird.f32 %v4810_v12 }
 0xbac   :  { %4813 = vrsqrt.f32 %v3259_v5  ;;  %v3353_v23 = vmul.f32 %v5672_v6, %v3343_v38  ;;  %vm3310_vm9 = vmor %vm3308_vm8, %vm3309_vm5  ;;  %vm3318_vm11 = vweird.f32 %v3259_v5  ;;  %v3515_v38 = vld [vmem:[#allocation4 + $0x310] sm:$0xff] }
 0xbad   :  { %v3286_v54 = vsub.f32 1.5, %v3285_v44  ;;  %v3304_v47 = vmul.f32 %v4810_v12, %v3303_v10  ;;  %v3514_v44 = vld [vmem:[#allocation4 + $0x308] sm:$0xff]  ;;  %v3533_v10 = vld [vmem:[#allocation4 + $0x3a0] sm:$0xff] }
 0xbae   :  { %v4812_v62 = vpop.eup %4811  ;;  %v5695_v29 = vadd.f32 %v5675_v30, %v3353_v23  ;;  %v3532_v23 = vld [vmem:[#allocation4 + $0x398] sm:$0xff] }
 0xbaf   :  { %v3287_v37 = vmul.f32 %v4808_v32, %v3286_v54  ;;  %v3305_v11 = vmul.f32 0.5, %v3304_v47  ;;  %v3293_v41 = vmul.f32 %v4812_v62, %v3257_v46  ;;  %vm3299_vm1 = vweird.f32 %v4812_v62  ;;  %v3512_v54 = vld [vmem:[#allocation4 + $0x2f8] sm:$0xff]  ;;  %v3531_v47 = vld [vmem:[#allocation4 + $0x390] sm:$0xff] }
 0xbb0   :  { %4604 = vmatmul.msk.f32.gmra.mxu1 %vm301_vm2, %v5695_v29  ;;  %4612 = vmatmul.msk.f32.gmra.mxu2 %vm301_vm2, %v5695_v29  ;;  %vm3300_vm7 = vmor %vm3298_vm4, %vm3299_vm1 }
 0xbb1   :  { %v3291_v26 = vsel %vm3290_vm0, %v4808_v32, %v3287_v37  ;;  %v3294_v55 = vmul.f32 %v4812_v62, %v3293_v41  ;;  %v3306_v22 = vsub.f32 1.5, %v3305_v11  ;;  %v3530_v37 = vld [vmem:[#allocation4 + $0x388] sm:$0xff]  ;;  %v3529_v41 = vld [vmem:[#allocation4 + $0x380] sm:$0xff] }
 0xbb2   :  { %v4814_v19 = vpop.eup %4813  ;;  %v3344_v16 = vmul.f32 %v3291_v26, %v5634_v7  ;;  %v3518_v7 = vld [vmem:[#allocation4 + $0x328] sm:$0xff]  ;;  %v3509_v26 = vld [vmem:[#allocation4 + $0x2e0] sm:$0xff] }
 0xbb3   :  { %v3295_v13 = vmul.f32 0.5, %v3294_v55  ;;  %v3313_v31 = vmul.f32 %v4814_v19, %v3259_v5  ;;  %v3307_v25 = vmul.f32 %v4810_v12, %v3306_v22  ;;  %3537 = vmatpush.msrb.mxu3 %v3518_v7  ;;  %vm3319_vm10 = vweird.f32 %v4814_v19  ;;  %v3534_v5 = vld [vmem:[#allocation4 + $0x3a8] sm:$0xff]  ;;  %v3528_v55 = vld [vmem:[#allocation4 + $0x378] sm:$0xff]  ;;  %v3507_v22 = vld [vmem:[#allocation4 + $0x2d0] sm:$0xff] }
 0xbb4   :  { %v3354_v63 = vmul.f32 %v5672_v6, %v3344_v16  ;;  %vm3320_vm12 = vmor %vm3318_vm11, %vm3319_vm10  ;;  %3578 = vmatpush.msrb.mxu0 %v3534_v5  ;;  %v3510_v11 = vld [vmem:[#allocation4 + $0x2e8] sm:$0xff]  ;;  %v3527_v16 = vld [vmem:[#allocation4 + $0x370] sm:$0xff] }
 0xbb5   :  { %v3296_v48 = vsub.f32 1.5, %v3295_v13  ;;  %v3314_v35 = vmul.f32 %v4814_v19, %v3313_v31  ;;  %v3311_v14 = vsel %vm3310_vm9, %v4810_v12, %v3307_v25  ;;  %3538 = vmatpush.msrb.mxu3 %v3517_v33  ;;  %v3516_v12 = vld [vmem:[#allocation4 + $0x318] sm:$0xff]  ;;  %v3526_v13 = vld [vmem:[#allocation4 + $0x368] sm:$0xff]  ;;  %v3521_v33 = vld [vmem:[#allocation4 + $0x340] sm:$0xff] }
 0xbb6   :  { %v5704_v45 = vadd.f32 %v5675_v30, %v3354_v63  ;;  %v3346_v24 = vmul.f32 %v3311_v14, %v5639_v43  ;;  %3579 = vmatpush.msrb.mxu0 %v3533_v10  ;;  %v3506_v31 = vld [vmem:[#allocation4 + $0x2c8] sm:$0xff]  ;;  %v3525_v63 = vld [vmem:[#allocation4 + $0x360] sm:$0xff]  ;;  %v3504_v25 = vld [vmem:[#allocation4 + $0x2b8] sm:$0xff] }
 0xbb7   :  { %v3297_v36 = vmul.f32 %v4812_v62, %v3296_v48  ;;  %v3315_v39 = vmul.f32 0.5, %v3314_v35  ;;  %3539 = vmatpush.msrb.mxu3 %v3516_v12  ;;  %v3505_v48 = vld [vmem:[#allocation4 + $0x2c0] sm:$0xff]  ;;  %v3524_v35 = vld [vmem:[#allocation4 + $0x358] sm:$0xff]  ;;  %v3522_v7 = vld [vmem:[#allocation4 + $0x348] sm:$0xff] }
 0xbb8   :  { %4605 = vmatmul.msk.f32.gmra.mxu1 %vm301_vm2, %v5704_v45  ;;  %4613 = vmatmul.msk.f32.gmra.mxu2 %vm301_vm2, %v5704_v45 }
 0xbb9   :  { %v3301_v21 = vsel %vm3300_vm7, %v4812_v62, %v3297_v36  ;;  %v3316_v17 = vsub.f32 1.5, %v3315_v39  ;;  %3540 = vmatpush.msrb.mxu3 %v3515_v38  ;;  %3580 = vmatpush.msrb.mxu0 %v3532_v23  ;;  %v3511_v62 = vld [vmem:[#allocation4 + $0x2f0] sm:$0xff] }
 0xbba   :  { %v3345_v56 = vmul.f32 %v3301_v21, %v5645_v15  ;;  %v3356_v15 = vmul.f32 %v5672_v6, %v3346_v24  ;;  %v3523_v36 = vld [vmem:[#allocation4 + $0x350] sm:$0xff]  ;;  %v3520_v21 = vld [vmem:[#allocation4 + $0x338] sm:$0xff] }
 0xbbb   :  { %v3242_v42 = vpop.xlane.xlu0 %3241  ;;  %v3317_v50 = vmul.f32 %v4814_v19, %v3316_v17  ;;  %3541 = vmatpush.msrb.mxu3 %v3514_v44  ;;  %3581 = vmatpush.msrb.mxu0 %v3531_v47  ;;  %v3503_v39 = vld [vmem:[#allocation4 + $0x2b0] sm:$0xff] }
 0xbbc   :  { %v3252_v40 = vmul.f32 %v3242_v42, %v5611_v18  ;;  %v3355_v2 = vmul.f32 %v5672_v6, %v3345_v56  ;;  %v5725_v51 = vadd.f32 %v5675_v30, %v3356_v15  ;;  %v3519_v17 = vld [vmem:[#allocation4 + $0x330] sm:$0xff] }
 0xbbd   :  { %v3321_v28 = vsel %vm3320_vm12, %v4814_v19, %v3317_v50  ;;  %3582 = vmatpush.msrb.mxu0 %v3530_v37  ;;  %v3508_v19 = vld [vmem:[#allocation4 + $0x2d8] sm:$0xff]  ;;  %v3375_v50 = vld [vmem:[#allocation6 + $0x20] ss:$8 sm:$0x3] }
 0xbbe   :  { %v3260_v0 = vadd.f32 1e-05, %v3252_v40  ;;  %v5716_v27 = vadd.f32 %v5675_v30, %v3355_v2  ;;  %v3347_v43 = vmul.f32 %v3321_v28, %v5651_v34 }
 0xbbf   :  { %3583 = vmatpush.msrb.mxu0 %v3529_v41 }
 0xbc0   :  { %4815 = vrsqrt.f32 %v3260_v0  ;;  %4606 = vmatmul.msk.f32.gmra.mxu1 %vm301_vm2, %v5716_v27  ;;  %4614 = vmatmul.msk.f32.gmra.mxu2 %vm301_vm2, %v5716_v27  ;;  %v3357_v32 = vmul.f32 %v5672_v6, %v3347_v43  ;;  %vm3328_vm14 = vweird.f32 %v3260_v0 }
 0xbc1   :  { %3584 = vmatpush.msrb.mxu0 %v3528_v55 }
 0xbc2   :  { %v5733_v3 = vadd.f32 %v5675_v30, %v3357_v32 }
 0xbc3   :  { %3585 = vmatpush.msrb.mxu0 %v3527_v16 }
 0xbc5   :  { %3586 = vmatpush.msrb.mxu0 %v3526_v13 }
 0xbc6   :  { %v4816_v9 = vpop.eup %4815 }
 0xbc7   :  { %v3323_v4 = vmul.f32 %v4816_v9, %v3260_v0  ;;  %vm3329_vm13 = vweird.f32 %v4816_v9  ;;  %3587 = vmatpush.msrb.mxu0 %v3525_v63 }
 0xbc8   :  { %4607 = vmatmul.msk.f32.gmra.mxu1 %vm301_vm2, %v5725_v51  ;;  %4615 = vmatmul.msk.f32.gmra.mxu2 %vm301_vm2, %v5725_v51  ;;  %vm3330_vm15 = vmor %vm3328_vm14, %vm3329_vm13 }
 0xbc9   :  { %v3324_v1 = vmul.f32 %v4816_v9, %v3323_v4  ;;  %3588 = vmatpush.msrb.mxu0 %v3524_v35 }
 0xbcb   :  { %v3325_v46 = vmul.f32 0.5, %v3324_v1  ;;  %3589 = vmatpush.msrb.mxu0 %v3523_v36 }
 0xbcd   :  { %v3326_v8 = vsub.f32 1.5, %v3325_v46  ;;  %3590 = vmatpush.msrb.mxu0 %v3522_v7 }
 0xbcf   :  { %v3327_v34 = vmul.f32 %v4816_v9, %v3326_v8  ;;  %3591 = vmatpush.msrb.mxu0 %v3521_v33 }
 0xbd0   :  { %4608 = vmatmul.msk.f32.gmra.mxu1 %vm301_vm2, %v5733_v3  ;;  %4616 = vmatmul.msk.f32.gmra.mxu2 %vm301_vm2, %v5733_v3 }
 0xbd1   :  { %v3331_v53 = vsel %vm3330_vm15, %v4816_v9, %v3327_v34  ;;  %3592 = vmatpush.msrb.mxu0 %v3520_v21  ;;  %v5749_v9 = vperm.slane %v3375_v50, 0  ;;  %v5754_v34 = vperm.slane %v3375_v50, 1 }
 0xbd2   :  { %v3348_v20 = vmul.f32 %v3331_v53, %v5658_v60  ;;  %v3513_v60 = vld [vmem:[#allocation4 + $0x300] sm:$0xff] }
 0xbd3   :  { %3542 = vmatpush.msrb.mxu3 %v3513_v60  ;;  %3593 = vmatpush.msrb.mxu0 %v3519_v17 }
 0xbd4   :  { %v3358_v57 = vmul.f32 %v5672_v6, %v3348_v20 }
 0xbd5   :  { %3543 = vmatpush.msrb.mxu3 %v3512_v54 }
 0xbd6   :  { %v5742_v52 = vadd.f32 %v5675_v30, %v3358_v57 }
 0xbd7   :  { %3544 = vmatpush.msrb.mxu3 %v3511_v62 }
 0xbd8   :  { %4609 = vmatmul.msk.f32.gmra.mxu1 %vm301_vm2, %v5742_v52  ;;  %4617 = vmatmul.msk.f32.gmra.mxu2 %vm301_vm2, %v5742_v52 }
 0xbd9   :  { %3545 = vmatpush.msrb.mxu3 %v3510_v11 }
 0xbdb   :  { %3546 = vmatpush.msrb.mxu3 %v3509_v26 }
 0xbdd   :  { %3547 = vmatpush.msrb.mxu3 %v3508_v19 }
 0xbdf   :  { %3548 = vmatpush.msrb.mxu3 %v3507_v22 }
 0xbe1   :  { %3549 = vmatpush.msrb.mxu3 %v3506_v31 }
 0xbe3   :  { %3550 = vmatpush.msrb.mxu3 %v3505_v48 }
 0xbe5   :  { %3551 = vmatpush.msrb.mxu3 %v3504_v25 }
 0xbe7   :  { %3552 = vmatpush.msrb.mxu3 %v3503_v39 }
 0xc0e   :  { %v3245_v56 = vpop.xlane.xlu1 %3244 }
 0xc0f   :  { %v3253_v14 = vmul.f32 %v3245_v56, %v5611_v18 }
 0xc11   :  { %v3261_v42 = vadd.f32 1e-05, %v3253_v14 }
 0xc13   :  { %4817 = vrsqrt.f32 %v3261_v42  ;;  %vm3338_vm1 = vweird.f32 %v3261_v42 }
 0xc19   :  { %v4818_v40 = vpop.eup %4817 }
 0xc1a   :  { %v3333_v2 = vmul.f32 %v4818_v40, %v3261_v42  ;;  %vm3339_vm0 = vweird.f32 %v4818_v40 }
 0xc1b   :  { %vm3340_vm4 = vmor %vm3338_vm1, %vm3339_vm0 }
 0xc1c   :  { %v3334_v24 = vmul.f32 %v4818_v40, %v3333_v2 }
 0xc1e   :  { %v3335_v0 = vmul.f32 0.5, %v3334_v24 }
 0xc20   :  { %v3336_v15 = vsub.f32 1.5, %v3335_v0  ;;  %v4665_v0 = vld [vmem:[#allocation4 + $0x3b0] ss:$0 sm:$0xff] }
 0xc22   :  { %v3337_v28 = vmul.f32 %v4818_v40, %v3336_v15 }
 0xc24   :  { %v3341_v43 = vsel %vm3340_vm4, %v4818_v40, %v3337_v28 }
 0xc25   :  { %v3349_v4 = vmul.f32 %v3341_v43, %v5666_v49  ;;  %v3422_v1 = vpop.f32.mrf.mxu1 }
 0xc26   :  { %v3423_v32 = vadd.f32 %v3422_v1, %v5749_v9 }
 0xc27   :  { %v3359_v46 = vmul.f32 %v5672_v6, %v3349_v4 }
 0xc28   :  { %v3487_v8 = vmax.f32 %v3423_v32, 0.0 }
 0xc29   :  { %v5757_v53 = vadd.f32 %v5675_v30, %v3359_v46 }
 0xc2a   :  { %3553 = vmatmul.f32.vlgmr.msrb.gmra.mxu3 %v3487_v8 }
 0xc2b   :  { %4610 = vmatmul.msk.f32.gmra.mxu1 %vm301_vm2, %v5757_v53  ;;  %v3463_v20 = vpop.f32.mrf.mxu2  ;;  %4618 = vmatmul.msk.f32.gmra.mxu2 %vm301_vm2, %v5757_v53 }
 0xc2c   :  { %v3464_v49 = vadd.f32 %v3463_v20, %v5754_v34 }
 0xc2d   :  { %v3425_v57 = vpop.f32.mrf.mxu1 }
 0xc2e   :  { %v3488_v12 = vmax.f32 %v3464_v49, 0.0  ;;  %v3426_v6 = vadd.f32 %v3425_v57, %v5749_v9 }
 0xc30   :  { %v3489_v38 = vmax.f32 %v3426_v6, 0.0  ;;  %3594 = vmatmul.f32.vlgmr.msrb.gmra.mxu0 %v3488_v12 }
 0xc32   :  { %3556 = vmatmul.f32.gmra.mxu3 %v3489_v38 }
 0xc33   :  { %v3466_v5 = vpop.f32.mrf.mxu2 }
 0xc34   :  { %v3467_v30 = vadd.f32 %v3466_v5, %v5754_v34 }
 0xc35   :  { %v3428_v44 = vpop.f32.mrf.mxu1 }
 0xc36   :  { %v3490_v10 = vmax.f32 %v3467_v30, 0.0  ;;  %v3429_v60 = vadd.f32 %v3428_v44, %v5749_v9 }
 0xc38   :  { %v3491_v23 = vmax.f32 %v3429_v60, 0.0  ;;  %3597 = vmatmul.f32.gmra.mxu0 %v3490_v10 }
 0xc3a   :  { %3559 = vmatmul.f32.gmra.mxu3 %v3491_v23 }
 0xc3b   :  { %v3469_v54 = vpop.f32.mrf.mxu2 }
 0xc3c   :  { %v3470_v47 = vadd.f32 %v3469_v54, %v5754_v34 }
 0xc3d   :  { %v3431_v62 = vpop.f32.mrf.mxu1 }
 0xc3e   :  { %v3492_v37 = vmax.f32 %v3470_v47, 0.0  ;;  %v3432_v11 = vadd.f32 %v3431_v62, %v5749_v9 }
 0xc40   :  { %v3493_v41 = vmax.f32 %v3432_v11, 0.0  ;;  %3600 = vmatmul.f32.gmra.mxu0 %v3492_v37 }
 0xc42   :  { %3562 = vmatmul.f32.gmra.mxu3 %v3493_v41 }
 0xc43   :  { %v3472_v26 = vpop.f32.mrf.mxu2 }
 0xc44   :  { %v3473_v55 = vadd.f32 %v3472_v26, %v5754_v34 }
 0xc45   :  { %v3434_v19 = vpop.f32.mrf.mxu1 }
 0xc46   :  { %v3494_v16 = vmax.f32 %v3473_v55, 0.0  ;;  %v3435_v22 = vadd.f32 %v3434_v19, %v5749_v9 }
 0xc48   :  { %v3495_v13 = vmax.f32 %v3435_v22, 0.0  ;;  %3603 = vmatmul.f32.gmra.mxu0 %v3494_v16 }
 0xc4a   :  { %3565 = vmatmul.f32.gmra.mxu3 %v3495_v13 }
 0xc4b   :  { %v3475_v31 = vpop.f32.mrf.mxu2 }
 0xc4c   :  { %v3476_v63 = vadd.f32 %v3475_v31, %v5754_v34 }
 0xc4d   :  { %v3437_v48 = vpop.f32.mrf.mxu1 }
 0xc4e   :  { %v3496_v35 = vmax.f32 %v3476_v63, 0.0  ;;  %v3438_v25 = vadd.f32 %v3437_v48, %v5749_v9 }
 0xc50   :  { %v3497_v36 = vmax.f32 %v3438_v25, 0.0  ;;  %3606 = vmatmul.f32.gmra.mxu0 %v3496_v35 }
 0xc52   :  { %3568 = vmatmul.f32.gmra.mxu3 %v3497_v36 }
 0xc53   :  { %v3478_v39 = vpop.f32.mrf.mxu2 }
 0xc54   :  { %v3479_v7 = vadd.f32 %v3478_v39, %v5754_v34 }
 0xc55   :  { %v3440_v33 = vpop.f32.mrf.mxu1 }
 0xc56   :  { %v3498_v21 = vmax.f32 %v3479_v7, 0.0  ;;  %v3441_v56 = vadd.f32 %v3440_v33, %v5749_v9 }
 0xc58   :  { %v3499_v14 = vmax.f32 %v3441_v56, 0.0  ;;  %3609 = vmatmul.f32.gmra.mxu0 %v3498_v21 }
 0xc5a   :  { %3571 = vmatmul.f32.gmra.mxu3 %v3499_v14 }
 0xc5b   :  { %v3481_v17 = vpop.f32.mrf.mxu2 }
 0xc5c   :  { %v3482_v42 = vadd.f32 %v3481_v17, %v5754_v34 }
 0xc5e   :  { %v3500_v40 = vmax.f32 %v3482_v42, 0.0 }
 0xc60   :  { %3612 = vmatmul.f32.gmra.mxu0 %v3500_v40 }
 0xca8   :  { %v3443_v2 = vpop.f32.mrf.mxu1 }
 0xca9   :  { %v3444_v24 = vadd.f32 %v3443_v2, %v5749_v9 }
 0xcab   :  { %v3501_v50 = vmax.f32 %v3444_v24, 0.0 }
 0xcad   :  { %v3554_v15 = vpop.f32.mrf.mxu3  ;;  %3574 = vmatmul.f32.gmra.mxu3 %v3501_v50  ;;  %v3595_v28 = vpop.f32.mrf.mxu0 }
 0xcae   :  { %v3555_v43 = vadd.f32 %v4665_v0, %v3554_v15  ;;  %v3484_v4 = vpop.f32.mrf.mxu2 }
 0xcaf   :  { %v3485_v1 = vadd.f32 %v3484_v4, %v5754_v34 }
 0xcb0   :  { %v3596_v32 = vadd.f32 %v3595_v28, %v3555_v43 }
 0xcb1   :  { %v3502_v46 = vmax.f32 %v3485_v1, 0.0 }
 0xcb2   :  { %v3619_v25 = vadd.f32 %v3596_v32, %v5684_v61 }
 0xcb3   :  { %3615 = vmatmul.f32.gmra.mxu0 %v3502_v46 }
 0xcb4   :  { %v3627_v36 = vsel %vm301_vm2, %v3619_v25, 0.0 }
 0xcb5   :  { %v3557_v8 = vpop.f32.mrf.mxu3  ;;  %v3598_v20 = vpop.f32.mrf.mxu0 }
 0xcb6   :  { %v3558_v49 = vadd.f32 %v4665_v0, %v3557_v8 }
 0xcb8   :  { %v3599_v57 = vadd.f32 %v3598_v20, %v3558_v49 }
 0xcba   :  { %v3620_v14 = vadd.f32 %v3599_v57, %v5695_v29 }
 0xcbc   :  { %v3630_v61 = vsel %vm301_vm2, %v3620_v14, 0.0 }
 0xcbd   :  { %v3560_v12 = vpop.f32.mrf.mxu3  ;;  %v3601_v6 = vpop.f32.mrf.mxu0 }
 0xcbe   :  { %v3561_v47 = vadd.f32 %v4665_v0, %v3560_v12 }
 0xcc0   :  { %v3602_v37 = vadd.f32 %v3601_v6, %v3561_v47 }
 0xcc2   :  { %v3621_v22 = vadd.f32 %v3602_v37, %v5704_v45 }
 0xcc4   :  { %v3633_v48 = vsel %vm301_vm2, %v3621_v22, 0.0 }
 0xcc5   :  { %v3563_v38 = vpop.f32.mrf.mxu3  ;;  %v3604_v9 = vpop.f32.mrf.mxu0 }
 0xcc6   :  { %v3564_v19 = vadd.f32 %v4665_v0, %v3563_v38 }
 0xcc8   :  { %v3605_v31 = vadd.f32 %v3604_v9, %v3564_v19 }
 0xccd   :  { %v3566_v5 = vpop.f32.mrf.mxu3  ;;  %v3607_v30 = vpop.f32.mrf.mxu0 }
 0xcce   :  { %v3567_v44 = vadd.f32 %v4665_v0, %v3566_v5 }
 0xcd0   :  { %v3608_v10 = vadd.f32 %v3607_v30, %v3567_v44 }
 0xcd2   :  { %v3623_v56 = vadd.f32 %v3608_v10, %v5725_v51 }
 0xcd5   :  { %v3569_v60 = vpop.f32.mrf.mxu3  ;;  %v3610_v23 = vpop.f32.mrf.mxu0 }
 0xcd6   :  { %v3570_v54 = vadd.f32 %v4665_v0, %v3569_v60 }
 0xcd8   :  { %v3611_v34 = vadd.f32 %v3610_v23, %v3570_v54 }
 0xcda   :  { %v3624_v62 = vadd.f32 %v3611_v34, %v5733_v3  ;;  %v3622_v3 = vadd.f32 %v3605_v31, %v5716_v27  ;;  %v3639_v27 = vsel %vm301_vm2, %v3623_v56, 0.0 }
 0xcdc   :  { %v3642_v11 = vsel %vm301_vm2, %v3624_v62, 0.0  ;;  %v3636_v35 = vsel %vm301_vm2, %v3622_v3, 0.0 }
 0xcdd   :  { %v3572_v41 = vpop.f32.mrf.mxu3  ;;  %3643 = vadd.xlane.f32.xlu1 %v3642_v11  ;;  %v3613_v55 = vpop.f32.mrf.mxu0 }
 0xcde   :  { %v3573_v26 = vadd.f32 %v4665_v0, %v3572_v41 }
 0xce0   :  { %v3614_v16 = vadd.f32 %v3613_v55, %v3573_v26 }
 0xce2   :  { %v3625_v13 = vadd.f32 %v3614_v16, %v5742_v52 }
 0xce4   :  { %v3645_v63 = vsel %vm301_vm2, %v3625_v13, 0.0 }
 0xce5   :  { %3646 = vadd.xlane.f32.xlu0 %v3645_v63  ;;  %3634 = vadd.xlane.f32.xlu1 %v3633_v48 }
 0xced   :  { %3637 = vadd.xlane.f32.xlu0 %v3636_v35 }
 0xcf5   :  { %3628 = vadd.xlane.f32.xlu0 %v3627_v36 }
 0xd30   :  { %v3575_v45 = vpop.f32.mrf.mxu3  ;;  %v3616_v52 = vpop.f32.mrf.mxu0 }
 0xd31   :  { %v3576_v39 = vadd.f32 %v4665_v0, %v3575_v45 }
 0xd33   :  { %v3617_v7 = vadd.f32 %v3616_v52, %v3576_v39 }
 0xd35   :  { %v3626_v33 = vadd.f32 %v3617_v7, %v5757_v53 }
 0xd37   :  { %v3648_v21 = vsel %vm301_vm2, %v3626_v33, 0.0 }
 0xd38   :  { %3649 = vadd.xlane.f32.xlu2 %v3648_v21 }
 0xd40   :  { %3640 = vadd.xlane.f32.xlu2 %v3639_v27 }
 0xd48   :  { %3631 = vadd.xlane.f32.xlu2 %v3630_v61 }
 0xd50   :  { %v3644_v17 = vpop.xlane.xlu1 %3643 }
 0xd51   :  { %v3656_v42 = vmul.f32 %v3644_v17, %v5611_v18 }
 0xd53   :  { %v5795_v40 = vsub.f32 %v3624_v62, %v3656_v42 }
 0xd55   :  { %v3672_v53 = vmul.f32 %v5795_v40, %v5795_v40 }
 0xd57   :  { %v3690_v2 = vsel %vm301_vm2, %v3672_v53, 0.0 }
 0xd58   :  { %v3647_v24 = vpop.xlane.xlu0 %3646  ;;  %3691 = vadd.xlane.f32.xlu0 %v3690_v2  ;;  %v3635_v51 = vpop.xlane.xlu1 %3634 }
 0xd59   :  { %v3657_v0 = vmul.f32 %v3647_v24, %v5611_v18  ;;  %v3653_v29 = vmul.f32 %v3635_v51, %v5611_v18 }
 0xd5b   :  { %v5802_v50 = vsub.f32 %v3625_v13, %v3657_v0  ;;  %v5804_v15 = vsub.f32 %v3621_v22, %v3653_v29 }
 0xd5d   :  { %v3673_v28 = vmul.f32 %v5802_v50, %v5802_v50  ;;  %v3669_v43 = vmul.f32 %v5804_v15, %v5804_v15 }
 0xd5f   :  { %v3693_v4 = vsel %vm301_vm2, %v3673_v28, 0.0  ;;  %v3681_v1 = vsel %vm301_vm2, %v3669_v43, 0.0 }
 0xd60   :  { %v3638_v32 = vpop.xlane.xlu0 %3637  ;;  %3694 = vadd.xlane.f32.xlu2 %v3693_v4  ;;  %3682 = vadd.xlane.f32.xlu0 %v3681_v1 }
 0xd61   :  { %v3654_v46 = vmul.f32 %v3638_v32, %v5611_v18 }
 0xd63   :  { %v5813_v8 = vsub.f32 %v3622_v3, %v3654_v46 }
 0xd65   :  { %v3670_v20 = vmul.f32 %v5813_v8, %v5813_v8 }
 0xd67   :  { %v3684_v49 = vsel %vm301_vm2, %v3670_v20, 0.0 }
 0xd68   :  { %v3629_v57 = vpop.xlane.xlu0 %3628  ;;  %3685 = vadd.xlane.f32.xlu2 %v3684_v49 }
 0xd69   :  { %v3651_v12 = vmul.f32 %v3629_v57, %v5611_v18 }
 0xd6b   :  { %v5819_v6 = vsub.f32 %v3619_v25, %v3651_v12 }
 0xd6d   :  { %v3667_v38 = vmul.f32 %v5819_v6, %v5819_v6 }
 0xd6f   :  { %v3675_v9 = vsel %vm301_vm2, %v3667_v38, 0.0 }
 0xd70   :  { %3676 = vadd.xlane.f32.xlu2 %v3675_v9 }
 0xdab   :  { %v3650_v5 = vpop.xlane.xlu2 %3649 }
 0xdac   :  { %v3658_v30 = vmul.f32 %v3650_v5, %v5611_v18 }
 0xdae   :  { %v5825_v44 = vsub.f32 %v3626_v33, %v3658_v30 }
 0xdb0   :  { %v3674_v10 = vmul.f32 %v5825_v44, %v5825_v44 }
 0xdb2   :  { %v3696_v60 = vsel %vm301_vm2, %v3674_v10, 0.0 }
 0xdb3   :  { %3697 = vadd.xlane.f32.xlu1 %v3696_v60  ;;  %v3641_v23 = vpop.xlane.xlu2 %3640 }
 0xdb4   :  { %v3655_v54 = vmul.f32 %v3641_v23, %v5611_v18 }
 0xdb6   :  { %v5831_v47 = vsub.f32 %v3623_v56, %v3655_v54 }
 0xdb8   :  { %v3671_v34 = vmul.f32 %v5831_v47, %v5831_v47 }
 0xdba   :  { %v3687_v62 = vsel %vm301_vm2, %v3671_v34, 0.0 }
 0xdbb   :  { %3688 = vadd.xlane.f32.xlu1 %v3687_v62  ;;  %v3632_v37 = vpop.xlane.xlu2 %3631 }
 0xdbc   :  { %v3652_v11 = vmul.f32 %v3632_v37, %v5611_v18 }
 0xdbe   :  { %v5837_v41 = vsub.f32 %v3620_v14, %v3652_v11 }
 0xdc0   :  { %v3668_v26 = vmul.f32 %v5837_v41, %v5837_v41 }
 0xdc2   :  { %v3678_v55 = vsel %vm301_vm2, %v3668_v26, 0.0 }
 0xdc3   :  { %3679 = vadd.xlane.f32.xlu1 %v3678_v55 }
 0xdcb   :  { %v3692_v16 = vpop.xlane.xlu0 %3691 }
 0xdcc   :  { %v3704_v13 = vmul.f32 %v3692_v16, %v5611_v18 }
 0xdce   :  { %v3712_v48 = vadd.f32 1e-05, %v3704_v13 }
 0xdd0   :  { %vm3771_vm10 = vweird.f32 %v3712_v48 }
 0xdd3   :  { %v3695_v19 = vpop.xlane.xlu2 %3694  ;;  %v3683_v3 = vpop.xlane.xlu0 %3682 }
 0xdd4   :  { %v3705_v22 = vmul.f32 %v3695_v19, %v5611_v18  ;;  %v3701_v25 = vmul.f32 %v3683_v3, %v5611_v18 }
 0xdd6   :  { %v3713_v63 = vadd.f32 1e-05, %v3705_v22  ;;  %v5848_v52 = vadd.f32 1e-05, %v3701_v25 }
 0xdd8   :  { %4819 = vrsqrt.f32 %v3713_v63  ;;  %vm3781_vm8 = vweird.f32 %v3713_v63  ;;  %vm3741_vm4 = vweird.f32 %v5848_v52 }
 0xdd9   :  { %4821 = vrsqrt.f32 %v3712_v48 }
 0xddb   :  { %v3686_v31 = vpop.xlane.xlu2 %3685 }
 0xddc   :  { %v3702_v35 = vmul.f32 %v3686_v31, %v5611_v18 }
 0xdde   :  { %v5846_v36 = vadd.f32 1e-05, %v3702_v35  ;;  %v4820_v39 = vpop.eup %4819 }
 0xddf   :  { %v5850_v7 = vpop.eup %4821  ;;  %v3776_v21 = vmul.f32 %v4820_v39, %v3713_v63  ;;  %vm3782_vm5 = vweird.f32 %v4820_v39 }
 0xde0   :  { %4823 = vrsqrt.f32 %v5846_v36  ;;  %v3766_v56 = vmul.f32 %v5850_v7, %v3712_v48  ;;  %vm3772_vm7 = vweird.f32 %v5850_v7  ;;  %vm5881_vm9 = vmor %vm3781_vm8, %vm3782_vm5  ;;  %vm3751_vm1 = vweird.f32 %v5846_v36 }
 0xde1   :  { %4825 = vrsqrt.f32 %v5848_v52  ;;  %v3777_v61 = vmul.f32 %v4820_v39, %v3776_v21  ;;  %vm5888_vm11 = vmor %vm3771_vm10, %vm3772_vm7 }
 0xde2   :  { %v3767_v53 = vmul.f32 %v5850_v7, %v3766_v56 }
 0xde3   :  { %v3677_v45 = vpop.xlane.xlu2 %3676  ;;  %v3778_v51 = vmul.f32 0.5, %v3777_v61 }
 0xde4   :  { %v3699_v33 = vmul.f32 %v3677_v45, %v5611_v18  ;;  %v3768_v29 = vmul.f32 0.5, %v3767_v53 }
 0xde5   :  { %v3779_v4 = vsub.f32 1.5, %v3778_v51  ;;  %v4095_v51 = vld [vmem:[#allocation6 + $0xe8] sm:$0xff] }
 0xde6   :  { %v5856_v27 = vadd.f32 1e-05, %v3699_v33  ;;  %v5859_v42 = vpop.eup %4823  ;;  %v3769_v49 = vsub.f32 1.5, %v3768_v29 }
 0xde7   :  { %v5863_v24 = vpop.eup %4825  ;;  %v3746_v0 = vmul.f32 %v5859_v42, %v5846_v36  ;;  %v3780_v9 = vmul.f32 %v4820_v39, %v3779_v4  ;;  %vm3752_vm14 = vweird.f32 %v5859_v42 }
 0xde8   :  { %4827 = vrsqrt.f32 %v5856_v27  ;;  %v3736_v28 = vmul.f32 %v5863_v24, %v5848_v52  ;;  %v3770_v60 = vmul.f32 %v5850_v7, %v3769_v49  ;;  %vm3742_vm0 = vweird.f32 %v5863_v24  ;;  %vm3753_vm5 = vmor %vm3751_vm1, %vm3752_vm14 }
 0xde9   :  { %v3747_v46 = vmul.f32 %v5859_v42, %v3746_v0  ;;  %v3784_v37 = vsel %vm5881_vm9, %v4820_v39, %v3780_v9  ;;  %vm5919_vm8 = vmor %vm3741_vm4, %vm3742_vm0 }
 0xdea   :  { %v3737_v12 = vmul.f32 %v5863_v24, %v3736_v28  ;;  %v3774_v13 = vsel %vm5888_vm11, %v5850_v7, %v3770_v60  ;;  %v3801_v3 = vmul.f32 %v3784_v37, %v5802_v50  ;;  %v5903_v7 = vld [vmem:[#allocation4 + $0x3b8] ss:$0 sm:$0xff] }
 0xdeb   :  { %v3748_v5 = vmul.f32 0.5, %v3747_v46  ;;  %v3800_v33 = vmul.f32 %v3774_v13, %v5795_v40 }
 0xdec   :  { %v3738_v54 = vmul.f32 0.5, %v3737_v12  ;;  %v3811_v61 = vmul.f32 %v5903_v7, %v3801_v3 }
 0xded   :  { %v3749_v55 = vsub.f32 1.5, %v3748_v5  ;;  %v3810_v36 = vmul.f32 %v5903_v7, %v3800_v33 }
 0xdee   :  { %v5870_v32 = vpop.eup %4827  ;;  %v3739_v63 = vsub.f32 1.5, %v3738_v54 }
 0xdef   :  { %v3716_v30 = vmul.f32 %v5870_v32, %v5856_v27  ;;  %v3750_v35 = vmul.f32 %v5859_v42, %v3749_v55  ;;  %vm3722_vm11 = vweird.f32 %v5870_v32 }
 0xdf0   :  { %v3740_v56 = vmul.f32 %v5863_v24, %v3739_v63 }
 0xdf1   :  { %v3717_v19 = vmul.f32 %v5870_v32, %v3716_v30 }
 0xdf2   :  { %v3744_v52 = vsel %vm5919_vm8, %v5863_v24, %v3740_v56 }
 0xdf3   :  { %v3718_v25 = vmul.f32 0.5, %v3717_v19 }
 0xe26   :  { %v3698_v14 = vpop.xlane.xlu1 %3697 }
 0xe27   :  { %v3706_v17 = vmul.f32 %v3698_v14, %v5611_v18  ;;  %v5910_v14 = vld [vmem:[#allocation4 + $0x3c0] ss:$0 sm:$0xff] }
 0xe28   :  { %v5932_v28 = vadd.f32 %v5910_v14, %v3811_v61  ;;  %v5941_v46 = vadd.f32 %v5910_v14, %v3810_v36  ;;  %v4100_v61 = vld [vmem:[#allocation6 + $0x110] sm:$0xff]  ;;  %v4094_v36 = vld [vmem:[#allocation6 + $0xe0] sm:$0xff] }
 0xe29   :  { %v3714_v2 = vadd.f32 1e-05, %v3706_v17  ;;  %v3719_v17 = vsub.f32 1.5, %v3718_v25 }
 0xe2b   :  { %4829 = vrsqrt.f32 %v3714_v2  ;;  %vm3791_vm13 = vweird.f32 %v3714_v2  ;;  %v3720_v4 = vmul.f32 %v5870_v32, %v3719_v17  ;;  %v4099_v17 = vld [vmem:[#allocation6 + $0x108] sm:$0xff] }
 0xe2e   :  { %v3689_v43 = vpop.xlane.xlu1 %3688 }
 0xe2f   :  { %v3703_v1 = vmul.f32 %v3689_v43, %v5611_v18 }
 0xe31   :  { %v4830_v20 = vpop.eup %4829  ;;  %v5873_v57 = vadd.f32 1e-05, %v3703_v1 }
 0xe32   :  { %v3786_v38 = vmul.f32 %v4830_v20, %v3714_v2  ;;  %vm3792_vm12 = vweird.f32 %v4830_v20 }
 0xe33   :  { %4831 = vrsqrt.f32 %v5873_v57  ;;  %vm3793_vm15 = vmor %vm3791_vm13, %vm3792_vm12  ;;  %vm3761_vm9 = vweird.f32 %v5873_v57  ;;  %vm3721_vm12 = vweird.f32 %v5856_v27  ;;  %v5956_v27 = vmul.u32 8, %v5068_v58 }
 0xe34   :  { %v3787_v10 = vmul.f32 %v4830_v20, %v3786_v38  ;;  %vm3723_vm13 = vmor %vm3721_vm12, %vm3722_vm11 }
 0xe35   :  { %vm3824_vm4 = vcmp.eq.s32.totalorder %v5070_v59, %v5956_v27  ;;  %v3928_v26 = vadd.s32 4, %v5956_v27  ;;  %v3876_v55 = vadd.s32 2, %v5956_v27  ;;  %v3902_v19 = vadd.s32 3, %v5956_v27 }
 0xe36   :  { %v3788_v34 = vmul.f32 0.5, %v3787_v10  ;;  %v3680_v62 = vpop.xlane.xlu1 %3679  ;;  %v3850_v10 = vadd.s32 1, %v5956_v27 }
 0xe37   :  { %v3700_v11 = vmul.f32 %v3680_v62, %v5611_v18  ;;  %v4921_v62 = vmov 0.0   ;;  %vm3877_vm8 = vcmp.eq.s32.totalorder %v5070_v59, %v3876_v55  ;;  %v4178_v55 = vld [vmem:[#allocation4 + $0x490] sm:$0xff] }
 0xe38   :  { %v3789_v16 = vsub.f32 1.5, %v3788_v34  ;;  %vm3851_vm1 = vcmp.eq.s32.totalorder %v5070_v59, %v3850_v10  ;;  %v3878_v13 = vsel %vm3877_vm8, 1.0, %v4921_v62  ;;  %v4167_v10 = vld [vmem:[#allocation4 + $0x438] sm:$0xff] }
 0xe39   :  { %v4832_v22 = vpop.eup %4831  ;;  %v5896_v31 = vadd.f32 1e-05, %v3700_v11  ;;  %v3852_v37 = vsel %vm3851_vm1, 1.0, %v4921_v62  ;;  %v3825_v11 = vsel %vm3824_vm4, 1.0, %v4921_v62  ;;  %vm4070_vm1 = vcmask 916480  }
 0xe3a   :  { %v3790_v48 = vmul.f32 %v4830_v20, %v3789_v16  ;;  %v3756_v18 = vmul.f32 %v4832_v22, %v5873_v57  ;;  %vm3762_vm7 = vweird.f32 %v4832_v22  ;;  %vm4358_vm4 = vcmask 7168  }
 0xe3b   :  { %4833 = vrsqrt.f32 %v5896_v31  ;;  %vm3763_vm10 = vmor %vm3761_vm9, %vm3762_vm7  ;;  %vm3929_vm7 = vcmp.eq.s32.totalorder %v5070_v59, %v3928_v26  ;;  %vm3903_vm9 = vcmp.eq.s32.totalorder %v5070_v59, %v3902_v19  ;;  %v4162_v26 = vld [vmem:[#allocation4 + $0x410] sm:$0xff] }
 0xe3c   :  { %v3794_v45 = vsel %vm3793_vm15, %v4830_v20, %v3790_v48  ;;  %v3757_v39 = vmul.f32 %v4832_v22, %v3756_v18  ;;  %v3797_v20 = vmul.f32 %v3744_v52, %v5804_v15  ;;  %v3724_v15 = vsel %vm3723_vm13, %v5870_v32, %v3720_v4  ;;  %v4093_v52 = vld [vmem:[#allocation6 + $0xd8] sm:$0xff]  ;;  %v4086_v4 = vld [vmem:[#allocation6 + $0xa0] sm:$0xff] }
 0xe3d   :  { %v3802_v21 = vmul.f32 %v3794_v45, %v5825_v44  ;;  %v3754_v44 = vsel %vm3753_vm5, %v5859_v42, %v3750_v35  ;;  %vm3731_vm15 = vweird.f32 %v5896_v31  ;;  %v3795_v32 = vmul.f32 %v3724_v15, %v5819_v6  ;;  %v4102_v45 = vld [vmem:[#allocation6 + $0x120] sm:$0xff]  ;;  %v4079_v15 = vld [vmem:[#allocation6 + $0x68] sm:$0xff] }
 0xe3e   :  { %v3758_v50 = vmul.f32 0.5, %v3757_v39  ;;  %v3798_v43 = vmul.f32 %v3754_v44, %v5813_v8  ;;  %v3807_v38 = vmul.f32 %v5903_v7, %v3797_v20  ;;  %vm3826_vm5 = vcmask 523264   ;;  %4111 = vmatpush.msra.mxu0 %v4102_v45  ;;  %v4098_v44 = vld [vmem:[#allocation6 + $0x100] sm:$0xff] }
 0xe3f   :  { %v3812_v40 = vmul.f32 %v5903_v7, %v3802_v21  ;;  %v3805_v6 = vmul.f32 %v5903_v7, %v3795_v32  ;;  %v3930_v16 = vsel %vm3929_vm7, 1.0, %v4921_v62  ;;  %v3980_v48 = vadd.s32 6, %v5956_v27  ;;  %v4082_v20 = vld [vmem:[#allocation6 + $0x80] sm:$0xff]  ;;  %v4168_v32 = vld [vmem:[#allocation4 + $0x440] sm:$0xff] }
 0xe40   :  { %v3759_v53 = vsub.f32 1.5, %v3758_v50  ;;  %v3808_v57 = vmul.f32 %v5903_v7, %v3798_v43  ;;  %v5972_v60 = vadd.f32 %v5910_v14, %v3807_v38  ;;  %v3954_v18 = vadd.s32 5, %v5956_v27  ;;  %4112 = vmatpush.msra.mxu0 %v4100_v61  ;;  %v4089_v43 = vld [vmem:[#allocation6 + $0xb8] sm:$0xff]  ;;  %v4074_v38 = vld [vmem:[#allocation6 + $0x40] sm:$0xff] }
 0xe41   :  { %v4834_v2 = vpop.eup %4833  ;;  %v5924_v0 = vadd.f32 %v5910_v14, %v3812_v40  ;;  %v5990_v34 = vadd.f32 %v5910_v14, %v3805_v6  ;;  %vm3981_vm11 = vcmp.eq.s32.totalorder %v5070_v59, %v3980_v48  ;;  %v4101_v40 = vld [vmem:[#allocation6 + $0x118] sm:$0xff]  ;;  %v4182_v6 = vld [vmem:[#allocation4 + $0x4b0] sm:$0xff]  ;;  %v4175_v48 = vld [vmem:[#allocation4 + $0x478] sm:$0xff]  ;;  %vm4061_vm13 = vcmask 261120  }
 0xe42   :  { %v3760_v29 = vmul.f32 %v4832_v22, %v3759_v53  ;;  %v3726_v42 = vmul.f32 %v4834_v2, %v5896_v31  ;;  %vm3732_vm14 = vweird.f32 %v4834_v2  ;;  %v5964_v30 = vadd.f32 %v5910_v14, %v3808_v57  ;;  %v4096_v53 = vld [vmem:[#allocation6 + $0xf0] sm:$0xff]  ;;  %4113 = vmatpush.msra.mxu0 %v4098_v44  ;;  %v4081_v57 = vld [vmem:[#allocation6 + $0x78] sm:$0xff] }
 0xe43   :  { %3838 = vmatpush.msrb.mxu1 %v5924_v0  ;;  %3864 = vmatpush.msrb.mxu2 %v5924_v0  ;;  %vm3733_vm0 = vmor %vm3731_vm15, %vm3732_vm14  ;;  %v3904_v31 = vsel %vm3903_vm9, 1.0, %v4921_v62  ;;  %vm3955_vm12 = vcmp.eq.s32.totalorder %v5070_v59, %v3954_v18  ;;  %v3982_v3 = vsel %vm3981_vm11, 1.0, %v4921_v62  ;;  %vm4063_vm14 = vcmask 392192  }
 0xe44   :  { %v3764_v24 = vsel %vm3763_vm10, %v4832_v22, %v3760_v29  ;;  %v3727_v1 = vmul.f32 %v4834_v2, %v3726_v42  ;;  %3942 = vmatpush.msra.mxu3 %v5924_v0  ;;  %v4006_v22 = vadd.s32 7, %v5956_v27  ;;  %v3956_v35 = vsel %vm3955_vm12, 1.0, %v4921_v62  ;;  %4114 = vmatpush.msra.mxu0 %v4096_v53  ;;  %v4090_v29 = vld [vmem:[#allocation6 + $0xc0] sm:$0xff]  ;;  %v4091_v42 = vld [vmem:[#allocation6 + $0xc8] sm:$0xff]  ;;  %v4077_v27 = vld [vmem:[#allocation6 + $0x58] sm:$0xff] }
 0xe45   :  { %v3799_v8 = vmul.f32 %v3764_v24, %v5831_v47  ;;  %3839 = vmatpush.msrb.mxu1 %v5932_v28  ;;  %3865 = vmatpush.msrb.mxu2 %v5932_v28  ;;  %v4087_v24 = vld [vmem:[#allocation6 + $0xa8] sm:$0xff]  ;;  %vm4066_vm15 = vcmask 654336  }
 0xe46   :  { %v3728_v49 = vmul.f32 0.5, %v3727_v1  ;;  %3943 = vmatpush.msra.mxu3 %v5932_v28  ;;  %vm4007_vm10 = vcmp.eq.s32.totalorder %v5070_v59, %v4006_v22  ;;  %4115 = vmatpush.msra.mxu0 %v4094_v36  ;;  %v4084_v1 = vld [vmem:[#allocation6 + $0x90] sm:$0xff]  ;;  %v4177_v22 = vld [vmem:[#allocation4 + $0x488] sm:$0xff] }
 0xe47   :  { %v3809_v12 = vmul.f32 %v5903_v7, %v3799_v8  ;;  %3840 = vmatpush.msrb.mxu1 %v5941_v46  ;;  %3866 = vmatpush.msrb.mxu2 %v5941_v46  ;;  %v4008_v63 = vsel %vm4007_vm10, 1.0, %v4921_v62  ;;  %v4083_v8 = vld [vmem:[#allocation6 + $0x88] sm:$0xff]  ;;  %v4180_v62 = vld [vmem:[#allocation4 + $0x4a0] sm:$0xff]  ;;  %v4155_v36 = vld [vmem:[#allocation4 + $0x3d8] sm:$0xff] }
 0xe48   :  { %v3729_v47 = vsub.f32 1.5, %v3728_v49  ;;  %3944 = vmatpush.msra.mxu3 %v5941_v46  ;;  %v4080_v49 = vld [vmem:[#allocation6 + $0x70] sm:$0xff] }
 0xe49   :  { %v5960_v9 = vadd.f32 %v5910_v14, %v3809_v12  ;;  %v4078_v12 = vld [vmem:[#allocation6 + $0x60] sm:$0xff] }
 0xe4a   :  { %v3730_v5 = vmul.f32 %v4834_v2, %v3729_v47  ;;  %v4076_v47 = vld [vmem:[#allocation6 + $0x50] sm:$0xff] }
 0xe4b   :  { %3841 = vmatpush.msrb.mxu1 %v5960_v9  ;;  %3867 = vmatpush.msrb.mxu2 %v5960_v9 }
 0xe4c   :  { %v3734_v58 = vsel %vm3733_vm0, %v4834_v2, %v3730_v5  ;;  %3945 = vmatpush.msra.mxu3 %v5960_v9  ;;  %v4097_v2 = vld [vmem:[#allocation6 + $0xf8] sm:$0xff]  ;;  %v4072_v5 = vld [vmem:[#allocation6 + $0x30] sm:$0xff]  ;;  %vm4068_vm0 = vcmask 785408  }
 0xe4d   :  { %v3796_v23 = vmul.f32 %v3734_v58, %v5837_v41  ;;  %3842 = vmatpush.msrb.mxu1 %v5964_v30  ;;  %3868 = vmatpush.msrb.mxu2 %v5964_v30  ;;  %v4184_v58 = vld [vmem:[#allocation4 + $0x4c0] sm:$0xff] }
 0xe4e   :  { %3946 = vmatpush.msra.mxu3 %v5964_v30 }
 0xe4f   :  { %v3806_v54 = vmul.f32 %v5903_v7, %v3796_v23  ;;  %3843 = vmatpush.msrb.mxu1 %v5972_v60  ;;  %3869 = vmatpush.msrb.mxu2 %v5972_v60  ;;  %v4166_v23 = vld [vmem:[#allocation4 + $0x430] sm:$0xff] }
 0xe50   :  { %3947 = vmatpush.msra.mxu3 %v5972_v60 }
 0xe51   :  { %v5985_v41 = vadd.f32 %v5910_v14, %v3806_v54  ;;  %v4103_v14 = vld [vmem:[#allocation6 + $0x128] sm:$0xff]  ;;  %v4165_v54 = vld [vmem:[#allocation4 + $0x428] sm:$0xff] }
 0xe53   :  { %3844 = vmatpush.msrb.mxu1 %v5985_v41  ;;  %3870 = vmatpush.msrb.mxu2 %v5985_v41 }
 0xe54   :  { %3948 = vmatpush.msra.mxu3 %v5985_v41 }
 0xe55   :  { %3845 = vmatpush.msrb.mxu1 %v5990_v34  ;;  %3871 = vmatpush.msrb.mxu2 %v5990_v34 }
 0xe56   :  { %3949 = vmatpush.msra.mxu3 %v5990_v34  ;;  %4620 = vmatmul.msk.f32.vlgmr.msrb.gmra.mxu2 %vm3826_vm5, %v3852_v37  ;;  %v4163_v37 = vld [vmem:[#allocation4 + $0x418] sm:$0xff] }
 0xe57   :  { %3890 = vmatpush.msra.mxu1 %v5924_v0  ;;  %3916 = vmatpush.msra.mxu2 %v5924_v0 }
 0xe58   :  { %4020 = vmatpush.msrb.mxu3 %v5924_v0  ;;  %4619 = vmatmul.msk.f32.vlgmr.msrb.gmra.mxu1 %vm3826_vm5, %v3825_v11  ;;  %v4179_v11 = vld [vmem:[#allocation4 + $0x498] sm:$0xff] }
 0xe59   :  { %3891 = vmatpush.msra.mxu1 %v5932_v28  ;;  %3917 = vmatpush.msra.mxu2 %v5932_v28 }
 0xe5a   :  { %4021 = vmatpush.msrb.mxu3 %v5932_v28 }
 0xe5b   :  { %3892 = vmatpush.msra.mxu1 %v5941_v46  ;;  %3918 = vmatpush.msra.mxu2 %v5941_v46 }
 0xe5c   :  { %4022 = vmatpush.msrb.mxu3 %v5941_v46 }
 0xe5d   :  { %3893 = vmatpush.msra.mxu1 %v5960_v9  ;;  %3919 = vmatpush.msra.mxu2 %v5960_v9 }
 0xe5e   :  { %4023 = vmatpush.msrb.mxu3 %v5960_v9 }
 0xe5f   :  { %3894 = vmatpush.msra.mxu1 %v5964_v30  ;;  %3920 = vmatpush.msra.mxu2 %v5964_v30 }
 0xe60   :  { %4024 = vmatpush.msrb.mxu3 %v5964_v30 }
 0xe61   :  { %3895 = vmatpush.msra.mxu1 %v5972_v60  ;;  %3921 = vmatpush.msra.mxu2 %v5972_v60 }
 0xe62   :  { %4025 = vmatpush.msrb.mxu3 %v5972_v60 }
 0xe63   :  { %4623 = vmatmul.msk.f32.vlgmr.msra.gmra.mxu3 %vm3826_vm5, %v3930_v16  ;;  %3896 = vmatpush.msra.mxu1 %v5985_v41  ;;  %v4161_v16 = vld [vmem:[#allocation4 + $0x408] sm:$0xff] }
 0xe64   :  { %3922 = vmatpush.msra.mxu2 %v5985_v41  ;;  %4026 = vmatpush.msrb.mxu3 %v5985_v41 }
 0xe65   :  { %3897 = vmatpush.msra.mxu1 %v5990_v34 }
 0xe66   :  { %3923 = vmatpush.msra.mxu2 %v5990_v34  ;;  %4027 = vmatpush.msrb.mxu3 %v5990_v34 }
 0xe67   :  { %4621 = vmatmul.msk.f32.vlgmr.msra.gmra.mxu1 %vm3826_vm5, %v3878_v13  ;;  %4622 = vmatmul.msk.f32.vlgmr.msra.gmra.mxu2 %vm3826_vm5, %v3904_v31  ;;  %v4160_v13 = vld [vmem:[#allocation4 + $0x400] sm:$0xff] }
 0xe68   :  { %3994 = vmatpush.msrb.mxu2 %v5924_v0  ;;  %3968 = vmatpush.msrb.mxu1 %v5924_v0  ;;  %v4092_v0 = vld [vmem:[#allocation6 + $0xd0] sm:$0xff]  ;;  %v4176_v31 = vld [vmem:[#allocation4 + $0x480] sm:$0xff] }
 0xe69   :  { %4116 = vmatpush.msra.mxu0 %v4092_v0  ;;  %4207 = vmatpush.msra.mxu3 %v4184_v58  ;;  %v4154_v0 = vld [vmem:[#allocation4 + $0x3d0] sm:$0xff] }
 0xe6a   :  { %3995 = vmatpush.msrb.mxu2 %v5932_v28  ;;  %3969 = vmatpush.msrb.mxu1 %v5932_v28  ;;  %v4088_v28 = vld [vmem:[#allocation6 + $0xb0] sm:$0xff] }
 0xe6b   :  { %4626 = vmatmul.msk.f32.vlgmr.msrb.gmra.mxu3 %vm3826_vm5, %v4008_v63  ;;  %4117 = vmatpush.msra.mxu0 %v4090_v29  ;;  %v4159_v63 = vld [vmem:[#allocation4 + $0x3f8] sm:$0xff]  ;;  %v4153_v29 = vld [vmem:[#allocation4 + $0x3c8] sm:$0xff] }
 0xe6c   :  { %3996 = vmatpush.msrb.mxu2 %v5941_v46  ;;  %3970 = vmatpush.msrb.mxu1 %v5941_v46  ;;  %v4085_v46 = vld [vmem:[#allocation6 + $0x98] sm:$0xff] }
 0xe6d   :  { %4118 = vmatpush.msra.mxu0 %v4088_v28  ;;  %v4243_v28 = vld [vmem:[#allocation4 + $0x548] sm:$0xff] }
 0xe6e   :  { %3997 = vmatpush.msrb.mxu2 %v5960_v9  ;;  %3971 = vmatpush.msrb.mxu1 %v5960_v9  ;;  %v4075_v9 = vld [vmem:[#allocation6 + $0x48] sm:$0xff] }
 0xe6f   :  { %4119 = vmatpush.msra.mxu0 %v4086_v4  ;;  %v4241_v4 = vld [vmem:[#allocation4 + $0x538] sm:$0xff] }
 0xe70   :  { %3998 = vmatpush.msrb.mxu2 %v5964_v30  ;;  %3972 = vmatpush.msrb.mxu1 %v5964_v30  ;;  %v4073_v30 = vld [vmem:[#allocation6 + $0x38] sm:$0xff] }
 0xe71   :  { %4120 = vmatpush.msra.mxu0 %v4084_v1  ;;  %v4239_v1 = vld [vmem:[#allocation4 + $0x528] sm:$0xff] }
 0xe72   :  { %3999 = vmatpush.msrb.mxu2 %v5972_v60  ;;  %3973 = vmatpush.msrb.mxu1 %v5972_v60  ;;  %v4183_v60 = vld [vmem:[#allocation4 + $0x4b8] sm:$0xff] }
 0xe73   :  { %4121 = vmatpush.msra.mxu0 %v4082_v20  ;;  %4208 = vmatpush.msra.mxu3 %v4183_v60  ;;  %v4237_v20 = vld [vmem:[#allocation4 + $0x518] sm:$0xff]  ;;  %v4231_v60 = vld [vmem:[#allocation4 + $0x4e8] sm:$0xff] }
 0xe74   :  { %4000 = vmatpush.msrb.mxu2 %v5985_v41  ;;  %3974 = vmatpush.msrb.mxu1 %v5985_v41  ;;  %v4181_v41 = vld [vmem:[#allocation4 + $0x4a8] sm:$0xff] }
 0xe75   :  { %4122 = vmatpush.msra.mxu0 %v4080_v49  ;;  %4209 = vmatpush.msra.mxu3 %v4182_v6  ;;  %v4235_v49 = vld [vmem:[#allocation4 + $0x508] sm:$0xff]  ;;  %v4229_v6 = vld [vmem:[#allocation4 + $0x4d8] sm:$0xff] }
 0xe76   :  { %4001 = vmatpush.msrb.mxu2 %v5990_v34  ;;  %3975 = vmatpush.msrb.mxu1 %v5990_v34  ;;  %v4164_v34 = vld [vmem:[#allocation4 + $0x420] sm:$0xff] }
 0xe77   :  { %4625 = vmatmul.msk.f32.vlgmr.msrb.gmra.mxu2 %vm3826_vm5, %v3982_v3  ;;  %4624 = vmatmul.msk.f32.vlgmr.msrb.gmra.mxu1 %vm3826_vm5, %v3956_v35  ;;  %v4158_v35 = vld [vmem:[#allocation4 + $0x3f0] sm:$0xff] }
 0xe78   :  { %4131 = vmatpush.msra.mxu1 %v4103_v14  ;;  %4123 = vmatpush.msra.mxu0 %v4078_v12  ;;  %v4233_v12 = vld [vmem:[#allocation4 + $0x4f8] sm:$0xff] }
 0xe79   :  { %4187 = vmatpush.msra.mxu2 %v4168_v32  ;;  %4210 = vmatpush.msra.mxu3 %v4181_v41  ;;  %v4274_v41 = vld [vmem:[#allocation4 + $0x590] sm:$0xff] }
 0xe7a   :  { %4132 = vmatpush.msra.mxu1 %v4101_v40  ;;  %4124 = vmatpush.msra.mxu0 %v4076_v47  ;;  %v4105_v47 = vld [vmem:[#allocation6 + $0x130] ss:$8 sm:$0x3] }
 0xe7b   :  { %4188 = vmatpush.msra.mxu2 %v4167_v10  ;;  %4211 = vmatpush.msra.mxu3 %v4180_v62  ;;  %v4272_v62 = vld [vmem:[#allocation4 + $0x580] sm:$0xff] }
 0xe7c   :  { %4133 = vmatpush.msra.mxu1 %v4099_v17  ;;  %4125 = vmatpush.msra.mxu0 %v4074_v38  ;;  %v4108_v38 = vperm.slane %v4105_v47, 1 }
 0xe7d   :  { %4189 = vmatpush.msra.mxu2 %v4166_v23  ;;  %4212 = vmatpush.msra.mxu3 %v4179_v11  ;;  %v4230_v23 = vld [vmem:[#allocation4 + $0x4e0] sm:$0xff]  ;;  %v4270_v11 = vld [vmem:[#allocation4 + $0x570] sm:$0xff] }
 0xe7e   :  { %4134 = vmatpush.msra.mxu1 %v4097_v2  ;;  %4126 = vmatpush.msra.mxu0 %v4072_v5 }
 0xe7f   :  { %4190 = vmatpush.msra.mxu2 %v4165_v54  ;;  %4213 = vmatpush.msra.mxu3 %v4178_v55  ;;  %v4228_v54 = vld [vmem:[#allocation4 + $0x4d0] sm:$0xff] }
 0xe80   :  { %4135 = vmatpush.msra.mxu1 %v4095_v51  ;;  %v4171_v51 = vld [vmem:[#allocation4 + $0x458] sm:$0xff]  ;;  %4246 = vmatpush.msrb.mxu0 %v4243_v28 }
 0xe81   :  { %4191 = vmatpush.msra.mxu2 %v4164_v34  ;;  %4214 = vmatpush.msra.mxu3 %v4177_v22  ;;  %v4273_v34 = vld [vmem:[#allocation4 + $0x588] sm:$0xff] }
 0xe82   :  { %4136 = vmatpush.msra.mxu1 %v4093_v52  ;;  %v4170_v52 = vld [vmem:[#allocation4 + $0x450] sm:$0xff] }
 0xe83   :  { %4192 = vmatpush.msra.mxu2 %v4163_v37  ;;  %4215 = vmatpush.msra.mxu3 %v4176_v31  ;;  %v4271_v37 = vld [vmem:[#allocation4 + $0x578] sm:$0xff]  ;;  %v4269_v31 = vld [vmem:[#allocation4 + $0x568] sm:$0xff] }
 0xe84   :  { %4137 = vmatpush.msra.mxu1 %v4091_v42  ;;  %v4169_v42 = vld [vmem:[#allocation4 + $0x448] sm:$0xff] }
 0xe85   :  { %4193 = vmatpush.msra.mxu2 %v4162_v26  ;;  %4216 = vmatpush.msra.mxu3 %v4175_v48  ;;  %v4668_v26 = vld [vmem:[#allocation4 + $0x4c8] ss:$0 sm:$0xff]  ;;  %v4267_v48 = vld [vmem:[#allocation4 + $0x558] sm:$0xff] }
 0xe86   :  { %4138 = vmatpush.msra.mxu1 %v4089_v43  ;;  %v4242_v43 = vld [vmem:[#allocation4 + $0x540] sm:$0xff] }
 0xe87   :  { %4194 = vmatpush.msra.mxu2 %v4161_v16  ;;  %4247 = vmatpush.msrb.mxu0 %v4242_v43 }
 0xe88   :  { %4139 = vmatpush.msra.mxu1 %v4087_v24  ;;  %v4240_v24 = vld [vmem:[#allocation4 + $0x530] sm:$0xff] }
 0xe89   :  { %4195 = vmatpush.msra.mxu2 %v4160_v13  ;;  %4248 = vmatpush.msrb.mxu0 %v4241_v4 }
 0xe8a   :  { %4140 = vmatpush.msra.mxu1 %v4085_v46  ;;  %v4238_v46 = vld [vmem:[#allocation4 + $0x520] sm:$0xff] }
 0xe8b   :  { %4196 = vmatpush.msra.mxu2 %v4159_v63  ;;  %4249 = vmatpush.msrb.mxu0 %v4240_v24  ;;  %v4268_v63 = vld [vmem:[#allocation4 + $0x560] sm:$0xff] }
 0xe8c   :  { %4141 = vmatpush.msra.mxu1 %v4083_v8  ;;  %v4236_v8 = vld [vmem:[#allocation4 + $0x510] sm:$0xff] }
 0xe8d   :  { %4197 = vmatpush.msra.mxu2 %v4158_v35  ;;  %4250 = vmatpush.msrb.mxu0 %v4239_v1 }
 0xe8e   :  { %4142 = vmatpush.msra.mxu1 %v4081_v57  ;;  %v4234_v57 = vld [vmem:[#allocation4 + $0x500] sm:$0xff] }
 0xe8f   :  { %4251 = vmatpush.msrb.mxu0 %v4238_v46 }
 0xe90   :  { %4143 = vmatpush.msra.mxu1 %v4079_v15  ;;  %v4232_v15 = vld [vmem:[#allocation4 + $0x4f0] sm:$0xff] }
 0xe91   :  { %4252 = vmatpush.msrb.mxu0 %v4237_v20 }
 0xe92   :  { %4144 = vmatpush.msra.mxu1 %v4077_v27  ;;  %v4107_v27 = vperm.slane %v4105_v47, 0 }
 0xe93   :  { %4253 = vmatpush.msrb.mxu0 %v4236_v8 }
 0xe94   :  { %4145 = vmatpush.msra.mxu1 %v4075_v9 }
 0xe95   :  { %4254 = vmatpush.msrb.mxu0 %v4235_v49 }
 0xe96   :  { %4146 = vmatpush.msra.mxu1 %v4073_v30 }
 0xe97   :  { %4255 = vmatpush.msrb.mxu0 %v4234_v57 }
 0xe98   :  { %4288 = vmatpush.msrb.mxu1 %v4274_v41 }
 0xe99   :  { %4256 = vmatpush.msrb.mxu0 %v4233_v12 }
 0xe9a   :  { %4289 = vmatpush.msrb.mxu1 %v4273_v34 }
 0xe9b   :  { %4257 = vmatpush.msrb.mxu0 %v4232_v15 }
 0xe9c   :  { %4290 = vmatpush.msrb.mxu1 %v4272_v62 }
 0xe9d   :  { %4258 = vmatpush.msrb.mxu0 %v4231_v60 }
 0xe9e   :  { %4291 = vmatpush.msrb.mxu1 %v4271_v37 }
 0xe9f   :  { %4259 = vmatpush.msrb.mxu0 %v4230_v23 }
 0xea0   :  { %4292 = vmatpush.msrb.mxu1 %v4270_v11 }
 0xea1   :  { %4260 = vmatpush.msrb.mxu0 %v4229_v6 }
 0xea2   :  { %4293 = vmatpush.msrb.mxu1 %v4269_v31 }
 0xea3   :  { %4261 = vmatpush.msrb.mxu0 %v4228_v54 }
 0xea4   :  { %4294 = vmatpush.msrb.mxu1 %v4268_v63 }
 0xea6   :  { %4295 = vmatpush.msrb.mxu1 %v4267_v48 }
 0xed5   :  { %v6067_v59 = vpop.f32.mrf.mxu1 }
 0xed9   :  { %v3873_v25 = vpop.f32.mrf.mxu2 }
 0xeda   :  { %4033 = vrot.lane.b32.xlu0 %v3873_v25, %s4919_s0  ;;  %v4174_v25 = vld [vmem:[#allocation4 + $0x470] sm:$0xff] }
 0xedb   :  { %4217 = vmatpush.msra.mxu3 %v4174_v25 }
 0xee4   :  { %v3899_v39 = vpop.f32.mrf.mxu1 }
 0xee5   :  { %4037 = vrot.lane.b32.xlu1 %v3899_v39, %s4922_s2 }
 0xee6   :  { %v3951_v7 = vpop.f32.mrf.mxu3 }
 0xee7   :  { %4045 = vrot.lane.b32.xlu0 %v3951_v7, %s4923_s4 }
 0xeea   :  { %v3925_v33 = vpop.f32.mrf.mxu2 }
 0xeeb   :  { %4041 = vrot.lane.b32.xlu2 %v3925_v33, %s4924_s5  ;;  %v4157_v33 = vld [vmem:[#allocation4 + $0x3e8] sm:$0xff] }
 0xeec   :  { %4198 = vmatpush.msra.mxu2 %v4157_v33 }
 0xeee   :  { %v4029_v21 = vpop.f32.mrf.mxu3 }
 0xeef   :  { %4057 = vrot.lane.b32.xlu0 %v4029_v21, %s4925_s6  ;;  %v4173_v21 = vld [vmem:[#allocation4 + $0x468] sm:$0xff] }
 0xef0   :  { %4218 = vmatpush.msra.mxu3 %v4173_v21 }
 0xef4   :  { %v3977_v56 = vpop.f32.mrf.mxu1 }
 0xef5   :  { %4049 = vrot.lane.b32.xlu2 %v3977_v56, %s4926_s7  ;;  %v4156_v56 = vld [vmem:[#allocation4 + $0x3e0] sm:$0xff] }
 0xef6   :  { %4199 = vmatpush.msra.mxu2 %v4156_v56 }
 0xef8   :  { %4200 = vmatpush.msra.mxu2 %v4155_v36 }
 0xefa   :  { %v4003_v50 = vpop.f32.mrf.mxu2  ;;  %4201 = vmatpush.msra.mxu2 %v4154_v0 }
 0xefb   :  { %4053 = vrot.lane.b32.xlu1 %v4003_v50, %s4927_s8  ;;  %v4172_v50 = vld [vmem:[#allocation4 + $0x460] sm:$0xff] }
 0xefc   :  { %4219 = vmatpush.msra.mxu3 %v4172_v50  ;;  %4202 = vmatpush.msra.mxu2 %v4153_v29  ;;  %v4329_v50 = vld [vmem:[#allocation4 + $0x5b8] sm:$0xf] }
 0xefe   :  { %4220 = vmatpush.msra.mxu3 %v4171_v51 }
 0xf00   :  { %4221 = vmatpush.msra.mxu3 %v4170_v52 }
 0xf02   :  { %4222 = vmatpush.msra.mxu3 %v4169_v42 }
 0xf45   :  { %v4042_v3 = vpop.permute.xlu2 %4041 }
 0xf4c   :  { %v4034_v19 = vpop.permute.xlu0 %4033 }
 0xf4d   :  { %v4060_v45 = vsel %vm301_vm2, %v6067_v59, %v4034_v19 }
 0xf4f   :  { %v4050_v59 = vpop.permute.xlu2 %4049 }
 0xf57   :  { %v4038_v18 = vpop.permute.xlu1 %4037 }
 0xf58   :  { %v4062_v39 = vsel %vm4061_vm13, %v4060_v45, %v4038_v18  ;;  %v4669_v18 = vld [vmem:[#allocation4 + $0x550] ss:$0 sm:$0xff]  ;;  %v4302_v45 = vld [vmem:[#allocation4 + $0x5a8] sm:$0xff] }
 0xf59   :  { %v4046_v7 = vpop.permute.xlu0 %4045  ;;  %v4064_v14 = vsel %vm4063_vm14, %v4062_v39, %v4042_v3  ;;  %4322 = vmatpush.msrb.mxu2 %v4302_v45  ;;  %v4301_v39 = vld [vmem:[#allocation4 + $0x5a0] sm:$0xff] }
 0xf5a   :  { %v4065_v61 = vsel %vm3826_vm5, %v4064_v14, %v4046_v7  ;;  %v4670_v7 = vld [vmem:[#allocation4 + $0x598] ss:$0 sm:$0xff]  ;;  %v4671_v14 = vld [vmem:[#allocation4 + $0x5b0] ss:$0 sm:$0xff] }
 0xf5b   :  { %v4067_v44 = vsel %vm4066_vm15, %v4065_v61, %v4050_v59  ;;  %4323 = vmatpush.msrb.mxu2 %v4301_v39 }
 0xf61   :  { %v4058_v40 = vpop.permute.xlu0 %4057 }
 0xf6d   :  { %v4054_v17 = vpop.permute.xlu1 %4053 }
 0xf6e   :  { %v4069_v53 = vsel %vm4068_vm0, %v4067_v44, %v4054_v17  ;;  %v4672_v44 = vld [vmem:[#allocation4 + $0x5c0] ss:$0 sm:$0xff] }
 0xf6f   :  { %v4071_v2 = vsel %vm4070_vm1, %v4069_v53, %v4058_v40 }
 0xf70   :  { %4127 = vmatmul.f32.vlgmr.msra.gmra.mxu0 %v4071_v2  ;;  %4147 = vmatmul.f32.vlgmr.msra.gmra.mxu1 %v4071_v2 }
 0xfed   :  { %v4128_v9 = vpop.f32.mrf.mxu0  ;;  %v4148_v5 = vpop.f32.mrf.mxu1 }
 0xfee   :  { %v4129_v30 = vadd.f32 %v4128_v9, %v4107_v27  ;;  %v4149_v32 = vadd.f32 %v4148_v5, %v4108_v38 }
 0xff0   :  { %v4151_v58 = vmax.f32 %v4129_v30, 0.0  ;;  %v4152_v10 = vmax.f32 %v4149_v32, 0.0 }
 0xff2   :  { %4203 = vmatmul.f32.vlgmr.msra.gmra.mxu2 %v4151_v58  ;;  %4223 = vmatmul.f32.vlgmr.msra.gmra.mxu3 %v4152_v10 }
 0xff3   :  { %4629 = vmatpush.msk.msra.mxu2 %vm982_vm6, %v4329_v50 }
0x1075   :  { %v4204_v55 = vpop.f32.mrf.mxu2  ;;  %v4224_v16 = vpop.f32.mrf.mxu3 }
0x1076   :  { %v4205_v19 = vadd.f32 %v4668_v26, %v4204_v55 }
0x1078   :  { %v4225_v22 = vadd.f32 %v4224_v16, %v4205_v19 }
0x107a   :  { %v4227_v13 = vmax.f32 %v4225_v22, 0.0 }
0x107c   :  { %4262 = vmatmul.f32.vlgmr.msrb.gmra.mxu0 %v4227_v13 }
0x10f9   :  { %v4263_v3 = vpop.f32.mrf.mxu0 }
0x10fa   :  { %v4264_v35 = vadd.f32 %v4669_v18, %v4263_v3 }
0x10fc   :  { %v4266_v25 = vmax.f32 %v4264_v35, 0.0 }
0x10fe   :  { %4627 = vmatmul.msk.f32.vlgmr.msrb.gmra.mxu1 %vm3826_vm5, %v4266_v25 }
0x117b   :  { %v4297_v33 = vpop.f32.mrf.mxu1 }
0x117c   :  { %v4298_v21 = vadd.f32 %v4670_v7, %v4297_v33 }
0x117e   :  { %v4300_v56 = vmax.f32 %v4298_v21, 0.0 }
0x1180   :  { %4628 = vmatmul.msk.f32.vlgmr.msrb.gmra.mxu2 %vm301_vm2, %v4300_v56 }
0x1203   :  { %v4325_v61 = vpop.f32.mrf.mxu2 }
0x1204   :  { %v4326_v59 = vadd.f32 %v4671_v14, %v4325_v61 }
0x1206   :  { %v4328_v40 = vmax.f32 %v4326_v59, 0.0 }
0x1208   :  { %4630 = vmatmul.msk.f32.vlgmr.msra.gmra.mxu2 %vm457_vm3, %v4328_v40 }
0x128b   :  { %v4355_v17 = vpop.f32.mrf.mxu2 }
0x128c   :  { %v4356_v53 = vadd.f32 %v4672_v44, %v4355_v17 }
0x128e   :  { %4359 = vst.msk [vmem:[%s6082_s3] sm:$0xff] %vm4358_vm4, %v4356_v53 }
0x128f   :  { %4364 = vsyncpa [#allocation3], 1 }
0x1290   :  { %4365 = vsyncpa [#allocation5], 1 }

</bundles_post_ra>
